<compile_context>
chip_gen: v5e
topology: v5e:2x2
jax: 0.10.0
libtpu: 0.0.40
codegen_flags: <defaults>
</compile_context>

<pallas_src>
import functools

import jax
import jax.numpy as jnp
from jax import lax
from jax.experimental import pallas as pl
from jax.experimental.pallas import tpu as pltpu

BN_EPS = 1e-5
K = 3  # conv kernel size (padding = 1)
_VMEM_LIMIT = 32 * 1024 * 1024  # safe on v5e/v6e (128 MiB) and v7x (64 MiB phys)


def _round_up(x, m):
    return (x + m - 1) // m * m


# --------------------------------------------------------------------------- #
# Phase 1: direct 3x3 conv on a row tile + per-channel sum / sum-of-squares.   #
# --------------------------------------------------------------------------- #
def _conv_stats_kernel(xp_ref, w_ref, y_ref, stats_ref):
    """xp_ref:    (1, H+2, W+2, Ci)  padded NHWC input (resident per image)
       w_ref:     (K*K, Ci, Cp)      conv taps as (Ci, Cp) matrices
       y_ref:     (1, TH, W, Cp)     raw conv output row-tile
       stats_ref: (1, 2, Cp)         [sum, sum_sq], accumulated over row tiles
    """
    h = pl.program_id(1)
    _, TH, W, Cp = y_ref.shape
    Ci = xp_ref.shape[3]

    @pl.when(h == 0)
    def _init():
        stats_ref[...] = jnp.zeros_like(stats_ref)

    row0 = h * TH
    acc = jnp.zeros((TH * W, Cp), jnp.float32)
    for kh in range(K):                       # 9 shifted-slice matmuls, f32 acc
        for kw in range(K):
            patch = xp_ref[0, pl.ds(row0 + kh, TH), pl.ds(kw, W), :]  # (TH,W,Ci)
            acc = acc + jnp.dot(patch.reshape(TH * W, Ci),
                                w_ref[kh * K + kw],
                                preferred_element_type=jnp.float32)

    y_ref[0] = acc.reshape(TH, W, Cp)
    # single-pass batch-norm statistics (E[x], E[x^2]) per output channel
    stats_ref[0, 0:1, :] += jnp.sum(acc, axis=0, keepdims=True)
    stats_ref[0, 1:2, :] += jnp.sum(acc * acc, axis=0, keepdims=True)


# --------------------------------------------------------------------------- #
# Phase 2a: folded BN affine + ReLU, written into a zero-halo padded buffer.   #
# --------------------------------------------------------------------------- #
def _bn_relu_pad_kernel(y_ref, sc_ref, sh_ref, o_ref):
    """y_ref: (1, H, W, Cp); sc/sh: (1, Cp); o_ref: (1, H+2, W+2, Cp)."""
    _, H, W, _ = y_ref.shape
    o_ref[...] = jnp.zeros_like(o_ref)                       # halo = 0
    a = jnp.maximum(y_ref[0] * sc_ref[...] + sh_ref[...], 0.0)
    o_ref[0, 1:H + 1, 1:W + 1, :] = a                        # interior


# --------------------------------------------------------------------------- #
# Phase 2b: folded BN affine + ReLU + fused 2x2 / stride-2 max pool.           #
# --------------------------------------------------------------------------- #
def _bn_relu_pool_kernel(y_ref, sc_ref, sh_ref, o_ref, tmp_ref):
    """y_ref: (1, H, W, Cp); o_ref: (1, H//2, W//2, Cp); tmp_ref: (H//2, W, Cp)."""
    _, Hh, Wh, Cp = o_ref.shape
    W = y_ref.shape[2]
    a = jnp.maximum(y_ref[0] * sc_ref[...] + sh_ref[...], 0.0)   # (H, W, Cp)
    tmp_ref[...] = jnp.max(a.reshape(Hh, 2, W, Cp), axis=1)      # pool rows
    o_ref[0] = jnp.maximum(tmp_ref[:, pl.ds(0, Wh, 2), :],       # pool columns
                           tmp_ref[:, pl.ds(1, Wh, 2), :])       # (strided loads)


# --------------------------------------------------------------------------- #
# pallas_call wrappers                                                         #
# --------------------------------------------------------------------------- #
def _conv_stats(xp, w_mat, cp, tile_h):
    n, hp, wp, ci = xp.shape
    h, w = hp - 2, wp - 2
    return pl.pallas_call(
        _conv_stats_kernel,
        grid=(n, h // tile_h),
        in_specs=[
            pl.BlockSpec((1, hp, wp, ci), lambda i, j: (i, 0, 0, 0)),
            pl.BlockSpec((K * K, ci, cp), lambda i, j: (0, 0, 0)),
        ],
        out_specs=(
            pl.BlockSpec((1, tile_h, w, cp), lambda i, j: (i, j, 0, 0)),
            pl.BlockSpec((1, 2, cp), lambda i, j: (i, 0, 0)),
        ),
        out_shape=(
            jax.ShapeDtypeStruct((n, h, w, cp), jnp.float32),
            jax.ShapeDtypeStruct((n, 2, cp), jnp.float32),
        ),
        compiler_params=pltpu.CompilerParams(
            dimension_semantics=("parallel", "arbitrary"),
            vmem_limit_bytes=_VMEM_LIMIT,
        ),
    )(xp, w_mat)


def _bn_relu_pad(y, scale, shift):
    n, h, w, cp = y.shape
    return pl.pallas_call(
        _bn_relu_pad_kernel,
        grid=(n,),
        in_specs=[
            pl.BlockSpec((1, h, w, cp), lambda i: (i, 0, 0, 0)),
            pl.BlockSpec((1, cp), lambda i: (0, 0)),
            pl.BlockSpec((1, cp), lambda i: (0, 0)),
        ],
        out_specs=pl.BlockSpec((1, h + 2, w + 2, cp), lambda i: (i, 0, 0, 0)),
        out_shape=jax.ShapeDtypeStruct((n, h + 2, w + 2, cp), jnp.float32),
        compiler_params=pltpu.CompilerParams(
            dimension_semantics=("parallel",),
            vmem_limit_bytes=_VMEM_LIMIT,
        ),
    )(y, scale, shift)


def _bn_relu_pool(y, scale, shift):
    n, h, w, cp = y.shape
    hh, wh = h // 2, w // 2
    return pl.pallas_call(
        _bn_relu_pool_kernel,
        grid=(n,),
        in_specs=[
            pl.BlockSpec((1, h, w, cp), lambda i: (i, 0, 0, 0)),
            pl.BlockSpec((1, cp), lambda i: (0, 0)),
            pl.BlockSpec((1, cp), lambda i: (0, 0)),
        ],
        out_specs=pl.BlockSpec((1, hh, wh, cp), lambda i: (i, 0, 0, 0)),
        out_shape=jax.ShapeDtypeStruct((n, hh, wh, cp), jnp.float32),
        scratch_shapes=[pltpu.VMEM((hh, w, cp), jnp.float32)],
        compiler_params=pltpu.CompilerParams(
            dimension_semantics=("parallel",),
            vmem_limit_bytes=_VMEM_LIMIT,
        ),
    )(y, scale, shift)


def _bn_scale_shift(stats, gamma_p, beta_p, count):
    """Fold training-mode BN into a per-channel affine: y = x*scale + shift."""
    ssum = jnp.sum(stats[:, 0, :], axis=0)
    ssq = jnp.sum(stats[:, 1, :], axis=0)
    mean = ssum / count
    var = jnp.maximum(ssq / count - mean * mean, 0.0)   # guard cancellation
    scale = gamma_p * lax.rsqrt(var + BN_EPS)
    shift = beta_p - mean * scale
    return scale[None, :], shift[None, :]


def _prep_weight(w, ci_pad, co_pad):
    """(Cout, Cin, K, K) -> (K*K, Cin_pad, Cout_pad), zero padded."""
    cout, cin, k1, k2 = w.shape
    wm = jnp.transpose(w.astype(jnp.float32), (2, 3, 1, 0)).reshape(k1 * k2, cin, cout)
    return jnp.pad(wm, ((0, 0), (0, ci_pad - cin), (0, co_pad - cout)))


def down_block(x_nchw, w1, g1, be1, w2, g2, be2, *, tile_h=None):
    """DownBlock forward.
    x_nchw: (N, Cin, H, W); w1: (Cout, Cin, 3, 3); w2: (Cout, Cout, 3, 3);
    g*/be*: (Cout,).  Conv biases are intentionally omitted: with training-mode
    BatchNorm they are exactly cancelled by the batch-mean subtraction.
    Returns (N, Cout, H//2, W//2).
    """
    N, Cin, H, W = x_nchw.shape
    Cout = w1.shape[0]
    assert H % 2 == 0 and W % 2 == 0

    ci1 = _round_up(Cin, 8)        # sublane-align the small conv-1 contraction dim
    cp = _round_up(Cout, 128)      # lane-dense channels: unmasked stores, full MXU cols

    if tile_h is None:             # ~512 rows per tile, must divide H
        tile_h = max(1, min(H, 512 // max(W, 1)))
    while H % tile_h:
        tile_h -= 1

    # glue: NCHW -> NHWC, spatial halo + channel zero-pad (NO im2col)
    x = jnp.transpose(x_nchw, (0, 2, 3, 1)).astype(jnp.float32)
    xp = jnp.pad(x, ((0, 0), (1, 1), (1, 1), (0, ci1 - Cin)))

    w1m = _prep_weight(w1, ci1, cp)                 # (9, ci1, cp)
    w2m = _prep_weight(w2, cp, cp)                  # (9, cp,  cp)
    g1p = jnp.pad(g1.astype(jnp.float32), (0, cp - Cout))
    b1p = jnp.pad(be1.astype(jnp.float32), (0, cp - Cout))
    g2p = jnp.pad(g2.astype(jnp.float32), (0, cp - Cout))
    b2p = jnp.pad(be2.astype(jnp.float32), (0, cp - Cout))

    cnt = float(N * H * W)

    # layer 1: conv + batch stats, then fused BN + ReLU + zero-halo pad
    y1, s1 = _conv_stats(xp, w1m, cp, tile_h)
    sc1, sh1 = _bn_scale_shift(s1, g1p, b1p, cnt)
    a1p = _bn_relu_pad(y1, sc1, sh1)                # (N, H+2, W+2, cp)

    # layer 2: conv + batch stats, then fused BN + ReLU + 2x2 max-pool
    # TODO(synk): Dropout2d(0.3) is treated as identity (inference behaviour);
    # stochastic training-mode channel dropout is not implemented.
    y2, s2 = _conv_stats(a1p, w2m, cp, tile_h)
    sc2, sh2 = _bn_scale_shift(s2, g2p, b2p, cnt)
    out = _bn_relu_pool(y2, sc2, sh2)               # (N, H//2, W//2, cp)

    return jnp.transpose(out[:, :, :, :Cout], (0, 3, 1, 2))


# --------------------------------------------------------------------------- #
# Pure-JAX reference (includes the conv biases, which the kernel drops).       #
# --------------------------------------------------------------------------- #
def _reference(x, w1, b1, g1, be1, w2, b2, g2, be2):
    def conv(x_, w, b):
        y = lax.conv_general_dilated(
            x_.astype(jnp.float32), w.astype(jnp.float32), (1, 1),
            ((1, 1), (1, 1)), dimension_numbers=("NCHW", "OIHW", "NCHW"))
        return y + b.reshape(1, -1, 1, 1).astype(jnp.float32)

    def bn_relu(x_, g, be):
        m = jnp.mean(x_, axis=(0, 2, 3), keepdims=True)
        v = jnp.mean((x_ - m) ** 2, axis=(0, 2, 3), keepdims=True)
        y = g.reshape(1, -1, 1, 1) * (x_ - m) * lax.rsqrt(v + BN_EPS) \
            + be.reshape(1, -1, 1, 1)
        return jnp.maximum(y, 0.0)

    a1 = bn_relu(conv(x, w1, b1), g1, be1)
    a2 = bn_relu(conv(a1, w2, b2), g2, be2)          # Dropout2d -> identity
    return lax.reduce_window(a2, -jnp.inf, lax.max,
                             (1, 1, 2, 2), (1, 1, 2, 2), "VALID")


if __name__ == "__main__":
    key = jax.random.PRNGKey(0)
    N, Cin, H, W = 2, 4, 16, 16
    Cout = 8

    ks = jax.random.split(key, 9)
    x = jax.random.normal(ks[0], (N, Cin, H, W), dtype=jnp.float32)

    def conv_init(kw, kb, cout, cin):
        fan_in = cin * K * K
        bound = 1.0 / (fan_in ** 0.5)
        w = jax.random.uniform(kw, (cout, cin, K, K), minval=-bound, maxval=bound)
        b = jax.random.uniform(kb, (cout,), minval=-bound, maxval=bound)
        return w.astype(jnp.float32), b.astype(jnp.float32)

    w1, b1 = conv_init(ks[1], ks[2], Cout, Cin)
    w2, b2 = conv_init(ks[3], ks[4], Cout, Cout)
    g1 = 1.0 + 0.1 * jax.random.normal(ks[5], (Cout,), dtype=jnp.float32)
    be1 = 0.1 * jax.random.normal(ks[6], (Cout,), dtype=jnp.float32)
    g2 = 1.0 + 0.1 * jax.random.normal(ks[7], (Cout,), dtype=jnp.float32)
    be2 = 0.1 * jax.random.normal(ks[8], (Cout,), dtype=jnp.float32)

    # tile_h=8 -> two row-tiles per image, exercising the streamed stats path.
    fwd = jax.jit(functools.partial(down_block, tile_h=8))
    out = jax.block_until_ready(fwd(x, w1, g1, be1, w2, g2, be2))

    ref = _reference(x, w1, b1, g1, be1, w2, b2, g2, be2)
    assert out.shape == (N, Cout, H // 2, W // 2), out.shape
    err = float(jnp.max(jnp.abs(out - ref)))
    assert err < 2e-3, f"mismatch vs reference: {err}"

    print("KERNEL_OK")
</pallas_src>

<mosaic_0001>
module attributes {stable_mosaic.version = 11 : i64} {
  func.func @_bn_relu_pad_kernel(%arg0: i32, %arg1: memref<1x16x16x128xf32, #tpu.memory_space<vmem>>, %arg2: memref<1x128xf32, #tpu.memory_space<vmem>>, %arg3: memref<1x128xf32, #tpu.memory_space<vmem>>, %arg4: memref<1x18x18x128xf32, #tpu.memory_space<vmem>>) attributes {dimension_semantics = [#tpu.dimension_semantics<parallel>], iteration_bounds = array<i64: 2>, scalar_prefetch = 0 : i64, scratch_operands = 0 : i64, tpu.core_type = #tpu.core_type<tc>, window_params = [{transform_indices = @transform_0, window_bounds = array<i64: 1, 16, 16, 128>}, {pipeline_mode = #tpu.pipeline_mode<synchronous>, transform_indices = @transform_1, window_bounds = array<i64: 1, 128>}, {pipeline_mode = #tpu.pipeline_mode<synchronous>, transform_indices = @transform_2, window_bounds = array<i64: 1, 128>}, {transform_indices = @transform_3, window_bounds = array<i64: 1, 18, 18, 128>}]} {
    %cst = arith.constant 0.000000e+00 : f32
    %0 = vector.broadcast %cst : f32 to vector<1x18x18x128xf32>
    %c0 = arith.constant 0 : index
    %c0_0 = arith.constant 0 : index
    %c0_1 = arith.constant 0 : index
    %c0_2 = arith.constant 0 : index
    %1 = vector.load %arg4[%c0, %c0_0, %c0_1, %c0_2] : memref<1x18x18x128xf32, #tpu.memory_space<vmem>>, vector<1x18x18x128xf32>
    tpu.vector_store %arg4[%c0, %c0_0, %c0_1, %c0_2], %0 {strides = array<i32>} : memref<1x18x18x128xf32, #tpu.memory_space<vmem>>, vector<1x18x18x128xf32>,
    %c0_3 = arith.constant 0 : index
    %c0_4 = arith.constant 0 : index
    %c0_5 = arith.constant 0 : index
    %c0_6 = arith.constant 0 : index
    %2 = vector.load %arg1[%c0_3, %c0_4, %c0_5, %c0_6] : memref<1x16x16x128xf32, #tpu.memory_space<vmem>>, vector<1x16x16x128xf32>
    %3 = vector.shape_cast %2 : vector<1x16x16x128xf32> to vector<16x16x128xf32>
    %c0_7 = arith.constant 0 : index
    %c0_8 = arith.constant 0 : index
    %4 = vector.load %arg2[%c0_7, %c0_8] : memref<1x128xf32, #tpu.memory_space<vmem>>, vector<1x128xf32>
    %5 = vector.shape_cast %4 : vector<1x128xf32> to vector<1x1x128xf32>
    %6 = vector.broadcast %5 : vector<1x1x128xf32> to vector<16x16x128xf32>
    %7 = arith.mulf %3, %6 : vector<16x16x128xf32>
    %c0_9 = arith.constant 0 : index
    %c0_10 = arith.constant 0 : index
    %8 = vector.load %arg3[%c0_9, %c0_10] : memref<1x128xf32, #tpu.memory_space<vmem>>, vector<1x128xf32>
    %9 = vector.shape_cast %8 : vector<1x128xf32> to vector<1x1x128xf32>
    %10 = vector.broadcast %9 : vector<1x1x128xf32> to vector<16x16x128xf32>
    %11 = arith.addf %7, %10 : vector<16x16x128xf32>
    %cst_11 = arith.constant 0.000000e+00 : f32
    %12 = vector.broadcast %cst_11 : f32 to vector<16x16x128xf32>
    %13 = arith.maximumf %11, %12 : vector<16x16x128xf32>
    %c0_12 = arith.constant 0 : index
    %c1 = arith.constant 1 : index
    %c1_13 = arith.constant 1 : index
    %c0_14 = arith.constant 0 : index
    %14 = vector.load %arg4[%c0_12, %c1, %c1_13, %c0_14] : memref<1x18x18x128xf32, #tpu.memory_space<vmem>>, vector<1x16x16x128xf32>
    %15 = vector.shape_cast %14 : vector<1x16x16x128xf32> to vector<16x16x128xf32>
    %16 = vector.shape_cast %13 : vector<16x16x128xf32> to vector<1x16x16x128xf32>
    tpu.vector_store %arg4[%c0_12, %c1, %c1_13, %c0_14], %16 {strides = array<i32>} : memref<1x18x18x128xf32, #tpu.memory_space<vmem>>, vector<1x16x16x128xf32>,
    return
  }
  func.func @transform_0(%arg0: i32) -> (i32, i32, i32, i32) {
    %c0_i32 = arith.constant 0 : i32
    %c0_i32_0 = arith.constant 0 : i32
    %c0_i32_1 = arith.constant 0 : i32
    %c0_i32_2 = arith.constant 0 : i32
    return %arg0, %c0_i32, %c0_i32_0, %c0_i32_1 : i32, i32, i32, i32
  }
  func.func @transform_1(%arg0: i32) -> (i32, i32) {
    %c0_i32 = arith.constant 0 : i32
    %c0_i32_0 = arith.constant 0 : i32
    %c0_i32_1 = arith.constant 0 : i32
    return %c0_i32, %c0_i32_0 : i32, i32
  }
  func.func @transform_2(%arg0: i32) -> (i32, i32) {
    %c0_i32 = arith.constant 0 : i32
    %c0_i32_0 = arith.constant 0 : i32
    %c0_i32_1 = arith.constant 0 : i32
    return %c0_i32, %c0_i32_0 : i32, i32
  }
  func.func @transform_3(%arg0: i32) -> (i32, i32, i32, i32) {
    %c0_i32 = arith.constant 0 : i32
    %c0_i32_0 = arith.constant 0 : i32
    %c0_i32_1 = arith.constant 0 : i32
    %c0_i32_2 = arith.constant 0 : i32
    return %arg0, %c0_i32, %c0_i32_0, %c0_i32_1 : i32, i32, i32, i32
  }
}

module attributes {stable_mosaic.version = 11 : i64} {
  func.func @_conv_stats_kernel(%arg0: i32, %arg1: i32, %arg2: memref<1x18x18x8xf32, #tpu.memory_space<vmem>>, %arg3: memref<9x8x128xf32, #tpu.memory_space<vmem>>, %arg4: memref<1x8x16x128xf32, #tpu.memory_space<vmem>>, %arg5: memref<1x2x128xf32, #tpu.memory_space<vmem>>) attributes {dimension_semantics = [#tpu.dimension_semantics<parallel>, #tpu.dimension_semantics<arbitrary>], iteration_bounds = array<i64: 2, 2>, scalar_prefetch = 0 : i64, scratch_operands = 0 : i64, tpu.core_type = #tpu.core_type<tc>, window_params = [{transform_indices = @transform_0, window_bounds = array<i64: 1, 18, 18, 8>}, {pipeline_mode = #tpu.pipeline_mode<synchronous>, transform_indices = @transform_1, window_bounds = array<i64: 9, 8, 128>}, {transform_indices = @transform_2, window_bounds = array<i64: 1, 8, 16, 128>}, {transform_indices = @transform_3, window_bounds = array<i64: 1, 2, 128>}]} {
    %c0_i32 = arith.constant 0 : i32
    %0 = arith.cmpi eq, %arg1, %c0_i32 : i32
    %1 = arith.extui %0 : i1 to i32
    %c0_i32_0 = arith.constant 0 : i32
    %2 = arith.cmpi ne, %1, %c0_i32_0 : i32
    scf.if %2 {
      %cst_80 = arith.constant 0.000000e+00 : f32
      %107 = vector.broadcast %cst_80 : f32 to vector<1x2x128xf32>
      %c0_81 = arith.constant 0 : index
      %c0_82 = arith.constant 0 : index
      %c0_83 = arith.constant 0 : index
      %108 = vector.load %arg5[%c0_81, %c0_82, %c0_83] : memref<1x2x128xf32, #tpu.memory_space<vmem>>, vector<1x2x128xf32>
      tpu.vector_store %arg5[%c0_81, %c0_82, %c0_83], %107 {strides = array<i32>} : memref<1x2x128xf32, #tpu.memory_space<vmem>>, vector<1x2x128xf32>,
    } else {
    }
    %c8_i32 = arith.constant 8 : i32
    %3 = arith.muli %arg1, %c8_i32 : i32
    %cst = arith.constant 0.000000e+00 : f32
    %4 = vector.broadcast %cst : f32 to vector<128x128xf32>
    %c0_i32_1 = arith.constant 0 : i32
    %5 = arith.addi %3, %c0_i32_1 : i32
    %c0 = arith.constant 0 : index
    %6 = arith.index_cast %5 : i32 to index
    %c0_2 = arith.constant 0 : index
    %c0_3 = arith.constant 0 : index
    %7 = vector.load %arg2[%c0, %6, %c0_2, %c0_3] : memref<1x18x18x8xf32, #tpu.memory_space<vmem>>, vector<1x8x16x8xf32>
    %8 = vector.shape_cast %7 : vector<1x8x16x8xf32> to vector<8x16x8xf32>
    %9 = vector.shape_cast %8 : vector<8x16x8xf32> to vector<128x8xf32>
    %c0_4 = arith.constant 0 : index
    %c0_5 = arith.constant 0 : index
    %c0_6 = arith.constant 0 : index
    %10 = vector.load %arg3[%c0_4, %c0_5, %c0_6] : memref<9x8x128xf32, #tpu.memory_space<vmem>>, vector<1x8x128xf32>
    %11 = vector.shape_cast %10 : vector<1x8x128xf32> to vector<8x128xf32>
    %cst_7 = arith.constant dense<0.000000e+00> : vector<128x128xf32>
    %12 = tpu.matmul %9, %11, %cst_7 {dimension_numbers = #tpu.dot_dimension_numbers<[1], [0], [0], [1], [0, 0, 1, 1], [], []>} : vector<128x8xf32>, vector<8x128xf32>, vector<128x128xf32> -> vector<128x128xf32>
    %13 = arith.addf %4, %12 : vector<128x128xf32>
    %c0_i32_8 = arith.constant 0 : i32
    %14 = arith.addi %3, %c0_i32_8 : i32
    %c0_9 = arith.constant 0 : index
    %15 = arith.index_cast %14 : i32 to index
    %c1 = arith.constant 1 : index
    %c0_10 = arith.constant 0 : index
    %16 = vector.load %arg2[%c0_9, %15, %c1, %c0_10] : memref<1x18x18x8xf32, #tpu.memory_space<vmem>>, vector<1x8x16x8xf32>
    %17 = vector.shape_cast %16 : vector<1x8x16x8xf32> to vector<8x16x8xf32>
    %18 = vector.shape_cast %17 : vector<8x16x8xf32> to vector<128x8xf32>
    %c1_11 = arith.constant 1 : index
    %c0_12 = arith.constant 0 : index
    %c0_13 = arith.constant 0 : index
    %19 = vector.load %arg3[%c1_11, %c0_12, %c0_13] : memref<9x8x128xf32, #tpu.memory_space<vmem>>, vector<1x8x128xf32>
    %20 = vector.shape_cast %19 : vector<1x8x128xf32> to vector<8x128xf32>
    %cst_14 = arith.constant dense<0.000000e+00> : vector<128x128xf32>
    %21 = tpu.matmul %18, %20, %cst_14 {dimension_numbers = #tpu.dot_dimension_numbers<[1], [0], [0], [1], [0, 0, 1, 1], [], []>} : vector<128x8xf32>, vector<8x128xf32>, vector<128x128xf32> -> vector<128x128xf32>
    %22 = arith.addf %13, %21 : vector<128x128xf32>
    %c0_i32_15 = arith.constant 0 : i32
    %23 = arith.addi %3, %c0_i32_15 : i32
    %c0_16 = arith.constant 0 : index
    %24 = arith.index_cast %23 : i32 to index
    %c2 = arith.constant 2 : index
    %c0_17 = arith.constant 0 : index
    %25 = vector.load %arg2[%c0_16, %24, %c2, %c0_17] : memref<1x18x18x8xf32, #tpu.memory_space<vmem>>, vector<1x8x16x8xf32>
    %26 = vector.shape_cast %25 : vector<1x8x16x8xf32> to vector<8x16x8xf32>
    %27 = vector.shape_cast %26 : vector<8x16x8xf32> to vector<128x8xf32>
    %c2_18 = arith.constant 2 : index
    %c0_19 = arith.constant 0 : index
    %c0_20 = arith.constant 0 : index
    %28 = vector.load %arg3[%c2_18, %c0_19, %c0_20] : memref<9x8x128xf32, #tpu.memory_space<vmem>>, vector<1x8x128xf32>
    %29 = vector.shape_cast %28 : vector<1x8x128xf32> to vector<8x128xf32>
    %cst_21 = arith.constant dense<0.000000e+00> : vector<128x128xf32>
    %30 = tpu.matmul %27, %29, %cst_21 {dimension_numbers = #tpu.dot_dimension_numbers<[1], [0], [0], [1], [0, 0, 1, 1], [], []>} : vector<128x8xf32>, vector<8x128xf32>, vector<128x128xf32> -> vector<128x128xf32>
    %31 = arith.addf %22, %30 : vector<128x128xf32>
    %c1_i32 = arith.constant 1 : i32
    %32 = arith.addi %3, %c1_i32 : i32
    %c0_22 = arith.constant 0 : index
    %33 = arith.index_cast %32 : i32 to index
    %c0_23 = arith.constant 0 : index
    %c0_24 = arith.constant 0 : index
    %34 = vector.load %arg2[%c0_22, %33, %c0_23, %c0_24] : memref<1x18x18x8xf32, #tpu.memory_space<vmem>>, vector<1x8x16x8xf32>
    %35 = vector.shape_cast %34 : vector<1x8x16x8xf32> to vector<8x16x8xf32>
    %36 = vector.shape_cast %35 : vector<8x16x8xf32> to vector<128x8xf32>
    %c3 = arith.constant 3 : index
    %c0_25 = arith.constant 0 : index
    %c0_26 = arith.constant 0 : index
    %37 = vector.load %arg3[%c3, %c0_25, %c0_26] : memref<9x8x128xf32, #tpu.memory_space<vmem>>, vector<1x8x128xf32>
    %38 = vector.shape_cast %37 : vector<1x8x128xf32> to vector<8x128xf32>
    %cst_27 = arith.constant dense<0.000000e+00> : vector<128x128xf32>
    %39 = tpu.matmul %36, %38, %cst_27 {dimension_numbers = #tpu.dot_dimension_numbers<[1], [0], [0], [1], [0, 0, 1, 1], [], []>} : vector<128x8xf32>, vector<8x128xf32>, vector<128x128xf32> -> vector<128x128xf32>
    %40 = arith.addf %31, %39 : vector<128x128xf32>
    %c1_i32_28 = arith.constant 1 : i32
    %41 = arith.addi %3, %c1_i32_28 : i32
    %c0_29 = arith.constant 0 : index
    %42 = arith.index_cast %41 : i32 to index
    %c1_30 = arith.constant 1 : index
    %c0_31 = arith.constant 0 : index
    %43 = vector.load %arg2[%c0_29, %42, %c1_30, %c0_31] : memref<1x18x18x8xf32, #tpu.memory_space<vmem>>, vector<1x8x16x8xf32>
    %44 = vector.shape_cast %43 : vector<1x8x16x8xf32> to vector<8x16x8xf32>
    %45 = vector.shape_cast %44 : vector<8x16x8xf32> to vector<128x8xf32>
    %c4 = arith.constant 4 : index
    %c0_32 = arith.constant 0 : index
    %c0_33 = arith.constant 0 : index
    %46 = vector.load %arg3[%c4, %c0_32, %c0_33] : memref<9x8x128xf32, #tpu.memory_space<vmem>>, vector<1x8x128xf32>
    %47 = vector.shape_cast %46 : vector<1x8x128xf32> to vector<8x128xf32>
    %cst_34 = arith.constant dense<0.000000e+00> : vector<128x128xf32>
    %48 = tpu.matmul %45, %47, %cst_34 {dimension_numbers = #tpu.dot_dimension_numbers<[1], [0], [0], [1], [0, 0, 1, 1], [], []>} : vector<128x8xf32>, vector<8x128xf32>, vector<128x128xf32> -> vector<128x128xf32>
    %49 = arith.addf %40, %48 : vector<128x128xf32>
    %c1_i32_35 = arith.constant 1 : i32
    %50 = arith.addi %3, %c1_i32_35 : i32
    %c0_36 = arith.constant 0 : index
    %51 = arith.index_cast %50 : i32 to index
    %c2_37 = arith.constant 2 : index
    %c0_38 = arith.constant 0 : index
    %52 = vector.load %arg2[%c0_36, %51, %c2_37, %c0_38] : memref<1x18x18x8xf32, #tpu.memory_space<vmem>>, vector<1x8x16x8xf32>
    %53 = vector.shape_cast %52 : vector<1x8x16x8xf32> to vector<8x16x8xf32>
    %54 = vector.shape_cast %53 : vector<8x16x8xf32> to vector<128x8xf32>
    %c5 = arith.constant 5 : index
    %c0_39 = arith.constant 0 : index
    %c0_40 = arith.constant 0 : index
    %55 = vector.load %arg3[%c5, %c0_39, %c0_40] : memref<9x8x128xf32, #tpu.memory_space<vmem>>, vector<1x8x128xf32>
    %56 = vector.shape_cast %55 : vector<1x8x128xf32> to vector<8x128xf32>
    %cst_41 = arith.constant dense<0.000000e+00> : vector<128x128xf32>
    %57 = tpu.matmul %54, %56, %cst_41 {dimension_numbers = #tpu.dot_dimension_numbers<[1], [0], [0], [1], [0, 0, 1, 1], [], []>} : vector<128x8xf32>, vector<8x128xf32>, vector<128x128xf32> -> vector<128x128xf32>
    %58 = arith.addf %49, %57 : vector<128x128xf32>
    %c2_i32 = arith.constant 2 : i32
    %59 = arith.addi %3, %c2_i32 : i32
    %c0_42 = arith.constant 0 : index
    %60 = arith.index_cast %59 : i32 to index
    %c0_43 = arith.constant 0 : index
    %c0_44 = arith.constant 0 : index
    %61 = vector.load %arg2[%c0_42, %60, %c0_43, %c0_44] : memref<1x18x18x8xf32, #tpu.memory_space<vmem>>, vector<1x8x16x8xf32>
    %62 = vector.shape_cast %61 : vector<1x8x16x8xf32> to vector<8x16x8xf32>
    %63 = vector.shape_cast %62 : vector<8x16x8xf32> to vector<128x8xf32>
    %c6 = arith.constant 6 : index
    %c0_45 = arith.constant 0 : index
    %c0_46 = arith.constant 0 : index
    %64 = vector.load %arg3[%c6, %c0_45, %c0_46] : memref<9x8x128xf32, #tpu.memory_space<vmem>>, vector<1x8x128xf32>
    %65 = vector.shape_cast %64 : vector<1x8x128xf32> to vector<8x128xf32>
    %cst_47 = arith.constant dense<0.000000e+00> : vector<128x128xf32>
    %66 = tpu.matmul %63, %65, %cst_47 {dimension_numbers = #tpu.dot_dimension_numbers<[1], [0], [0], [1], [0, 0, 1, 1], [], []>} : vector<128x8xf32>, vector<8x128xf32>, vector<128x128xf32> -> vector<128x128xf32>
    %67 = arith.addf %58, %66 : vector<128x128xf32>
    %c2_i32_48 = arith.constant 2 : i32
    %68 = arith.addi %3, %c2_i32_48 : i32
    %c0_49 = arith.constant 0 : index
    %69 = arith.index_cast %68 : i32 to index
    %c1_50 = arith.constant 1 : index
    %c0_51 = arith.constant 0 : index
    %70 = vector.load %arg2[%c0_49, %69, %c1_50, %c0_51] : memref<1x18x18x8xf32, #tpu.memory_space<vmem>>, vector<1x8x16x8xf32>
    %71 = vector.shape_cast %70 : vector<1x8x16x8xf32> to vector<8x16x8xf32>
    %72 = vector.shape_cast %71 : vector<8x16x8xf32> to vector<128x8xf32>
    %c7 = arith.constant 7 : index
    %c0_52 = arith.constant 0 : index
    %c0_53 = arith.constant 0 : index
    %73 = vector.load %arg3[%c7, %c0_52, %c0_53] : memref<9x8x128xf32, #tpu.memory_space<vmem>>, vector<1x8x128xf32>
    %74 = vector.shape_cast %73 : vector<1x8x128xf32> to vector<8x128xf32>
    %cst_54 = arith.constant dense<0.000000e+00> : vector<128x128xf32>
    %75 = tpu.matmul %72, %74, %cst_54 {dimension_numbers = #tpu.dot_dimension_numbers<[1], [0], [0], [1], [0, 0, 1, 1], [], []>} : vector<128x8xf32>, vector<8x128xf32>, vector<128x128xf32> -> vector<128x128xf32>
    %76 = arith.addf %67, %75 : vector<128x128xf32>
    %c2_i32_55 = arith.constant 2 : i32
    %77 = arith.addi %3, %c2_i32_55 : i32
    %c0_56 = arith.constant 0 : index
    %78 = arith.index_cast %77 : i32 to index
    %c2_57 = arith.constant 2 : index
    %c0_58 = arith.constant 0 : index
    %79 = vector.load %arg2[%c0_56, %78, %c2_57, %c0_58] : memref<1x18x18x8xf32, #tpu.memory_space<vmem>>, vector<1x8x16x8xf32>
    %80 = vector.shape_cast %79 : vector<1x8x16x8xf32> to vector<8x16x8xf32>
    %81 = vector.shape_cast %80 : vector<8x16x8xf32> to vector<128x8xf32>
    %c8 = arith.constant 8 : index
    %c0_59 = arith.constant 0 : index
    %c0_60 = arith.constant 0 : index
    %82 = vector.load %arg3[%c8, %c0_59, %c0_60] : memref<9x8x128xf32, #tpu.memory_space<vmem>>, vector<1x8x128xf32>
    %83 = vector.shape_cast %82 : vector<1x8x128xf32> to vector<8x128xf32>
    %cst_61 = arith.constant dense<0.000000e+00> : vector<128x128xf32>
    %84 = tpu.matmul %81, %83, %cst_61 {dimension_numbers = #tpu.dot_dimension_numbers<[1], [0], [0], [1], [0, 0, 1, 1], [], []>} : vector<128x8xf32>, vector<8x128xf32>, vector<128x128xf32> -> vector<128x128xf32>
    %85 = arith.addf %76, %84 : vector<128x128xf32>
    %86 = vector.shape_cast %85 : vector<128x128xf32> to vector<8x16x128xf32>
    %c0_62 = arith.constant 0 : index
    %c0_63 = arith.constant 0 : index
    %c0_64 = arith.constant 0 : index
    %c0_65 = arith.constant 0 : index
    %87 = vector.load %arg4[%c0_62, %c0_63, %c0_64, %c0_65] : memref<1x8x16x128xf32, #tpu.memory_space<vmem>>, vector<1x8x16x128xf32>
    %88 = vector.shape_cast %87 : vector<1x8x16x128xf32> to vector<8x16x128xf32>
    %89 = vector.shape_cast %86 : vector<8x16x128xf32> to vector<1x8x16x128xf32>
    tpu.vector_store %arg4[%c0_62, %c0_63, %c0_64, %c0_65], %89 {strides = array<i32>} : memref<1x8x16x128xf32, #tpu.memory_space<vmem>>, vector<1x8x16x128xf32>,
    %c0_66 = arith.constant 0 : index
    %c0_67 = arith.constant 0 : index
    %c0_68 = arith.constant 0 : index
    %90 = vector.load %arg5[%c0_66, %c0_67, %c0_68] : memref<1x2x128xf32, #tpu.memory_space<vmem>>, vector<1x1x128xf32>
    %91 = vector.shape_cast %90 : vector<1x1x128xf32> to vector<1x128xf32>
    %cst_69 = arith.constant dense<0.000000e+00> : vector<128xf32>
    %92 = vector.multi_reduction <add>, %85, %cst_69 [0] : vector<128x128xf32> to vector<128xf32>
    %93 = vector.shape_cast %92 : vector<128xf32> to vector<1x128xf32>
    %94 = arith.addf %91, %93 : vector<1x128xf32>
    %c0_70 = arith.constant 0 : index
    %c0_71 = arith.constant 0 : index
    %c0_72 = arith.constant 0 : index
    %95 = vector.load %arg5[%c0_70, %c0_71, %c0_72] : memref<1x2x128xf32, #tpu.memory_space<vmem>>, vector<1x1x128xf32>
    %96 = vector.shape_cast %95 : vector<1x1x128xf32> to vector<1x128xf32>
    %97 = vector.shape_cast %94 : vector<1x128xf32> to vector<1x1x128xf32>
    tpu.vector_store %arg5[%c0_70, %c0_71, %c0_72], %97 {strides = array<i32>} : memref<1x2x128xf32, #tpu.memory_space<vmem>>, vector<1x1x128xf32>,
    %c0_73 = arith.constant 0 : index
    %c1_74 = arith.constant 1 : index
    %c0_75 = arith.constant 0 : index
    %98 = vector.load %arg5[%c0_73, %c1_74, %c0_75] : memref<1x2x128xf32, #tpu.memory_space<vmem>>, vector<1x1x128xf32>
    %99 = vector.shape_cast %98 : vector<1x1x128xf32> to vector<1x128xf32>
    %100 = arith.mulf %85, %85 : vector<128x128xf32>
    %cst_76 = arith.constant dense<0.000000e+00> : vector<128xf32>
    %101 = vector.multi_reduction <add>, %100, %cst_76 [0] : vector<128x128xf32> to vector<128xf32>
    %102 = vector.shape_cast %101 : vector<128xf32> to vector<1x128xf32>
    %103 = arith.addf %99, %102 : vector<1x128xf32>
    %c0_77 = arith.constant 0 : index
    %c1_78 = arith.constant 1 : index
    %c0_79 = arith.constant 0 : index
    %104 = vector.load %arg5[%c0_77, %c1_78, %c0_79] : memref<1x2x128xf32, #tpu.memory_space<vmem>>, vector<1x1x128xf32>
    %105 = vector.shape_cast %104 : vector<1x1x128xf32> to vector<1x128xf32>
    %106 = vector.shape_cast %103 : vector<1x128xf32> to vector<1x1x128xf32>
    tpu.vector_store %arg5[%c0_77, %c1_78, %c0_79], %106 {strides = array<i32>} : memref<1x2x128xf32, #tpu.memory_space<vmem>>, vector<1x1x128xf32>,
    return
  }
  func.func @transform_0(%arg0: i32, %arg1: i32) -> (i32, i32, i32, i32) {
    %c0_i32 = arith.constant 0 : i32
    %c0_i32_0 = arith.constant 0 : i32
    %c0_i32_1 = arith.constant 0 : i32
    %c0_i32_2 = arith.constant 0 : i32
    return %arg0, %c0_i32, %c0_i32_0, %c0_i32_1 : i32, i32, i32, i32
  }
  func.func @transform_1(%arg0: i32, %arg1: i32) -> (i32, i32, i32) {
    %c0_i32 = arith.constant 0 : i32
    %c0_i32_0 = arith.constant 0 : i32
    %c0_i32_1 = arith.constant 0 : i32
    %c0_i32_2 = arith.constant 0 : i32
    return %c0_i32, %c0_i32_0, %c0_i32_1 : i32, i32, i32
  }
  func.func @transform_2(%arg0: i32, %arg1: i32) -> (i32, i32, i32, i32) {
    %c0_i32 = arith.constant 0 : i32
    %c0_i32_0 = arith.constant 0 : i32
    %c0_i32_1 = arith.constant 0 : i32
    return %arg0, %arg1, %c0_i32, %c0_i32_0 : i32, i32, i32, i32
  }
  func.func @transform_3(%arg0: i32, %arg1: i32) -> (i32, i32, i32) {
    %c0_i32 = arith.constant 0 : i32
    %c0_i32_0 = arith.constant 0 : i32
    %c0_i32_1 = arith.constant 0 : i32
    return %arg0, %c0_i32, %c0_i32_0 : i32, i32, i32
  }
}

module attributes {stable_mosaic.version = 11 : i64} {
  func.func @_conv_stats_kernel(%arg0: i32, %arg1: i32, %arg2: memref<1x18x18x128xf32, #tpu.memory_space<vmem>>, %arg3: memref<9x128x128xf32, #tpu.memory_space<vmem>>, %arg4: memref<1x8x16x128xf32, #tpu.memory_space<vmem>>, %arg5: memref<1x2x128xf32, #tpu.memory_space<vmem>>) attributes {dimension_semantics = [#tpu.dimension_semantics<parallel>, #tpu.dimension_semantics<arbitrary>], iteration_bounds = array<i64: 2, 2>, scalar_prefetch = 0 : i64, scratch_operands = 0 : i64, tpu.core_type = #tpu.core_type<tc>, window_params = [{transform_indices = @transform_0, window_bounds = array<i64: 1, 18, 18, 128>}, {pipeline_mode = #tpu.pipeline_mode<synchronous>, transform_indices = @transform_1, window_bounds = array<i64: 9, 128, 128>}, {transform_indices = @transform_2, window_bounds = array<i64: 1, 8, 16, 128>}, {transform_indices = @transform_3, window_bounds = array<i64: 1, 2, 128>}]} {
    %c0_i32 = arith.constant 0 : i32
    %0 = arith.cmpi eq, %arg1, %c0_i32 : i32
    %1 = arith.extui %0 : i1 to i32
    %c0_i32_0 = arith.constant 0 : i32
    %2 = arith.cmpi ne, %1, %c0_i32_0 : i32
    scf.if %2 {
      %cst_80 = arith.constant 0.000000e+00 : f32
      %107 = vector.broadcast %cst_80 : f32 to vector<1x2x128xf32>
      %c0_81 = arith.constant 0 : index
      %c0_82 = arith.constant 0 : index
      %c0_83 = arith.constant 0 : index
      %108 = vector.load %arg5[%c0_81, %c0_82, %c0_83] : memref<1x2x128xf32, #tpu.memory_space<vmem>>, vector<1x2x128xf32>
      tpu.vector_store %arg5[%c0_81, %c0_82, %c0_83], %107 {strides = array<i32>} : memref<1x2x128xf32, #tpu.memory_space<vmem>>, vector<1x2x128xf32>,
    } else {
    }
    %c8_i32 = arith.constant 8 : i32
    %3 = arith.muli %arg1, %c8_i32 : i32
    %cst = arith.constant 0.000000e+00 : f32
    %4 = vector.broadcast %cst : f32 to vector<128x128xf32>
    %c0_i32_1 = arith.constant 0 : i32
    %5 = arith.addi %3, %c0_i32_1 : i32
    %c0 = arith.constant 0 : index
    %6 = arith.index_cast %5 : i32 to index
    %c0_2 = arith.constant 0 : index
    %c0_3 = arith.constant 0 : index
    %7 = vector.load %arg2[%c0, %6, %c0_2, %c0_3] : memref<1x18x18x128xf32, #tpu.memory_space<vmem>>, vector<1x8x16x128xf32>
    %8 = vector.shape_cast %7 : vector<1x8x16x128xf32> to vector<8x16x128xf32>
    %9 = vector.shape_cast %8 : vector<8x16x128xf32> to vector<128x128xf32>
    %c0_4 = arith.constant 0 : index
    %c0_5 = arith.constant 0 : index
    %c0_6 = arith.constant 0 : index
    %10 = vector.load %arg3[%c0_4, %c0_5, %c0_6] : memref<9x128x128xf32, #tpu.memory_space<vmem>>, vector<1x128x128xf32>
    %11 = vector.shape_cast %10 : vector<1x128x128xf32> to vector<128x128xf32>
    %cst_7 = arith.constant dense<0.000000e+00> : vector<128x128xf32>
    %12 = tpu.matmul %9, %11, %cst_7 {dimension_numbers = #tpu.dot_dimension_numbers<[1], [0], [0], [1], [0, 0, 1, 1], [], []>} : vector<128x128xf32>, vector<128x128xf32>, vector<128x128xf32> -> vector<128x128xf32>
    %13 = arith.addf %4, %12 : vector<128x128xf32>
    %c0_i32_8 = arith.constant 0 : i32
    %14 = arith.addi %3, %c0_i32_8 : i32
    %c0_9 = arith.constant 0 : index
    %15 = arith.index_cast %14 : i32 to index
    %c1 = arith.constant 1 : index
    %c0_10 = arith.constant 0 : index
    %16 = vector.load %arg2[%c0_9, %15, %c1, %c0_10] : memref<1x18x18x128xf32, #tpu.memory_space<vmem>>, vector<1x8x16x128xf32>
    %17 = vector.shape_cast %16 : vector<1x8x16x128xf32> to vector<8x16x128xf32>
    %18 = vector.shape_cast %17 : vector<8x16x128xf32> to vector<128x128xf32>
    %c1_11 = arith.constant 1 : index
    %c0_12 = arith.constant 0 : index
    %c0_13 = arith.constant 0 : index
    %19 = vector.load %arg3[%c1_11, %c0_12, %c0_13] : memref<9x128x128xf32, #tpu.memory_space<vmem>>, vector<1x128x128xf32>
    %20 = vector.shape_cast %19 : vector<1x128x128xf32> to vector<128x128xf32>
    %cst_14 = arith.constant dense<0.000000e+00> : vector<128x128xf32>
    %21 = tpu.matmul %18, %20, %cst_14 {dimension_numbers = #tpu.dot_dimension_numbers<[1], [0], [0], [1], [0, 0, 1, 1], [], []>} : vector<128x128xf32>, vector<128x128xf32>, vector<128x128xf32> -> vector<128x128xf32>
    %22 = arith.addf %13, %21 : vector<128x128xf32>
    %c0_i32_15 = arith.constant 0 : i32
    %23 = arith.addi %3, %c0_i32_15 : i32
    %c0_16 = arith.constant 0 : index
    %24 = arith.index_cast %23 : i32 to index
    %c2 = arith.constant 2 : index
    %c0_17 = arith.constant 0 : index
    %25 = vector.load %arg2[%c0_16, %24, %c2, %c0_17] : memref<1x18x18x128xf32, #tpu.memory_space<vmem>>, vector<1x8x16x128xf32>
    %26 = vector.shape_cast %25 : vector<1x8x16x128xf32> to vector<8x16x128xf32>
    %27 = vector.shape_cast %26 : vector<8x16x128xf32> to vector<128x128xf32>
    %c2_18 = arith.constant 2 : index
    %c0_19 = arith.constant 0 : index
    %c0_20 = arith.constant 0 : index
    %28 = vector.load %arg3[%c2_18, %c0_19, %c0_20] : memref<9x128x128xf32, #tpu.memory_space<vmem>>, vector<1x128x128xf32>
    %29 = vector.shape_cast %28 : vector<1x128x128xf32> to vector<128x128xf32>
    %cst_21 = arith.constant dense<0.000000e+00> : vector<128x128xf32>
    %30 = tpu.matmul %27, %29, %cst_21 {dimension_numbers = #tpu.dot_dimension_numbers<[1], [0], [0], [1], [0, 0, 1, 1], [], []>} : vector<128x128xf32>, vector<128x128xf32>, vector<128x128xf32> -> vector<128x128xf32>
    %31 = arith.addf %22, %30 : vector<128x128xf32>
    %c1_i32 = arith.constant 1 : i32
    %32 = arith.addi %3, %c1_i32 : i32
    %c0_22 = arith.constant 0 : index
    %33 = arith.index_cast %32 : i32 to index
    %c0_23 = arith.constant 0 : index
    %c0_24 = arith.constant 0 : index
    %34 = vector.load %arg2[%c0_22, %33, %c0_23, %c0_24] : memref<1x18x18x128xf32, #tpu.memory_space<vmem>>, vector<1x8x16x128xf32>
    %35 = vector.shape_cast %34 : vector<1x8x16x128xf32> to vector<8x16x128xf32>
    %36 = vector.shape_cast %35 : vector<8x16x128xf32> to vector<128x128xf32>
    %c3 = arith.constant 3 : index
    %c0_25 = arith.constant 0 : index
    %c0_26 = arith.constant 0 : index
    %37 = vector.load %arg3[%c3, %c0_25, %c0_26] : memref<9x128x128xf32, #tpu.memory_space<vmem>>, vector<1x128x128xf32>
    %38 = vector.shape_cast %37 : vector<1x128x128xf32> to vector<128x128xf32>
    %cst_27 = arith.constant dense<0.000000e+00> : vector<128x128xf32>
    %39 = tpu.matmul %36, %38, %cst_27 {dimension_numbers = #tpu.dot_dimension_numbers<[1], [0], [0], [1], [0, 0, 1, 1], [], []>} : vector<128x128xf32>, vector<128x128xf32>, vector<128x128xf32> -> vector<128x128xf32>
    %40 = arith.addf %31, %39 : vector<128x128xf32>
    %c1_i32_28 = arith.constant 1 : i32
    %41 = arith.addi %3, %c1_i32_28 : i32
    %c0_29 = arith.constant 0 : index
    %42 = arith.index_cast %41 : i32 to index
    %c1_30 = arith.constant 1 : index
    %c0_31 = arith.constant 0 : index
    %43 = vector.load %arg2[%c0_29, %42, %c1_30, %c0_31] : memref<1x18x18x128xf32, #tpu.memory_space<vmem>>, vector<1x8x16x128xf32>
    %44 = vector.shape_cast %43 : vector<1x8x16x128xf32> to vector<8x16x128xf32>
    %45 = vector.shape_cast %44 : vector<8x16x128xf32> to vector<128x128xf32>
    %c4 = arith.constant 4 : index
    %c0_32 = arith.constant 0 : index
    %c0_33 = arith.constant 0 : index
    %46 = vector.load %arg3[%c4, %c0_32, %c0_33] : memref<9x128x128xf32, #tpu.memory_space<vmem>>, vector<1x128x128xf32>
    %47 = vector.shape_cast %46 : vector<1x128x128xf32> to vector<128x128xf32>
    %cst_34 = arith.constant dense<0.000000e+00> : vector<128x128xf32>
    %48 = tpu.matmul %45, %47, %cst_34 {dimension_numbers = #tpu.dot_dimension_numbers<[1], [0], [0], [1], [0, 0, 1, 1], [], []>} : vector<128x128xf32>, vector<128x128xf32>, vector<128x128xf32> -> vector<128x128xf32>
    %49 = arith.addf %40, %48 : vector<128x128xf32>
    %c1_i32_35 = arith.constant 1 : i32
    %50 = arith.addi %3, %c1_i32_35 : i32
    %c0_36 = arith.constant 0 : index
    %51 = arith.index_cast %50 : i32 to index
    %c2_37 = arith.constant 2 : index
    %c0_38 = arith.constant 0 : index
    %52 = vector.load %arg2[%c0_36, %51, %c2_37, %c0_38] : memref<1x18x18x128xf32, #tpu.memory_space<vmem>>, vector<1x8x16x128xf32>
    %53 = vector.shape_cast %52 : vector<1x8x16x128xf32> to vector<8x16x128xf32>
    %54 = vector.shape_cast %53 : vector<8x16x128xf32> to vector<128x128xf32>
    %c5 = arith.constant 5 : index
    %c0_39 = arith.constant 0 : index
    %c0_40 = arith.constant 0 : index
    %55 = vector.load %arg3[%c5, %c0_39, %c0_40] : memref<9x128x128xf32, #tpu.memory_space<vmem>>, vector<1x128x128xf32>
    %56 = vector.shape_cast %55 : vector<1x128x128xf32> to vector<128x128xf32>
    %cst_41 = arith.constant dense<0.000000e+00> : vector<128x128xf32>
    %57 = tpu.matmul %54, %56, %cst_41 {dimension_numbers = #tpu.dot_dimension_numbers<[1], [0], [0], [1], [0, 0, 1, 1], [], []>} : vector<128x128xf32>, vector<128x128xf32>, vector<128x128xf32> -> vector<128x128xf32>
    %58 = arith.addf %49, %57 : vector<128x128xf32>
    %c2_i32 = arith.constant 2 : i32
    %59 = arith.addi %3, %c2_i32 : i32
    %c0_42 = arith.constant 0 : index
    %60 = arith.index_cast %59 : i32 to index
    %c0_43 = arith.constant 0 : index
    %c0_44 = arith.constant 0 : index
    %61 = vector.load %arg2[%c0_42, %60, %c0_43, %c0_44] : memref<1x18x18x128xf32, #tpu.memory_space<vmem>>, vector<1x8x16x128xf32>
    %62 = vector.shape_cast %61 : vector<1x8x16x128xf32> to vector<8x16x128xf32>
    %63 = vector.shape_cast %62 : vector<8x16x128xf32> to vector<128x128xf32>
    %c6 = arith.constant 6 : index
    %c0_45 = arith.constant 0 : index
    %c0_46 = arith.constant 0 : index
    %64 = vector.load %arg3[%c6, %c0_45, %c0_46] : memref<9x128x128xf32, #tpu.memory_space<vmem>>, vector<1x128x128xf32>
    %65 = vector.shape_cast %64 : vector<1x128x128xf32> to vector<128x128xf32>
    %cst_47 = arith.constant dense<0.000000e+00> : vector<128x128xf32>
    %66 = tpu.matmul %63, %65, %cst_47 {dimension_numbers = #tpu.dot_dimension_numbers<[1], [0], [0], [1], [0, 0, 1, 1], [], []>} : vector<128x128xf32>, vector<128x128xf32>, vector<128x128xf32> -> vector<128x128xf32>
    %67 = arith.addf %58, %66 : vector<128x128xf32>
    %c2_i32_48 = arith.constant 2 : i32
    %68 = arith.addi %3, %c2_i32_48 : i32
    %c0_49 = arith.constant 0 : index
    %69 = arith.index_cast %68 : i32 to index
    %c1_50 = arith.constant 1 : index
    %c0_51 = arith.constant 0 : index
    %70 = vector.load %arg2[%c0_49, %69, %c1_50, %c0_51] : memref<1x18x18x128xf32, #tpu.memory_space<vmem>>, vector<1x8x16x128xf32>
    %71 = vector.shape_cast %70 : vector<1x8x16x128xf32> to vector<8x16x128xf32>
    %72 = vector.shape_cast %71 : vector<8x16x128xf32> to vector<128x128xf32>
    %c7 = arith.constant 7 : index
    %c0_52 = arith.constant 0 : index
    %c0_53 = arith.constant 0 : index
    %73 = vector.load %arg3[%c7, %c0_52, %c0_53] : memref<9x128x128xf32, #tpu.memory_space<vmem>>, vector<1x128x128xf32>
    %74 = vector.shape_cast %73 : vector<1x128x128xf32> to vector<128x128xf32>
    %cst_54 = arith.constant dense<0.000000e+00> : vector<128x128xf32>
    %75 = tpu.matmul %72, %74, %cst_54 {dimension_numbers = #tpu.dot_dimension_numbers<[1], [0], [0], [1], [0, 0, 1, 1], [], []>} : vector<128x128xf32>, vector<128x128xf32>, vector<128x128xf32> -> vector<128x128xf32>
    %76 = arith.addf %67, %75 : vector<128x128xf32>
    %c2_i32_55 = arith.constant 2 : i32
    %77 = arith.addi %3, %c2_i32_55 : i32
    %c0_56 = arith.constant 0 : index
    %78 = arith.index_cast %77 : i32 to index
    %c2_57 = arith.constant 2 : index
    %c0_58 = arith.constant 0 : index
    %79 = vector.load %arg2[%c0_56, %78, %c2_57, %c0_58] : memref<1x18x18x128xf32, #tpu.memory_space<vmem>>, vector<1x8x16x128xf32>
    %80 = vector.shape_cast %79 : vector<1x8x16x128xf32> to vector<8x16x128xf32>
    %81 = vector.shape_cast %80 : vector<8x16x128xf32> to vector<128x128xf32>
    %c8 = arith.constant 8 : index
    %c0_59 = arith.constant 0 : index
    %c0_60 = arith.constant 0 : index
    %82 = vector.load %arg3[%c8, %c0_59, %c0_60] : memref<9x128x128xf32, #tpu.memory_space<vmem>>, vector<1x128x128xf32>
    %83 = vector.shape_cast %82 : vector<1x128x128xf32> to vector<128x128xf32>
    %cst_61 = arith.constant dense<0.000000e+00> : vector<128x128xf32>
    %84 = tpu.matmul %81, %83, %cst_61 {dimension_numbers = #tpu.dot_dimension_numbers<[1], [0], [0], [1], [0, 0, 1, 1], [], []>} : vector<128x128xf32>, vector<128x128xf32>, vector<128x128xf32> -> vector<128x128xf32>
    %85 = arith.addf %76, %84 : vector<128x128xf32>
    %86 = vector.shape_cast %85 : vector<128x128xf32> to vector<8x16x128xf32>
    %c0_62 = arith.constant 0 : index
    %c0_63 = arith.constant 0 : index
    %c0_64 = arith.constant 0 : index
    %c0_65 = arith.constant 0 : index
    %87 = vector.load %arg4[%c0_62, %c0_63, %c0_64, %c0_65] : memref<1x8x16x128xf32, #tpu.memory_space<vmem>>, vector<1x8x16x128xf32>
    %88 = vector.shape_cast %87 : vector<1x8x16x128xf32> to vector<8x16x128xf32>
    %89 = vector.shape_cast %86 : vector<8x16x128xf32> to vector<1x8x16x128xf32>
    tpu.vector_store %arg4[%c0_62, %c0_63, %c0_64, %c0_65], %89 {strides = array<i32>} : memref<1x8x16x128xf32, #tpu.memory_space<vmem>>, vector<1x8x16x128xf32>,
    %c0_66 = arith.constant 0 : index
    %c0_67 = arith.constant 0 : index
    %c0_68 = arith.constant 0 : index
    %90 = vector.load %arg5[%c0_66, %c0_67, %c0_68] : memref<1x2x128xf32, #tpu.memory_space<vmem>>, vector<1x1x128xf32>
    %91 = vector.shape_cast %90 : vector<1x1x128xf32> to vector<1x128xf32>
    %cst_69 = arith.constant dense<0.000000e+00> : vector<128xf32>
    %92 = vector.multi_reduction <add>, %85, %cst_69 [0] : vector<128x128xf32> to vector<128xf32>
    %93 = vector.shape_cast %92 : vector<128xf32> to vector<1x128xf32>
    %94 = arith.addf %91, %93 : vector<1x128xf32>
    %c0_70 = arith.constant 0 : index
    %c0_71 = arith.constant 0 : index
    %c0_72 = arith.constant 0 : index
    %95 = vector.load %arg5[%c0_70, %c0_71, %c0_72] : memref<1x2x128xf32, #tpu.memory_space<vmem>>, vector<1x1x128xf32>
    %96 = vector.shape_cast %95 : vector<1x1x128xf32> to vector<1x128xf32>
    %97 = vector.shape_cast %94 : vector<1x128xf32> to vector<1x1x128xf32>
    tpu.vector_store %arg5[%c0_70, %c0_71, %c0_72], %97 {strides = array<i32>} : memref<1x2x128xf32, #tpu.memory_space<vmem>>, vector<1x1x128xf32>,
    %c0_73 = arith.constant 0 : index
    %c1_74 = arith.constant 1 : index
    %c0_75 = arith.constant 0 : index
    %98 = vector.load %arg5[%c0_73, %c1_74, %c0_75] : memref<1x2x128xf32, #tpu.memory_space<vmem>>, vector<1x1x128xf32>
    %99 = vector.shape_cast %98 : vector<1x1x128xf32> to vector<1x128xf32>
    %100 = arith.mulf %85, %85 : vector<128x128xf32>
    %cst_76 = arith.constant dense<0.000000e+00> : vector<128xf32>
    %101 = vector.multi_reduction <add>, %100, %cst_76 [0] : vector<128x128xf32> to vector<128xf32>
    %102 = vector.shape_cast %101 : vector<128xf32> to vector<1x128xf32>
    %103 = arith.addf %99, %102 : vector<1x128xf32>
    %c0_77 = arith.constant 0 : index
    %c1_78 = arith.constant 1 : index
    %c0_79 = arith.constant 0 : index
    %104 = vector.load %arg5[%c0_77, %c1_78, %c0_79] : memref<1x2x128xf32, #tpu.memory_space<vmem>>, vector<1x1x128xf32>
    %105 = vector.shape_cast %104 : vector<1x1x128xf32> to vector<1x128xf32>
    %106 = vector.shape_cast %103 : vector<1x128xf32> to vector<1x1x128xf32>
    tpu.vector_store %arg5[%c0_77, %c1_78, %c0_79], %106 {strides = array<i32>} : memref<1x2x128xf32, #tpu.memory_space<vmem>>, vector<1x1x128xf32>,
    return
  }
  func.func @transform_0(%arg0: i32, %arg1: i32) -> (i32, i32, i32, i32) {
    %c0_i32 = arith.constant 0 : i32
    %c0_i32_0 = arith.constant 0 : i32
    %c0_i32_1 = arith.constant 0 : i32
    %c0_i32_2 = arith.constant 0 : i32
    return %arg0, %c0_i32, %c0_i32_0, %c0_i32_1 : i32, i32, i32, i32
  }
  func.func @transform_1(%arg0: i32, %arg1: i32) -> (i32, i32, i32) {
    %c0_i32 = arith.constant 0 : i32
    %c0_i32_0 = arith.constant 0 : i32
    %c0_i32_1 = arith.constant 0 : i32
    %c0_i32_2 = arith.constant 0 : i32
    return %c0_i32, %c0_i32_0, %c0_i32_1 : i32, i32, i32
  }
  func.func @transform_2(%arg0: i32, %arg1: i32) -> (i32, i32, i32, i32) {
    %c0_i32 = arith.constant 0 : i32
    %c0_i32_0 = arith.constant 0 : i32
    %c0_i32_1 = arith.constant 0 : i32
    return %arg0, %arg1, %c0_i32, %c0_i32_0 : i32, i32, i32, i32
  }
  func.func @transform_3(%arg0: i32, %arg1: i32) -> (i32, i32, i32) {
    %c0_i32 = arith.constant 0 : i32
    %c0_i32_0 = arith.constant 0 : i32
    %c0_i32_1 = arith.constant 0 : i32
    return %arg0, %c0_i32, %c0_i32_0 : i32, i32, i32
  }
}

module attributes {stable_mosaic.version = 11 : i64} {
  func.func @_bn_relu_pool_kernel(%arg0: i32, %arg1: memref<1x16x16x128xf32, #tpu.memory_space<vmem>>, %arg2: memref<1x128xf32, #tpu.memory_space<vmem>>, %arg3: memref<1x128xf32, #tpu.memory_space<vmem>>, %arg4: memref<1x8x8x128xf32, #tpu.memory_space<vmem>>, %arg5: memref<8x16x128xf32, #tpu.memory_space<vmem>>) attributes {dimension_semantics = [#tpu.dimension_semantics<parallel>], iteration_bounds = array<i64: 2>, scalar_prefetch = 0 : i64, scratch_operands = 1 : i64, tpu.core_type = #tpu.core_type<tc>, window_params = [{transform_indices = @transform_0, window_bounds = array<i64: 1, 16, 16, 128>}, {pipeline_mode = #tpu.pipeline_mode<synchronous>, transform_indices = @transform_1, window_bounds = array<i64: 1, 128>}, {pipeline_mode = #tpu.pipeline_mode<synchronous>, transform_indices = @transform_2, window_bounds = array<i64: 1, 128>}, {transform_indices = @transform_3, window_bounds = array<i64: 1, 8, 8, 128>}]} {
    %c0 = arith.constant 0 : index
    %c0_0 = arith.constant 0 : index
    %c0_1 = arith.constant 0 : index
    %c0_2 = arith.constant 0 : index
    %0 = vector.load %arg1[%c0, %c0_0, %c0_1, %c0_2] : memref<1x16x16x128xf32, #tpu.memory_space<vmem>>, vector<1x16x16x128xf32>
    %1 = vector.shape_cast %0 : vector<1x16x16x128xf32> to vector<16x16x128xf32>
    %c0_3 = arith.constant 0 : index
    %c0_4 = arith.constant 0 : index
    %2 = vector.load %arg2[%c0_3, %c0_4] : memref<1x128xf32, #tpu.memory_space<vmem>>, vector<1x128xf32>
    %3 = vector.shape_cast %2 : vector<1x128xf32> to vector<1x1x128xf32>
    %4 = vector.broadcast %3 : vector<1x1x128xf32> to vector<16x16x128xf32>
    %5 = arith.mulf %1, %4 : vector<16x16x128xf32>
    %c0_5 = arith.constant 0 : index
    %c0_6 = arith.constant 0 : index
    %6 = vector.load %arg3[%c0_5, %c0_6] : memref<1x128xf32, #tpu.memory_space<vmem>>, vector<1x128xf32>
    %7 = vector.shape_cast %6 : vector<1x128xf32> to vector<1x1x128xf32>
    %8 = vector.broadcast %7 : vector<1x1x128xf32> to vector<16x16x128xf32>
    %9 = arith.addf %5, %8 : vector<16x16x128xf32>
    %cst = arith.constant 0.000000e+00 : f32
    %10 = vector.broadcast %cst : f32 to vector<16x16x128xf32>
    %11 = arith.maximumf %9, %10 : vector<16x16x128xf32>
    %12 = vector.shape_cast %11 : vector<16x16x128xf32> to vector<8x2x16x128xf32>
    %cst_7 = arith.constant dense<0xFF800000> : vector<8x16x128xf32>
    %13 = vector.multi_reduction <maximumf>, %12, %cst_7 [1] : vector<8x2x16x128xf32> to vector<8x16x128xf32>
    %c0_8 = arith.constant 0 : index
    %c0_9 = arith.constant 0 : index
    %c0_10 = arith.constant 0 : index
    %14 = vector.load %arg5[%c0_8, %c0_9, %c0_10] : memref<8x16x128xf32, #tpu.memory_space<vmem>>, vector<8x16x128xf32>
    tpu.vector_store %arg5[%c0_8, %c0_9, %c0_10], %13 {strides = array<i32>} : memref<8x16x128xf32, #tpu.memory_space<vmem>>, vector<8x16x128xf32>,
    %c0_11 = arith.constant 0 : index
    %c0_12 = arith.constant 0 : index
    %c0_13 = arith.constant 0 : index
    %15 = tpu.strided_load %arg5[%c0_11, %c0_12, %c0_13] {strides = array<i32: 1, 2, 1>} : memref<8x16x128xf32, #tpu.memory_space<vmem>>, vector<8x8x128xf32>
    %c0_14 = arith.constant 0 : index
    %c1 = arith.constant 1 : index
    %c0_15 = arith.constant 0 : index
    %16 = tpu.strided_load %arg5[%c0_14, %c1, %c0_15] {strides = array<i32: 1, 2, 1>} : memref<8x16x128xf32, #tpu.memory_space<vmem>>, vector<8x8x128xf32>
    %17 = arith.maximumf %15, %16 : vector<8x8x128xf32>
    %c0_16 = arith.constant 0 : index
    %c0_17 = arith.constant 0 : index
    %c0_18 = arith.constant 0 : index
    %c0_19 = arith.constant 0 : index
    %18 = vector.load %arg4[%c0_16, %c0_17, %c0_18, %c0_19] : memref<1x8x8x128xf32, #tpu.memory_space<vmem>>, vector<1x8x8x128xf32>
    %19 = vector.shape_cast %18 : vector<1x8x8x128xf32> to vector<8x8x128xf32>
    %20 = vector.shape_cast %17 : vector<8x8x128xf32> to vector<1x8x8x128xf32>
    tpu.vector_store %arg4[%c0_16, %c0_17, %c0_18, %c0_19], %20 {strides = array<i32>} : memref<1x8x8x128xf32, #tpu.memory_space<vmem>>, vector<1x8x8x128xf32>,
    return
  }
  func.func @transform_0(%arg0: i32) -> (i32, i32, i32, i32) {
    %c0_i32 = arith.constant 0 : i32
    %c0_i32_0 = arith.constant 0 : i32
    %c0_i32_1 = arith.constant 0 : i32
    %c0_i32_2 = arith.constant 0 : i32
    return %arg0, %c0_i32, %c0_i32_0, %c0_i32_1 : i32, i32, i32, i32
  }
  func.func @transform_1(%arg0: i32) -> (i32, i32) {
    %c0_i32 = arith.constant 0 : i32
    %c0_i32_0 = arith.constant 0 : i32
    %c0_i32_1 = arith.constant 0 : i32
    return %c0_i32, %c0_i32_0 : i32, i32
  }
  func.func @transform_2(%arg0: i32) -> (i32, i32) {
    %c0_i32 = arith.constant 0 : i32
    %c0_i32_0 = arith.constant 0 : i32
    %c0_i32_1 = arith.constant 0 : i32
    return %c0_i32, %c0_i32_0 : i32, i32
  }
  func.func @transform_3(%arg0: i32) -> (i32, i32, i32, i32) {
    %c0_i32 = arith.constant 0 : i32
    %c0_i32_0 = arith.constant 0 : i32
    %c0_i32_1 = arith.constant 0 : i32
    %c0_i32_2 = arith.constant 0 : i32
    return %arg0, %c0_i32, %c0_i32_0, %c0_i32_1 : i32, i32, i32, i32
  }
}

</mosaic_0001>

<bundles_post_ra>
// kernel: down_block.5
= control target key start
LH: loop header
LB: loop body
LE: loop exit
PB: predicated region body
PF: predicated region fallthrough
CT: control target
= control target key end

     0   :  { %s533_s12 = smov 0   ;;  %s804_s0 = inlined_call_operand.vmem [shape: f32[2,16,16,128], index: 0, kind: input, shape index: {}]   ;;  %s805_s1 = inlined_call_operand.vmem [shape: f32[1,128], index: 1, kind: input, shape index: {}]   ;;  %s806_s2 = inlined_call_operand.vmem [shape: f32[1,128], index: 2, kind: input, shape index: {}]   ;;  %s807_s3 = inlined_call_operand.vmem [shape: f32[2,18,18,128], index: 3, kind: output, shape index: {}]  }
   0x1 LB: > { %s449_s13 = sadd.s32 4294967295, %s510_s12   ;;  %p453_p0 = scmp.ge.s32.totalorder %s510_s12, 1  ;;  %s510_s12 = sphi %s533_s12, %s13_s12  }
   0x2   : > { %p137_p1 = scmp.lt.s32.totalorder %s510_s12, 3 }
   0x4   : > { %p138_p2 = pnand %p453_p0, %p137_p1 }
   0x5   : > { %p161_p3 = scmp.lt.s32.totalorder (!%p138_p2), %s449_s13, 1 }
   0x6   : > { %141 = sbr.rel (%p138_p2) target bundleno = 101 (0x65), region = 32 }
   0xb   : > { %s809_s13 = smov (!%p161_p3, %s449_s13), 1  ;;  %v512_v0 = vmov 0.0   ;;  %v636_v1 = vld [vmem:[%s805_s1] ss:$0 sm:$0xff] }
   0xc   : > { %s492_s14 = smul.u32 432, %s809_s13  ;;  %s491_s18 = sshll.u32 %s809_s13, 8  ;;  %v653_v6 = vld [vmem:[%s806_s2] ss:$0 sm:$0xff] }
   0xd   : > { %s627_s21 = scalar_lea.vmem %s804_s0, %s491_s18 }
   0xe   : > { %s547_s17 = scalar_lea.vmem %s807_s3, %s492_s14  ;;  %v225_v2 = vld [vmem:[%s627_s21] sm:$0xff]  ;;  %v226_v3 = vld [vmem:[%s627_s21 + $0x8] sm:$0xff]  ;;  %v227_v4 = vld [vmem:[%s627_s21 + $0x10] sm:$0xff] }
   0xf   : > { %174 = vst [vmem:[%s547_s17 + $0x18] sm:$0xff] %v512_v0  ;;  %v261_v5 = vmul.f32 %v636_v1, %v225_v2  ;;  %v228_v7 = vld [vmem:[%s627_s21 + $0x18] sm:$0xff]  ;;  %v262_v8 = vmul.f32 %v636_v1, %v226_v3  ;;  %v229_v9 = vld [vmem:[%s627_s21 + $0x20] sm:$0xff]  ;;  %v263_v10 = vmul.f32 %v636_v1, %v227_v4  ;;  %v230_v11 = vld [vmem:[%s627_s21 + $0x28] sm:$0xff] }
  0x10   : > { %171 = vst [vmem:[%s547_s17] sm:$0xff] %v512_v0  ;;  %v264_v12 = vmul.f32 %v636_v1, %v228_v7  ;;  %v231_v13 = vld [vmem:[%s627_s21 + $0x30] sm:$0xff]  ;;  %v265_v15 = vmul.f32 %v636_v1, %v229_v9  ;;  %v232_v16 = vld [vmem:[%s627_s21 + $0x38] sm:$0xff]  ;;  %v266_v18 = vmul.f32 %v636_v1, %v230_v11  ;;  %v233_v19 = vld [vmem:[%s627_s21 + $0x40] sm:$0xff] }
  0x11   : > { %172 = vst [vmem:[%s547_s17 + $0x8] sm:$0xff] %v512_v0  ;;  %v297_v14 = vadd.f32 %v653_v6, %v261_v5  ;;  %v298_v17 = vadd.f32 %v653_v6, %v262_v8  ;;  %v299_v20 = vadd.f32 %v653_v6, %v263_v10  ;;  %v267_v21 = vmul.f32 %v636_v1, %v231_v13  ;;  %v234_v22 = vld [vmem:[%s627_s21 + $0x48] sm:$0xff]  ;;  %v235_v25 = vld [vmem:[%s627_s21 + $0x50] sm:$0xff]  ;;  %v236_v29 = vld [vmem:[%s627_s21 + $0x58] sm:$0xff] }
  0x12   : > { %173 = vst [vmem:[%s547_s17 + $0x10] sm:$0x3] %v512_v0  ;;  %v300_v23 = vadd.f32 %v653_v6, %v264_v12  ;;  %v268_v24 = vmul.f32 %v636_v1, %v232_v16  ;;  %v301_v27 = vadd.f32 %v653_v6, %v265_v15  ;;  %v269_v28 = vmul.f32 %v636_v1, %v233_v19  ;;  %v237_v33 = vld [vmem:[%s627_s21 + $0x60] sm:$0xff]  ;;  %v238_v37 = vld [vmem:[%s627_s21 + $0x68] sm:$0xff]  ;;  %v239_v41 = vld [vmem:[%s627_s21 + $0x70] sm:$0xff] }
  0x13   : > { %175 = vst [vmem:[%s547_s17 + $0x20] sm:$0xff] %v512_v0  ;;  %v329_v26 = vmax.f32 %v297_v14, 0.0  ;;  %v330_v30 = vmax.f32 %v298_v17, 0.0  ;;  %v302_v31 = vadd.f32 %v653_v6, %v266_v18  ;;  %v270_v32 = vmul.f32 %v636_v1, %v234_v22  ;;  %v240_v45 = vld [vmem:[%s627_s21 + $0x78] sm:$0xff]  ;;  %v241_v49 = vld [vmem:[%s627_s21 + $0x80] sm:$0xff]  ;;  %v242_v53 = vld [vmem:[%s627_s21 + $0x88] sm:$0xff] }
  0x14   : > { %176 = vst [vmem:[%s547_s17 + $0x28] sm:$0x3] %v512_v0  ;;  %v331_v34 = vmax.f32 %v299_v20, 0.0  ;;  %v303_v35 = vadd.f32 %v653_v6, %v267_v21  ;;  %v271_v36 = vmul.f32 %v636_v1, %v235_v25  ;;  %v332_v38 = vmax.f32 %v300_v23, 0.0  ;;  %v243_v57 = vld [vmem:[%s627_s21 + $0x90] sm:$0xff]  ;;  %v244_v61 = vld [vmem:[%s627_s21 + $0x98] sm:$0xff] }
  0x15   : > { %177 = vst [vmem:[%s547_s17 + $0x30] sm:$0xff] %v512_v0  ;;  %v304_v39 = vadd.f32 %v653_v6, %v268_v24  ;;  %v272_v40 = vmul.f32 %v636_v1, %v236_v29  ;;  %v333_v42 = vmax.f32 %v301_v27, 0.0  ;;  %v305_v43 = vadd.f32 %v653_v6, %v269_v28  ;;  %v245_v2 = vld [vmem:[%s627_s21 + $0xa0] sm:$0xff]  ;;  %v246_v7 = vld [vmem:[%s627_s21 + $0xa8] sm:$0xff]  ;;  %v247_v11 = vld [vmem:[%s627_s21 + $0xb0] sm:$0xff] }
  0x16   : > { %178 = vst [vmem:[%s547_s17 + $0x38] sm:$0xff] %v512_v0  ;;  %v273_v44 = vmul.f32 %v636_v1, %v237_v33  ;;  %v334_v46 = vmax.f32 %v302_v31, 0.0  ;;  %v306_v47 = vadd.f32 %v653_v6, %v270_v32  ;;  %v274_v48 = vmul.f32 %v636_v1, %v238_v37  ;;  %v248_v15 = vld [vmem:[%s627_s21 + $0xb8] sm:$0xff]  ;;  %v249_v19 = vld [vmem:[%s627_s21 + $0xc0] sm:$0xff]  ;;  %v250_v23 = vld [vmem:[%s627_s21 + $0xc8] sm:$0xff] }
  0x17   : > { %179 = vst [vmem:[%s547_s17 + $0x40] sm:$0x3] %v512_v0  ;;  %v335_v50 = vmax.f32 %v303_v35, 0.0  ;;  %v307_v51 = vadd.f32 %v653_v6, %v271_v36  ;;  %v275_v52 = vmul.f32 %v636_v1, %v239_v41  ;;  %v336_v54 = vmax.f32 %v304_v39, 0.0  ;;  %v251_v27 = vld [vmem:[%s627_s21 + $0xd0] sm:$0xff]  ;;  %v252_v31 = vld [vmem:[%s627_s21 + $0xd8] sm:$0xff] }
  0x18   : > { %180 = vst [vmem:[%s547_s17 + $0x48] sm:$0xff] %v512_v0  ;;  %v308_v55 = vadd.f32 %v653_v6, %v272_v40  ;;  %v276_v56 = vmul.f32 %v636_v1, %v240_v45  ;;  %v337_v58 = vmax.f32 %v305_v43, 0.0  ;;  %v309_v59 = vadd.f32 %v653_v6, %v273_v44  ;;  %v253_v35 = vld [vmem:[%s627_s21 + $0xe0] sm:$0xff]  ;;  %v254_v39 = vld [vmem:[%s627_s21 + $0xe8] sm:$0xff]  ;;  %v255_v43 = vld [vmem:[%s627_s21 + $0xf0] sm:$0xff] }
  0x19   : > { %181 = vst [vmem:[%s547_s17 + $0x50] sm:$0xff] %v512_v0  ;;  %v277_v60 = vmul.f32 %v636_v1, %v241_v49  ;;  %v338_v62 = vmax.f32 %v306_v47, 0.0  ;;  %v310_v63 = vadd.f32 %v653_v6, %v274_v48  ;;  %v339_v3 = vmax.f32 %v307_v51, 0.0  ;;  %v256_v47 = vld [vmem:[%s627_s21 + $0xf8] sm:$0xff] }
  0x1a   : > { %182 = vst [vmem:[%s547_s17 + $0x58] sm:$0x3] %v512_v0  ;;  %v311_v4 = vadd.f32 %v653_v6, %v275_v52  ;;  %v279_v5 = vmul.f32 %v636_v1, %v243_v57  ;;  %v340_v8 = vmax.f32 %v308_v55, 0.0  ;;  %v312_v9 = vadd.f32 %v653_v6, %v276_v56 }
  0x1b   : > { %183 = vst [vmem:[%s547_s17 + $0x60] sm:$0xff] %v512_v0  ;;  %v280_v10 = vmul.f32 %v636_v1, %v244_v61  ;;  %v341_v12 = vmax.f32 %v309_v59, 0.0  ;;  %v313_v13 = vadd.f32 %v653_v6, %v277_v60  ;;  %v281_v14 = vmul.f32 %v636_v1, %v245_v2 }
  0x1c   : > { %184 = vst [vmem:[%s547_s17 + $0x68] sm:$0xff] %v512_v0  ;;  %v342_v16 = vmax.f32 %v310_v63, 0.0  ;;  %v282_v18 = vmul.f32 %v636_v1, %v246_v7  ;;  %v343_v20 = vmax.f32 %v311_v4, 0.0  ;;  %v315_v21 = vadd.f32 %v653_v6, %v279_v5 }
  0x1d   : > { %185 = vst [vmem:[%s547_s17 + $0x70] sm:$0x3] %v512_v0  ;;  %v283_v22 = vmul.f32 %v636_v1, %v247_v11  ;;  %v344_v24 = vmax.f32 %v312_v9, 0.0  ;;  %v316_v25 = vadd.f32 %v653_v6, %v280_v10  ;;  %v345_v28 = vmax.f32 %v313_v13, 0.0 }
  0x1e   : > { %186 = vst [vmem:[%s547_s17 + $0x78] sm:$0xff] %v512_v0  ;;  %v317_v29 = vadd.f32 %v653_v6, %v281_v14  ;;  %v318_v33 = vadd.f32 %v653_v6, %v282_v18  ;;  %v347_v36 = vmax.f32 %v315_v21, 0.0  ;;  %v292_v56 = vmul.f32 %v636_v1, %v256_v47 }
  0x1f   : > { %187 = vst [vmem:[%s547_s17 + $0x80] sm:$0xff] %v512_v0  ;;  %v319_v37 = vadd.f32 %v653_v6, %v283_v22  ;;  %v348_v40 = vmax.f32 %v316_v25, 0.0 }
  0x20   : > { %188 = vst [vmem:[%s547_s17 + $0x88] sm:$0x3] %v512_v0  ;;  %v349_v44 = vmax.f32 %v317_v29, 0.0  ;;  %v350_v48 = vmax.f32 %v318_v33, 0.0  ;;  %v328_v63 = vadd.f32 %v653_v6, %v292_v56 }
  0x21   : > { %189 = vst [vmem:[%s547_s17 + $0x90] sm:$0xff] %v512_v0  ;;  %v351_v51 = vmax.f32 %v319_v37, 0.0 }
  0x22   : > { %190 = vst [vmem:[%s547_s17 + $0x98] sm:$0xff] %v512_v0  ;;  %v360_v4 = vmax.f32 %v328_v63, 0.0 }
  0x23   : > { %191 = vst [vmem:[%s547_s17 + $0xa0] sm:$0x3] %v512_v0 }
  0x24   : > { %192 = vst [vmem:[%s547_s17 + $0xa8] sm:$0xff] %v512_v0 }
  0x25   : > { %193 = vst [vmem:[%s547_s17 + $0xb0] sm:$0xff] %v512_v0 }
  0x26   : > { %194 = vst [vmem:[%s547_s17 + $0xb8] sm:$0x3] %v512_v0 }
  0x27   : > { %195 = vst [vmem:[%s547_s17 + $0xc0] sm:$0xff] %v512_v0 }
  0x28   : > { %196 = vst [vmem:[%s547_s17 + $0xc8] sm:$0xff] %v512_v0 }
  0x29   : > { %197 = vst [vmem:[%s547_s17 + $0xd0] sm:$0x3] %v512_v0 }
  0x2a   : > { %198 = vst [vmem:[%s547_s17 + $0xd8] sm:$0xff] %v512_v0 }
  0x2b   : > { %199 = vst [vmem:[%s547_s17 + $0xe0] sm:$0xff] %v512_v0 }
  0x2c   : > { %200 = vst [vmem:[%s547_s17 + $0xe8] sm:$0x3] %v512_v0 }
  0x2d   : > { %201 = vst [vmem:[%s547_s17 + $0xf0] sm:$0xff] %v512_v0 }
  0x2e   : > { %202 = vst [vmem:[%s547_s17 + $0xf8] sm:$0xff] %v512_v0 }
  0x2f   : > { %203 = vst [vmem:[%s547_s17 + $0x100] sm:$0x3] %v512_v0 }
  0x30   : > { %204 = vst [vmem:[%s547_s17 + $0x108] sm:$0xff] %v512_v0 }
  0x31   : > { %205 = vst [vmem:[%s547_s17 + $0x110] sm:$0xff] %v512_v0 }
  0x32   : > { %206 = vst [vmem:[%s547_s17 + $0x118] sm:$0x3] %v512_v0 }
  0x33   : > { %207 = vst [vmem:[%s547_s17 + $0x120] sm:$0xff] %v512_v0 }
  0x34   : > { %208 = vst [vmem:[%s547_s17 + $0x128] sm:$0xff] %v512_v0 }
  0x35   : > { %209 = vst [vmem:[%s547_s17 + $0x130] sm:$0x3] %v512_v0 }
  0x36   : > { %210 = vst [vmem:[%s547_s17 + $0x138] sm:$0xff] %v512_v0 }
  0x37   : > { %211 = vst [vmem:[%s547_s17 + $0x140] sm:$0xff] %v512_v0 }
  0x38   : > { %212 = vst [vmem:[%s547_s17 + $0x148] sm:$0x3] %v512_v0 }
  0x39   : > { %213 = vst [vmem:[%s547_s17 + $0x150] sm:$0xff] %v512_v0 }
  0x3a   : > { %214 = vst [vmem:[%s547_s17 + $0x158] sm:$0xff] %v512_v0 }
  0x3b   : > { %215 = vst [vmem:[%s547_s17 + $0x160] sm:$0x3] %v512_v0 }
  0x3c   : > { %216 = vst [vmem:[%s547_s17 + $0x168] sm:$0xff] %v512_v0 }
  0x3d   : > { %217 = vst [vmem:[%s547_s17 + $0x170] sm:$0xff] %v512_v0 }
  0x3e   : > { %218 = vst [vmem:[%s547_s17 + $0x178] sm:$0x3] %v512_v0 }
  0x3f   : > { %219 = vst [vmem:[%s547_s17 + $0x180] sm:$0xff] %v512_v0 }
  0x40   : > { %220 = vst [vmem:[%s547_s17 + $0x188] sm:$0xff] %v512_v0 }
  0x41   : > { %221 = vst [vmem:[%s547_s17 + $0x190] sm:$0x3] %v512_v0 }
  0x42   : > { %222 = vst [vmem:[%s547_s17 + $0x198] sm:$0xff] %v512_v0 }
  0x43   : > { %223 = vst [vmem:[%s547_s17 + $0x1a0] sm:$0xff] %v512_v0 }
  0x44   : > { %224 = vst [vmem:[%s547_s17 + $0x1a8] sm:$0x3] %v512_v0  ;;  %v278_v0 = vmul.f32 %v636_v1, %v242_v53  ;;  %v291_v53 = vmul.f32 %v636_v1, %v255_v43 }
  0x45   : > { %457 = vst [vmem:[%s547_s17 + $0x19] sm:$0xff] %v329_v26  ;;  %v284_v26 = vmul.f32 %v636_v1, %v248_v15 }
  0x46   : > { %458 = vst [vmem:[%s547_s17 + $0x21] sm:$0xff] %v330_v30  ;;  %v314_v17 = vadd.f32 %v653_v6, %v278_v0  ;;  %v285_v30 = vmul.f32 %v636_v1, %v249_v19 }
  0x47   : > { %459 = vst [vmem:[%s547_s17 + $0x31] sm:$0xff] %v331_v34  ;;  %v286_v34 = vmul.f32 %v636_v1, %v250_v23  ;;  %v320_v41 = vadd.f32 %v653_v6, %v284_v26 }
  0x48   : > { %460 = vst [vmem:[%s547_s17 + $0x39] sm:$0xff] %v332_v38  ;;  %v346_v32 = vmax.f32 %v314_v17, 0.0  ;;  %v287_v38 = vmul.f32 %v636_v1, %v251_v27  ;;  %v321_v45 = vadd.f32 %v653_v6, %v285_v30 }
  0x49   : > { %461 = vst [vmem:[%s547_s17 + $0x49] sm:$0xff] %v333_v42  ;;  %v288_v42 = vmul.f32 %v636_v1, %v252_v31  ;;  %v322_v49 = vadd.f32 %v653_v6, %v286_v34 }
  0x4a   : > { %462 = vst [vmem:[%s547_s17 + $0x51] sm:$0xff] %v334_v46  ;;  %v289_v46 = vmul.f32 %v636_v1, %v253_v35  ;;  %v323_v52 = vadd.f32 %v653_v6, %v287_v38  ;;  %v353_v57 = vmax.f32 %v321_v45, 0.0 }
  0x4b   : > { %463 = vst [vmem:[%s547_s17 + $0x61] sm:$0xff] %v335_v50  ;;  %v290_v50 = vmul.f32 %v636_v1, %v254_v39  ;;  %v324_v55 = vadd.f32 %v653_v6, %v288_v42  ;;  %v354_v59 = vmax.f32 %v322_v49, 0.0 }
  0x4c   : > { %464 = vst [vmem:[%s547_s17 + $0x69] sm:$0xff] %v336_v54  ;;  %v352_v54 = vmax.f32 %v320_v41, 0.0  ;;  %v355_v61 = vmax.f32 %v323_v52, 0.0 }
  0x4d   : > { %465 = vst [vmem:[%s547_s17 + $0x79] sm:$0xff] %v337_v58  ;;  %v325_v58 = vadd.f32 %v653_v6, %v289_v46  ;;  %v326_v60 = vadd.f32 %v653_v6, %v290_v50  ;;  %v356_v1 = vmax.f32 %v324_v55, 0.0 }
  0x4e   : > { %466 = vst [vmem:[%s547_s17 + $0x81] sm:$0xff] %v338_v62  ;;  %v327_v62 = vadd.f32 %v653_v6, %v291_v53 }
  0x4f   : > { %467 = vst [vmem:[%s547_s17 + $0x91] sm:$0xff] %v339_v3  ;;  %v357_v0 = vmax.f32 %v325_v58, 0.0  ;;  %v358_v2 = vmax.f32 %v326_v60, 0.0 }
  0x50   : > { %468 = vst [vmem:[%s547_s17 + $0x99] sm:$0xff] %v340_v8  ;;  %v359_v3 = vmax.f32 %v327_v62, 0.0 }
  0x51   : > { %469 = vst [vmem:[%s547_s17 + $0xa9] sm:$0xff] %v341_v12 }
  0x52   : > { %470 = vst [vmem:[%s547_s17 + $0xb1] sm:$0xff] %v342_v16 }
  0x53   : > { %471 = vst [vmem:[%s547_s17 + $0xc1] sm:$0xff] %v343_v20 }
  0x54   : > { %472 = vst [vmem:[%s547_s17 + $0xc9] sm:$0xff] %v344_v24 }
  0x55   : > { %473 = vst [vmem:[%s547_s17 + $0xd9] sm:$0xff] %v345_v28 }
  0x56   : > { %474 = vst [vmem:[%s547_s17 + $0xe1] sm:$0xff] %v346_v32 }
  0x57   : > { %475 = vst [vmem:[%s547_s17 + $0xf1] sm:$0xff] %v347_v36 }
  0x58   : > { %476 = vst [vmem:[%s547_s17 + $0xf9] sm:$0xff] %v348_v40 }
  0x59   : > { %477 = vst [vmem:[%s547_s17 + $0x109] sm:$0xff] %v349_v44 }
  0x5a   : > { %478 = vst [vmem:[%s547_s17 + $0x111] sm:$0xff] %v350_v48 }
  0x5b   : > { %479 = vst [vmem:[%s547_s17 + $0x121] sm:$0xff] %v351_v51 }
  0x5c   : > { %480 = vst [vmem:[%s547_s17 + $0x129] sm:$0xff] %v352_v54 }
  0x5d   : > { %481 = vst [vmem:[%s547_s17 + $0x139] sm:$0xff] %v353_v57 }
  0x5e   : > { %482 = vst [vmem:[%s547_s17 + $0x141] sm:$0xff] %v354_v59 }
  0x5f   : > { %483 = vst [vmem:[%s547_s17 + $0x151] sm:$0xff] %v355_v61 }
  0x60   : > { %484 = vst [vmem:[%s547_s17 + $0x159] sm:$0xff] %v356_v1 }
  0x61   : > { %485 = vst [vmem:[%s547_s17 + $0x169] sm:$0xff] %v357_v0 }
  0x62   : > { %486 = vst [vmem:[%s547_s17 + $0x171] sm:$0xff] %v358_v2 }
  0x63   : > { %487 = vst [vmem:[%s547_s17 + $0x181] sm:$0xff] %v359_v3 }
  0x64   : > { %488 = vst [vmem:[%s547_s17 + $0x189] sm:$0xff] %v360_v4 }
  0x65 PF: > { %s13_s12 = sadd.s32 1, %s510_s12  }
  0x66   : > { %p10_p4 = scmp.ge.s32.totalorder %s13_s12, 4  }
  0x68   :  { %12 = sbr.rel (!%p10_p4) target bundleno = 1 (0x1), region = 63 }

// kernel: down_block.7
= control target key start
LH: loop header
LB: loop body
LE: loop exit
PB: predicated region body
PF: predicated region fallthrough
CT: control target
= control target key end

     0   :  { %s492_s12 = smov 0   ;;  %s631_s0 = inlined_call_operand.vmem [shape: f32[2,16,16,128], index: 0, kind: input, shape index: {}]   ;;  %s632_s1 = inlined_call_operand.vmem [shape: f32[1,128], index: 1, kind: input, shape index: {}]   ;;  %s633_s2 = inlined_call_operand.vmem [shape: f32[1,128], index: 2, kind: input, shape index: {}]   ;;  %s634_s3 = inlined_call_operand.vmem [shape: f32[2,8,8,128], index: 3, kind: output, shape index: {}]  }
   0x1 LB: > { %s441_s13 = sadd.s32 4294967295, %s470_s12   ;;  %p445_p0 = scmp.ge.s32.totalorder %s470_s12, 1  ;;  %s470_s12 = sphi %s492_s12, %s13_s12  }
   0x2   : > { %p137_p1 = scmp.lt.s32.totalorder %s470_s12, 3 }
   0x4   : > { %p138_p2 = pnand %p445_p0, %p137_p1 }
   0x5   : > { %p161_p3 = scmp.lt.s32.totalorder (!%p138_p2), %s441_s13, 1 }
   0x6   : > { %141 = sbr.rel (%p138_p2) target bundleno = 59 (0x3b), region = 32 }
   0xb   : > { %s636_s13 = smov (!%p161_p3, %s441_s13), 1  ;;  %v505_v0 = vld [vmem:[%s632_s1] ss:$0 sm:$0xff] }
   0xc   : > { %s452_s16 = sshll.u32 %s636_s13, 8  ;;  %v516_v1 = vld [vmem:[%s633_s2] ss:$0 sm:$0xff]  ;;  %s453_s22 = sshll.u32 %s636_s13, 6 }
   0xd   : > { %s511_s19 = scalar_lea.vmem %s631_s0, %s452_s16  ;;  %s618_s25 = scalar_lea.vmem %s634_s3, %s453_s22 }
   0xe   : > { %v171_v2 = vld [vmem:[%s511_s19] sm:$0xff]  ;;  %v173_v3 = vld [vmem:[%s511_s19 + $0x10] sm:$0xff]  ;;  %v172_v4 = vld [vmem:[%s511_s19 + $0x8] sm:$0xff] }
   0xf   : > { %v207_v5 = vmul.f32 %v505_v0, %v171_v2  ;;  %v209_v6 = vmul.f32 %v505_v0, %v173_v3  ;;  %v174_v7 = vld [vmem:[%s511_s19 + $0x18] sm:$0xff]  ;;  %v208_v8 = vmul.f32 %v505_v0, %v172_v4  ;;  %v175_v9 = vld [vmem:[%s511_s19 + $0x20] sm:$0xff]  ;;  %v177_v10 = vld [vmem:[%s511_s19 + $0x30] sm:$0xff] }
  0x10   : > { %v210_v11 = vmul.f32 %v505_v0, %v174_v7  ;;  %v211_v12 = vmul.f32 %v505_v0, %v175_v9  ;;  %v213_v13 = vmul.f32 %v505_v0, %v177_v10  ;;  %v176_v14 = vld [vmem:[%s511_s19 + $0x28] sm:$0xff]  ;;  %v178_v15 = vld [vmem:[%s511_s19 + $0x38] sm:$0xff]  ;;  %v179_v24 = vld [vmem:[%s511_s19 + $0x40] sm:$0xff] }
  0x11   : > { %v243_v16 = vadd.f32 %v516_v1, %v207_v5  ;;  %v245_v17 = vadd.f32 %v516_v1, %v209_v6  ;;  %v244_v18 = vadd.f32 %v516_v1, %v208_v8  ;;  %v212_v19 = vmul.f32 %v505_v0, %v176_v14  ;;  %v181_v25 = vld [vmem:[%s511_s19 + $0x50] sm:$0xff]  ;;  %v180_v30 = vld [vmem:[%s511_s19 + $0x48] sm:$0xff]  ;;  %v182_v35 = vld [vmem:[%s511_s19 + $0x58] sm:$0xff] }
  0x12   : > { %v246_v20 = vadd.f32 %v516_v1, %v210_v11  ;;  %v247_v21 = vadd.f32 %v516_v1, %v211_v12  ;;  %v249_v22 = vadd.f32 %v516_v1, %v213_v13  ;;  %v214_v23 = vmul.f32 %v505_v0, %v178_v15  ;;  %v183_v36 = vld [vmem:[%s511_s19 + $0x60] sm:$0xff]  ;;  %v185_v41 = vld [vmem:[%s511_s19 + $0x70] sm:$0xff]  ;;  %v184_v42 = vld [vmem:[%s511_s19 + $0x68] sm:$0xff] }
  0x13   : > { %v275_v26 = vmax.f32 %v243_v16, 0.0  ;;  %v277_v27 = vmax.f32 %v245_v17, 0.0  ;;  %v276_v28 = vmax.f32 %v244_v18, 0.0  ;;  %v248_v29 = vadd.f32 %v516_v1, %v212_v19  ;;  %v186_v51 = vld [vmem:[%s511_s19 + $0x78] sm:$0xff]  ;;  %v187_v56 = vld [vmem:[%s511_s19 + $0x80] sm:$0xff]  ;;  %v189_v61 = vld [vmem:[%s511_s19 + $0x90] sm:$0xff] }
  0x14   : > { %v278_v31 = vmax.f32 %v246_v20, 0.0  ;;  %v279_v32 = vmax.f32 %v247_v21, 0.0  ;;  %v281_v33 = vmax.f32 %v249_v22, 0.0  ;;  %v250_v34 = vadd.f32 %v516_v1, %v214_v23  ;;  %v188_v4 = vld [vmem:[%s511_s19 + $0x88] sm:$0xff]  ;;  %v190_v5 = vld [vmem:[%s511_s19 + $0x98] sm:$0xff]  ;;  %v191_v10 = vld [vmem:[%s511_s19 + $0xa0] sm:$0xff] }
  0x15   : > { %v307_v37 = vmax.f32 %v275_v26, %v277_v27  ;;  %v280_v38 = vmax.f32 %v248_v29, 0.0  ;;  %v215_v39 = vmul.f32 %v505_v0, %v179_v24  ;;  %v217_v40 = vmul.f32 %v505_v0, %v181_v25  ;;  %v193_v15 = vld [vmem:[%s511_s19 + $0xb0] sm:$0xff]  ;;  %v192_v20 = vld [vmem:[%s511_s19 + $0xa8] sm:$0xff]  ;;  %v194_v25 = vld [vmem:[%s511_s19 + $0xb8] sm:$0xff] }
  0x16   : > { %v308_v43 = vmax.f32 %v276_v28, %v278_v31  ;;  %v309_v44 = vmax.f32 %v279_v32, %v281_v33  ;;  %v282_v45 = vmax.f32 %v250_v34, 0.0  ;;  %v216_v46 = vmul.f32 %v505_v0, %v180_v30  ;;  %v195_v30 = vld [vmem:[%s511_s19 + $0xc0] sm:$0xff] }
  0x17   : > { %323 = vst [vmem:[#allocation2] sm:$0xff] %v307_v37  ;;  %v251_v47 = vadd.f32 %v516_v1, %v215_v39  ;;  %v253_v48 = vadd.f32 %v516_v1, %v217_v40  ;;  %v218_v49 = vmul.f32 %v505_v0, %v182_v35  ;;  %v219_v50 = vmul.f32 %v505_v0, %v183_v36  ;;  %v197_v35 = vld [vmem:[%s511_s19 + $0xd0] sm:$0xff]  ;;  %v196_v40 = vld [vmem:[%s511_s19 + $0xc8] sm:$0xff] }
  0x18   : > { %324 = vst [vmem:[#allocation2 + $0x8] sm:$0xff] %v308_v43  ;;  %v310_v52 = vmax.f32 %v280_v38, %v282_v45  ;;  %v252_v53 = vadd.f32 %v516_v1, %v216_v46  ;;  %v221_v54 = vmul.f32 %v505_v0, %v185_v41  ;;  %v220_v55 = vmul.f32 %v505_v0, %v184_v42  ;;  %v198_v41 = vld [vmem:[%s511_s19 + $0xd8] sm:$0xff]  ;;  %v199_v46 = vld [vmem:[%s511_s19 + $0xe0] sm:$0xff] }
  0x19   : > { %325 = vst [vmem:[#allocation2 + $0x10] sm:$0xff] %v309_v44  ;;  %v283_v57 = vmax.f32 %v251_v47, 0.0  ;;  %v285_v58 = vmax.f32 %v253_v48, 0.0  ;;  %v254_v59 = vadd.f32 %v516_v1, %v218_v49  ;;  %v255_v60 = vadd.f32 %v516_v1, %v219_v50 }
  0x1a   : > { %326 = vst [vmem:[#allocation2 + $0x18] sm:$0xff] %v310_v52  ;;  %v284_v62 = vmax.f32 %v252_v53, 0.0  ;;  %v257_v63 = vadd.f32 %v516_v1, %v221_v54  ;;  %v222_v2 = vmul.f32 %v505_v0, %v186_v51  ;;  %v256_v3 = vadd.f32 %v516_v1, %v220_v55  ;;  %v201_v51 = vld [vmem:[%s511_s19 + $0xf0] sm:$0xff] }
  0x1b   : > { %v311_v6 = vmax.f32 %v283_v57, %v285_v58  ;;  %v286_v7 = vmax.f32 %v254_v59, 0.0  ;;  %v287_v8 = vmax.f32 %v255_v60, 0.0  ;;  %v223_v9 = vmul.f32 %v505_v0, %v187_v56  ;;  %v200_v56 = vld [vmem:[%s511_s19 + $0xe8] sm:$0xff] }
  0x1c   : > { %v289_v11 = vmax.f32 %v257_v63, 0.0  ;;  %v258_v12 = vadd.f32 %v516_v1, %v222_v2  ;;  %v288_v13 = vmax.f32 %v256_v3, 0.0  ;;  %v225_v14 = vmul.f32 %v505_v0, %v189_v61  ;;  %v202_v61 = vld [vmem:[%s511_s19 + $0xf8] sm:$0xff] }
  0x1d   : > { %327 = vst [vmem:[#allocation2 + $0x20] sm:$0xff] %v311_v6  ;;  %v312_v16 = vmax.f32 %v284_v62, %v286_v7  ;;  %v259_v17 = vadd.f32 %v516_v1, %v223_v9  ;;  %v224_v18 = vmul.f32 %v505_v0, %v188_v4  ;;  %v226_v19 = vmul.f32 %v505_v0, %v190_v5 }
  0x1e   : > { %v313_v21 = vmax.f32 %v287_v8, %v289_v11  ;;  %v290_v22 = vmax.f32 %v258_v12, 0.0  ;;  %v261_v23 = vadd.f32 %v516_v1, %v225_v14  ;;  %v227_v24 = vmul.f32 %v505_v0, %v191_v10 }
  0x1f   : > { %328 = vst [vmem:[#allocation2 + $0x28] sm:$0xff] %v312_v16  ;;  %v291_v26 = vmax.f32 %v259_v17, 0.0  ;;  %v260_v27 = vadd.f32 %v516_v1, %v224_v18  ;;  %v262_v28 = vadd.f32 %v516_v1, %v226_v19  ;;  %v229_v29 = vmul.f32 %v505_v0, %v193_v15  ;;  %v339_v4 = vld [vmem:[#allocation2] ss:$2 sm:$0xff]  ;;  %v355_v5 = vld [vmem:[#allocation2 + $0x1] ss:$2 sm:$0xff] }
  0x20   : > { %329 = vst [vmem:[#allocation2 + $0x30] sm:$0xff] %v313_v21  ;;  %v314_v31 = vmax.f32 %v288_v13, %v290_v22  ;;  %v293_v32 = vmax.f32 %v261_v23, 0.0  ;;  %v263_v33 = vadd.f32 %v516_v1, %v227_v24  ;;  %v228_v34 = vmul.f32 %v505_v0, %v192_v20 }
  0x21   : > { %v292_v36 = vmax.f32 %v260_v27, 0.0  ;;  %v294_v37 = vmax.f32 %v262_v28, 0.0  ;;  %v265_v38 = vadd.f32 %v516_v1, %v229_v29  ;;  %v230_v39 = vmul.f32 %v505_v0, %v194_v25  ;;  %v341_v14 = vld [vmem:[#allocation2 + $0x10] ss:$2 sm:$0xff]  ;;  %v357_v15 = vld [vmem:[#allocation2 + $0x11] ss:$2 sm:$0xff] }
  0x22   : > { %330 = vst [vmem:[#allocation2 + $0x38] sm:$0xff] %v314_v31  ;;  %v315_v42 = vmax.f32 %v291_v26, %v293_v32  ;;  %v295_v43 = vmax.f32 %v263_v33, 0.0  ;;  %v264_v44 = vadd.f32 %v516_v1, %v228_v34  ;;  %v231_v45 = vmul.f32 %v505_v0, %v195_v30 }
  0x23   : > { %v316_v47 = vmax.f32 %v292_v36, %v294_v37  ;;  %v297_v48 = vmax.f32 %v265_v38, 0.0  ;;  %v266_v49 = vadd.f32 %v516_v1, %v230_v39  ;;  %v233_v50 = vmul.f32 %v505_v0, %v197_v35 }
  0x24   : > { %331 = vst [vmem:[#allocation2 + $0x40] sm:$0xff] %v315_v42  ;;  %v296_v52 = vmax.f32 %v264_v44, 0.0  ;;  %v267_v53 = vadd.f32 %v516_v1, %v231_v45  ;;  %v232_v54 = vmul.f32 %v505_v0, %v196_v40  ;;  %v234_v55 = vmul.f32 %v505_v0, %v198_v41 }
  0x25   : > { %332 = vst [vmem:[#allocation2 + $0x48] sm:$0xff] %v316_v47  ;;  %v317_v57 = vmax.f32 %v295_v43, %v297_v48  ;;  %v298_v58 = vmax.f32 %v266_v49, 0.0  ;;  %v269_v59 = vadd.f32 %v516_v1, %v233_v50  ;;  %v235_v60 = vmul.f32 %v505_v0, %v199_v46 }
  0x26   : > { %v299_v62 = vmax.f32 %v267_v53, 0.0  ;;  %v268_v63 = vadd.f32 %v516_v1, %v232_v54  ;;  %v270_v2 = vadd.f32 %v516_v1, %v234_v55  ;;  %v237_v3 = vmul.f32 %v505_v0, %v201_v51  ;;  %v343_v23 = vld [vmem:[#allocation2 + $0x20] ss:$2 sm:$0xff] }
  0x27   : > { %333 = vst [vmem:[#allocation2 + $0x50] sm:$0xff] %v317_v57  ;;  %v318_v6 = vmax.f32 %v296_v52, %v298_v58  ;;  %v301_v7 = vmax.f32 %v269_v59, 0.0  ;;  %v271_v8 = vadd.f32 %v516_v1, %v235_v60  ;;  %v236_v9 = vmul.f32 %v505_v0, %v200_v56 }
  0x28   : > { %v300_v10 = vmax.f32 %v268_v63, 0.0  ;;  %v302_v11 = vmax.f32 %v270_v2, 0.0  ;;  %v273_v12 = vadd.f32 %v516_v1, %v237_v3  ;;  %v238_v13 = vmul.f32 %v505_v0, %v202_v61  ;;  %v359_v0 = vld [vmem:[#allocation2 + $0x21] ss:$2 sm:$0xff] }
  0x29   : > { %334 = vst [vmem:[#allocation2 + $0x58] sm:$0xff] %v318_v6  ;;  %v319_v16 = vmax.f32 %v299_v62, %v301_v7  ;;  %v303_v17 = vmax.f32 %v271_v8, 0.0  ;;  %v272_v18 = vadd.f32 %v516_v1, %v236_v9  ;;  %v370_v19 = vmax.f32 %v339_v4, %v355_v5  ;;  %v345_v26 = vld [vmem:[#allocation2 + $0x30] ss:$2 sm:$0xff]  ;;  %v361_v27 = vld [vmem:[#allocation2 + $0x31] ss:$2 sm:$0xff] }
  0x2a   : > { %v320_v20 = vmax.f32 %v300_v10, %v302_v11  ;;  %v305_v21 = vmax.f32 %v273_v12, 0.0  ;;  %v274_v22 = vadd.f32 %v516_v1, %v238_v13  ;;  %v371_v25 = vmax.f32 %v341_v14, %v357_v15 }
  0x2b   : > { %335 = vst [vmem:[#allocation2 + $0x60] sm:$0xff] %v319_v16  ;;  %v304_v24 = vmax.f32 %v272_v18, 0.0  ;;  %v372_v31 = vmax.f32 %v343_v23, %v359_v0  ;;  %v373_v33 = vmax.f32 %v345_v26, %v361_v27 }
  0x2c   : > { %336 = vst [vmem:[#allocation2 + $0x68] sm:$0xff] %v320_v20  ;;  %v321_v28 = vmax.f32 %v303_v17, %v305_v21  ;;  %v306_v29 = vmax.f32 %v274_v22, 0.0  ;;  %v347_v1 = vld [vmem:[#allocation2 + $0x40] ss:$2 sm:$0xff]  ;;  %v363_v30 = vld [vmem:[#allocation2 + $0x41] ss:$2 sm:$0xff] }
  0x2d   : > { %378 = vst [vmem:[%s618_s25] sm:$0xff] %v370_v19  ;;  %v374_v34 = vmax.f32 %v347_v1, %v363_v30 }
  0x2e   : > { %337 = vst [vmem:[#allocation2 + $0x70] sm:$0xff] %v321_v28  ;;  %v322_v32 = vmax.f32 %v304_v24, %v306_v29 }
  0x2f   : > { %379 = vst [vmem:[%s618_s25 + $0x8] sm:$0xff] %v371_v25 }
  0x30   : > { %338 = vst [vmem:[#allocation2 + $0x78] sm:$0xff] %v322_v32  ;;  %v349_v35 = vld [vmem:[#allocation2 + $0x50] ss:$2 sm:$0xff]  ;;  %v365_v36 = vld [vmem:[#allocation2 + $0x51] ss:$2 sm:$0xff] }
  0x31   : > { %380 = vst [vmem:[%s618_s25 + $0x10] sm:$0xff] %v372_v31  ;;  %v375_v37 = vmax.f32 %v349_v35, %v365_v36 }
  0x32   : > { %381 = vst [vmem:[%s618_s25 + $0x18] sm:$0xff] %v373_v33 }
  0x33   : > { %382 = vst [vmem:[%s618_s25 + $0x20] sm:$0xff] %v374_v34  ;;  %v351_v38 = vld [vmem:[#allocation2 + $0x60] ss:$2 sm:$0xff]  ;;  %v367_v39 = vld [vmem:[#allocation2 + $0x61] ss:$2 sm:$0xff] }
  0x34   : > { %383 = vst [vmem:[%s618_s25 + $0x28] sm:$0xff] %v375_v37  ;;  %v376_v40 = vmax.f32 %v351_v38, %v367_v39 }
  0x36   : > { %384 = vst [vmem:[%s618_s25 + $0x30] sm:$0xff] %v376_v40 }
  0x37   : > { %v353_v41 = vld [vmem:[#allocation2 + $0x70] ss:$2 sm:$0xff]  ;;  %v369_v42 = vld [vmem:[#allocation2 + $0x71] ss:$2 sm:$0xff] }
  0x38   : > { %v377_v43 = vmax.f32 %v353_v41, %v369_v42 }
  0x3a   : > { %385 = vst [vmem:[%s618_s25 + $0x38] sm:$0xff] %v377_v43 }
  0x3b PF: > { %s13_s12 = sadd.s32 1, %s470_s12  }
  0x3c   : > { %p10_p4 = scmp.ge.s32.totalorder %s13_s12, 4  }
  0x3e   :  { %12 = sbr.rel (!%p10_p4) target bundleno = 1 (0x1), region = 77 }

// kernel: down_block.4
= control target key start
LH: loop header
LB: loop body
LE: loop exit
PB: predicated region body
PF: predicated region fallthrough
CT: control target
= control target key end

     0   :  { %s2097_s12 = smov 0   ;;  %s2099_s13 = smov 0   ;;  %s2702_s0 = inlined_call_operand.vmem [shape: f32[2,18,18,8], index: 0, kind: input, shape index: {}]   ;;  %s2703_s1 = inlined_call_operand.vmem [shape: f32[9,8,128], index: 1, kind: input, shape index: {}]   ;;  %s2704_s2 = inlined_call_operand.vmem [shape: f32[2,16,16,128], index: 2, kind: output, shape index: {0}]   ;;  %s2705_s3 = inlined_call_operand.vmem [shape: f32[2,2,128], index: 3, kind: output, shape index: {1}]  }
   0x1   :  { %s2101_s14 = smov 0   ;;  %s2103_s15 = smov 0  }
   0x2   :  { %s2105_s16 = smov 0  }
   0x3 LB: > { %s23_s17 = sadd.s32 1, %s2066_s14  ;;  %s26_s18 = sadd.s32 1, %s2070_s15  ;;  %s2074_s16 = sphi %s2105_s16, %s14_s16   ;;  %s2070_s15 = sphi %s2103_s15, %s2718_s15   ;;  %s2066_s14 = sphi %s2101_s14, %s2717_s14   ;;  %s2062_s13 = sphi %s2099_s13, %s2716_s13   ;;  %s2058_s12 = sphi %s2097_s12, %s2715_s12  }
   0x4   : > { %p24_p0 = scmp.ge.s32.totalorder %s23_s17, 2  ;;  %p1727_p1 = scmp.ge.s32.totalorder %s2074_s16, 1 }
   0x5   : > { %p154_p2 = scmp.lt.s32.totalorder %s2074_s16, 5 }
   0x6   : > { %s2720_s17 = smov (%p24_p0, %s23_s17), 0  ;;  %s2722_s18 = smov (!%p24_p0, %s26_s18), %s2070_s15 }
   0x7   : > { %p155_p3 = pnand %p1727_p1, %p154_p2  ;;  %p28_p4 = scmp.ge.s32.totalorder %s2722_s18, 2 }
   0x9   : > { %s2724_s18 = smov (%p28_p4, %s2722_s18), 0  ;;  %158 = sbr.rel (%p155_p3) target bundleno = 470 (0x1d6), region = 28 }
   0xe   : > { %p187_p5 = scmp.lt.s32.totalorder %s2062_s13, 1  ;;  %s1729_s19 = sshll.u32 %s2058_s12, 3 }
   0xf   : > { %p195_p6 = scmp.lt.s32.totalorder %s1729_s19, 15  ;;  %p1734_p7 = scmp.ne.s32.totalorder %s2058_s12, 0 }
  0x10   : > { %s2726_s13 = smov (!%p187_p5, %s2062_s13), 1 }
  0x11   : > { %s2728_s19 = smov (!%p195_p6, %s1729_s19), 15  ;;  %s1994_s20 = smul.u32 432, %s2726_s13 }
  0x12   : > { %s1731_s21 = sshll.u32 %s2726_s13, 5  ;;  %s1730_s22 = sshll.u32 %s2728_s19, 1 }
  0x13   : > { %s1733_s23 = sshll.u32 %s2726_s13, 1  ;;  %s191_s26 = scalar_lea.vmem %s2702_s0, %s1994_s20 }
  0x14   : > { %s199_s27 = sadd.s32 %s1731_s21, %s1730_s22  ;;  %s2136_s4 = scalar_lea.vmem %s2705_s3, %s1733_s23 }
  0x15   : > { %s1732_s28 = sshll.u32 %s199_s27, 3  ;;  %210 = sbr.rel (%p1734_p7) target bundleno = 28 (0x1c), region = 32 }
  0x16   : > { %s2141_s7 = scalar_lea.vmem %s2704_s2, %s1732_s28 }
  0x1a   : > { %v2076_v0 = vmov 0.0  }
  0x1b   : > { %211 = vst [vmem:[%s2136_s4] sm:$0x3] %v2076_v0 }
  0x1c PF: > { %v1737_v1 = vld [vmem:[%s2703_s1 + $0x8] sm:$0xff]  ;;  %s1736_s10 = smul.u32 192, %s2058_s12  ;;  %v1770_v2 = vld [vmem:[%s2703_s1 + $0x10] sm:$0xff]  ;;  %v1805_v3 = vld [vmem:[%s2703_s1 + $0x18] sm:$0xff]  ;;  %vm250_vm0 = vcmask 64512  }
  0x1d   : > { %1991 = vmatpush.msra.mxu1 %v1737_v1  ;;  %1992 = vmatpush.msra.mxu2 %v1737_v1  ;;  %v231_v4 = vld [vmem:[%s2703_s1] sm:$0xff]  ;;  %v1906_v10 = vld [vmem:[%s2703_s1 + $0x30] sm:$0xff]  ;;  %v1939_v13 = vld [vmem:[%s2703_s1 + $0x38] sm:$0xff] }
  0x1e   : > { %s2158_s23 = scalar_lea.vmem %s191_s26, %s1736_s10  ;;  %1993 = vmatpush.msra.mxu3 %v1737_v1  ;;  %v1838_v9 = vld [vmem:[%s2703_s1 + $0x20] sm:$0xff]  ;;  %314 = vmatpush.msra.mxu0 %v1737_v1  ;;  %v1871_v15 = vld [vmem:[%s2703_s1 + $0x28] sm:$0xff] }
  0x1f   : > { %558 = vmatpush.msrb.mxu2 %v1770_v2  ;;  %v2161_v5 = vld [vmem:[%s2158_s23 + $0x31] sm:$0xff]  ;;  %v2164_v6 = vld [vmem:[%s2158_s23 + $0x61] sm:$0xff]  ;;  %427 = vmatpush.msrb.mxu1 %v231_v4  ;;  %v2184_v11 = vld [vmem:[%s2158_s23 + $0x39] sm:$0xff] }
  0x20   : > { %v2167_v7 = vld [vmem:[%s2158_s23 + $0x91] sm:$0xff]  ;;  %708 = vmatpush.msrb.mxu3 %v1805_v3  ;;  %1742 = vmatmul.msk.f32.vlgmr.msra.gmra.mxu1 %vm250_vm0, %v2161_v5  ;;  %v232_v8 = vld [vmem:[%s2158_s23 + $0x1] sm:$0xff]  ;;  %v2187_v12 = vld [vmem:[%s2158_s23 + $0x69] sm:$0xff] }
  0x21   : > { %1746 = vmatmul.msk.f32.vlgmr.msra.gmra.mxu2 %vm250_vm0, %v2164_v6  ;;  %1750 = vmatmul.msk.f32.vlgmr.msra.gmra.mxu3 %vm250_vm0, %v2167_v7  ;;  %v2193_v14 = vld [vmem:[%s2158_s23 + $0x99] sm:$0xff]  ;;  %v233_v16 = vld [vmem:[%s2158_s23 + $0x9] sm:$0xff]  ;;  %v2227_v22 = vld [vmem:[%s2158_s23 + $0x51] sm:$0xff] }
  0x22   : > { %1738 = vmatmul.msk.f32.vlgmr.msra.gmra.mxu0 %vm250_vm0, %v232_v8  ;;  %1152 = vmatpush.msra.mxu2 %v1906_v10  ;;  %v1972_v17 = vld [vmem:[%s2703_s1 + $0x40] sm:$0xff]  ;;  %v2210_v18 = vld [vmem:[%s2158_s23 + $0x49] sm:$0xff]  ;;  %v2233_v24 = vld [vmem:[%s2158_s23 + $0xb1] sm:$0xff] }
  0x23   : > { %855 = vmatpush.msrb.mxu0 %v1838_v9  ;;  %1299 = vmatpush.msra.mxu3 %v1939_v13  ;;  %v2213_v19 = vld [vmem:[%s2158_s23 + $0x79] sm:$0xff]  ;;  %v2216_v20 = vld [vmem:[%s2158_s23 + $0xa9] sm:$0xff]  ;;  %v2230_v23 = vld [vmem:[%s2158_s23 + $0x81] sm:$0xff] }
  0x24   : > { %1002 = vmatpush.msra.mxu1 %v1871_v15  ;;  %v234_v21 = vld [vmem:[%s2158_s23 + $0x19] sm:$0xff]  ;;  %v235_v25 = vld [vmem:[%s2158_s23 + $0x21] sm:$0xff]  ;;  %v478_v30 = vld [vmem:[%s2158_s23 + $0xa] sm:$0xff] }
  0x25   : > { %1446 = vmatpush.msra.mxu0 %v1972_v17  ;;  %v215_v26 = vld [vmem:[%s2158_s23] sm:$0xff]  ;;  %v1789_v28 = vld [vmem:[%s2158_s23 + $0x18] sm:$0xff]  ;;  %v216_v29 = vld [vmem:[%s2158_s23 + $0x8] sm:$0xff] }
  0x26   : > { %v477_v27 = vld [vmem:[%s2158_s23 + $0x2] sm:$0xff]  ;;  %v2258_v32 = vld [vmem:[%s2158_s23 + $0x1a] sm:$0xff]  ;;  %v2261_v33 = vld [vmem:[%s2158_s23 + $0x30] sm:$0xff] }
  0x27   : > { %v1790_v31 = vld [vmem:[%s2158_s23 + $0x20] sm:$0xff]  ;;  %v2274_v35 = vld [vmem:[%s2158_s23 + $0x38] sm:$0xff]  ;;  %v2287_v37 = vld [vmem:[%s2158_s23 + $0x48] sm:$0xff] }
  0x28   : > { %1743 = vmatmul.msk.f32.gmra.mxu1 %vm250_vm0, %v2184_v11  ;;  %v2271_v34 = vld [vmem:[%s2158_s23 + $0x22] sm:$0xff]  ;;  %v2284_v36 = vld [vmem:[%s2158_s23 + $0x32] sm:$0xff]  ;;  %v2298_v38 = vld [vmem:[%s2158_s23 + $0x3a] sm:$0xff] }
  0x29   : > { %1747 = vmatmul.msk.f32.gmra.mxu2 %vm250_vm0, %v2187_v12  ;;  %1751 = vmatmul.msk.f32.gmra.mxu3 %vm250_vm0, %v2193_v14  ;;  %v2301_v39 = vld [vmem:[%s2158_s23 + $0x50] sm:$0xff]  ;;  %v2315_v41 = vld [vmem:[%s2158_s23 + $0x60] sm:$0xff]  ;;  %v2329_v43 = vld [vmem:[%s2158_s23 + $0x68] sm:$0xff] }
  0x2a   : > { %1739 = vmatmul.msk.f32.gmra.mxu0 %vm250_vm0, %v233_v16  ;;  %v2312_v40 = vld [vmem:[%s2158_s23 + $0x4a] sm:$0xff]  ;;  %v2326_v42 = vld [vmem:[%s2158_s23 + $0x52] sm:$0xff]  ;;  %v2340_v44 = vld [vmem:[%s2158_s23 + $0x62] sm:$0xff] }
  0x2b   : > { %v2343_v45 = vld [vmem:[%s2158_s23 + $0x78] sm:$0xff]  ;;  %v2354_v46 = vld [vmem:[%s2158_s23 + $0x6a] sm:$0xff]  ;;  %v2357_v47 = vld [vmem:[%s2158_s23 + $0x80] sm:$0xff] }
  0x2c   : > { %v2368_v48 = vld [vmem:[%s2158_s23 + $0x7a] sm:$0xff]  ;;  %v2371_v49 = vld [vmem:[%s2158_s23 + $0x90] sm:$0xff]  ;;  %v2382_v50 = vld [vmem:[%s2158_s23 + $0x82] sm:$0xff] }
  0x2d   : > { %v2385_v51 = vld [vmem:[%s2158_s23 + $0x98] sm:$0xff]  ;;  %v2401_v54 = vld [vmem:[%s2158_s23 + $0xa8] sm:$0xff]  ;;  %v2421_v60 = vld [vmem:[%s2158_s23 + $0xb0] sm:$0xff] }
  0x2e   : > { %v2398_v53 = vld [vmem:[%s2158_s23 + $0x92] sm:$0xff]  ;;  %v2418_v59 = vld [vmem:[%s2158_s23 + $0x9a] sm:$0xff]  ;;  %v2438_v1 = vld [vmem:[%s2158_s23 + $0xaa] sm:$0xff] }
  0x2f   : > { %v2441_v2 = vld [vmem:[%s2158_s23 + $0xc0] sm:$0xff]  ;;  %v2461_v13 = vld [vmem:[%s2158_s23 + $0xb2] sm:$0xff]  ;;  %v2464_v15 = vld [vmem:[%s2158_s23 + $0xc8] sm:$0xff] }
  0x30   : > { %1744 = vmatmul.msk.f32.gmra.mxu1 %vm250_vm0, %v2210_v18  ;;  %v2444_v4 = vld [vmem:[%s2158_s23 + $0xc1] sm:$0xff]  ;;  %v2467_v17 = vld [vmem:[%s2158_s23 + $0xc9] sm:$0xff] }
  0x31   : > { %1748 = vmatmul.msk.f32.gmra.mxu2 %vm250_vm0, %v2213_v19  ;;  %1752 = vmatmul.msk.f32.gmra.mxu3 %vm250_vm0, %v2216_v20  ;;  %2709 = vst [vmem:[#allocation4_spill] sm:$0xff] %v2467_v17 }
  0x32   : > { %1740 = vmatmul.msk.f32.gmra.mxu0 %vm250_vm0, %v234_v21 }
  0x38   : > { %1745 = vmatmul.msk.f32.gmra.mxu1 %vm250_vm0, %v2227_v22 }
  0x39   : > { %1749 = vmatmul.msk.f32.gmra.mxu2 %vm250_vm0, %v2230_v23  ;;  %1753 = vmatmul.msk.f32.gmra.mxu3 %vm250_vm0, %v2233_v24 }
  0x3a   : > { %1741 = vmatmul.msk.f32.gmra.mxu0 %vm250_vm0, %v235_v25 }
  0x40   : > { %1754 = vmatmul.msk.f32.vlgmr.msrb.gmra.mxu1 %vm250_vm0, %v215_v26 }
  0x41   : > { %1771 = vmatmul.msk.f32.vlgmr.msrb.gmra.mxu2 %vm250_vm0, %v477_v27  ;;  %1806 = vmatmul.msk.f32.vlgmr.msrb.gmra.mxu3 %vm250_vm0, %v1789_v28 }
  0x42   : > { %1839 = vmatmul.msk.f32.vlgmr.msrb.gmra.mxu0 %vm250_vm0, %v234_v21 }
  0x48   : > { %1755 = vmatmul.msk.f32.gmra.mxu1 %vm250_vm0, %v216_v29 }
  0x49   : > { %1772 = vmatmul.msk.f32.gmra.mxu2 %vm250_vm0, %v478_v30  ;;  %1807 = vmatmul.msk.f32.gmra.mxu3 %vm250_vm0, %v1790_v31 }
  0x4a   : > { %1840 = vmatmul.msk.f32.gmra.mxu0 %vm250_vm0, %v235_v25 }
  0x50   : > { %1756 = vmatmul.msk.f32.gmra.mxu1 %vm250_vm0, %v1789_v28 }
  0x51   : > { %1773 = vmatmul.msk.f32.gmra.mxu2 %vm250_vm0, %v2258_v32  ;;  %1808 = vmatmul.msk.f32.gmra.mxu3 %vm250_vm0, %v2261_v33 }
  0x52   : > { %1841 = vmatmul.msk.f32.gmra.mxu0 %vm250_vm0, %v2161_v5 }
  0x58   : > { %1757 = vmatmul.msk.f32.gmra.mxu1 %vm250_vm0, %v1790_v31 }
  0x59   : > { %1774 = vmatmul.msk.f32.gmra.mxu2 %vm250_vm0, %v2271_v34  ;;  %1809 = vmatmul.msk.f32.gmra.mxu3 %vm250_vm0, %v2274_v35 }
  0x5a   : > { %1842 = vmatmul.msk.f32.gmra.mxu0 %vm250_vm0, %v2184_v11 }
  0x60   : > { %1758 = vmatmul.msk.f32.gmra.mxu1 %vm250_vm0, %v2261_v33 }
  0x61   : > { %1775 = vmatmul.msk.f32.gmra.mxu2 %vm250_vm0, %v2284_v36  ;;  %1810 = vmatmul.msk.f32.gmra.mxu3 %vm250_vm0, %v2287_v37 }
  0x62   : > { %1843 = vmatmul.msk.f32.gmra.mxu0 %vm250_vm0, %v2210_v18 }
  0x68   : > { %1759 = vmatmul.msk.f32.gmra.mxu1 %vm250_vm0, %v2274_v35 }
  0x69   : > { %1776 = vmatmul.msk.f32.gmra.mxu2 %vm250_vm0, %v2298_v38  ;;  %1811 = vmatmul.msk.f32.gmra.mxu3 %vm250_vm0, %v2301_v39 }
  0x6a   : > { %1844 = vmatmul.msk.f32.gmra.mxu0 %vm250_vm0, %v2227_v22 }
  0x70   : > { %1760 = vmatmul.msk.f32.gmra.mxu1 %vm250_vm0, %v2287_v37 }
  0x71   : > { %1777 = vmatmul.msk.f32.gmra.mxu2 %vm250_vm0, %v2312_v40  ;;  %1812 = vmatmul.msk.f32.gmra.mxu3 %vm250_vm0, %v2315_v41 }
  0x72   : > { %1845 = vmatmul.msk.f32.gmra.mxu0 %vm250_vm0, %v2164_v6 }
  0x78   : > { %1761 = vmatmul.msk.f32.gmra.mxu1 %vm250_vm0, %v2301_v39 }
  0x79   : > { %1778 = vmatmul.msk.f32.gmra.mxu2 %vm250_vm0, %v2326_v42  ;;  %1813 = vmatmul.msk.f32.gmra.mxu3 %vm250_vm0, %v2329_v43 }
  0x7a   : > { %1846 = vmatmul.msk.f32.gmra.mxu0 %vm250_vm0, %v2187_v12 }
  0x80   : > { %1762 = vmatmul.msk.f32.gmra.mxu1 %vm250_vm0, %v2315_v41 }
  0x81   : > { %1779 = vmatmul.msk.f32.gmra.mxu2 %vm250_vm0, %v2340_v44  ;;  %1814 = vmatmul.msk.f32.gmra.mxu3 %vm250_vm0, %v2343_v45 }
  0x82   : > { %1847 = vmatmul.msk.f32.gmra.mxu0 %vm250_vm0, %v2213_v19 }
  0x88   : > { %1763 = vmatmul.msk.f32.gmra.mxu1 %vm250_vm0, %v2329_v43 }
  0x89   : > { %1780 = vmatmul.msk.f32.gmra.mxu2 %vm250_vm0, %v2354_v46  ;;  %1815 = vmatmul.msk.f32.gmra.mxu3 %vm250_vm0, %v2357_v47 }
  0x8a   : > { %1848 = vmatmul.msk.f32.gmra.mxu0 %vm250_vm0, %v2230_v23 }
  0x90   : > { %1764 = vmatmul.msk.f32.gmra.mxu1 %vm250_vm0, %v2343_v45 }
  0x91   : > { %1781 = vmatmul.msk.f32.gmra.mxu2 %vm250_vm0, %v2368_v48  ;;  %1816 = vmatmul.msk.f32.gmra.mxu3 %vm250_vm0, %v2371_v49 }
  0x92   : > { %1849 = vmatmul.msk.f32.gmra.mxu0 %vm250_vm0, %v2167_v7 }
  0x98   : > { %1765 = vmatmul.msk.f32.gmra.mxu1 %vm250_vm0, %v2357_v47 }
  0x99   : > { %1782 = vmatmul.msk.f32.gmra.mxu2 %vm250_vm0, %v2382_v50  ;;  %1817 = vmatmul.msk.f32.gmra.mxu3 %vm250_vm0, %v2385_v51 }
  0x9a   : > { %1850 = vmatmul.msk.f32.gmra.mxu0 %vm250_vm0, %v2193_v14 }
  0x9d   : > { %v2395_v52 = vpop.f32.mrf.mxu1 }
  0x9f   : > { %v316_v55 = vpop.f32.mrf.mxu0 }
  0xa0   : > { %1766 = vmatmul.msk.f32.gmra.mxu1 %vm250_vm0, %v2371_v49 }
  0xa1   : > { %1783 = vmatmul.msk.f32.gmra.mxu2 %vm250_vm0, %v2398_v53  ;;  %1818 = vmatmul.msk.f32.gmra.mxu3 %vm250_vm0, %v2401_v54 }
  0xa2   : > { %1851 = vmatmul.msk.f32.gmra.mxu0 %vm250_vm0, %v2216_v20 }
  0xa4   : > { %v2411_v56 = vpop.f32.mrf.mxu2  ;;  %v2413_v57 = vpop.f32.mrf.mxu3 }
  0xa5   : > { %v2415_v58 = vpop.f32.mrf.mxu1 }
  0xa7   : > { %v319_v61 = vpop.f32.mrf.mxu0 }
  0xa8   : > { %1767 = vmatmul.msk.f32.gmra.mxu1 %vm250_vm0, %v2385_v51 }
  0xa9   : > { %1784 = vmatmul.msk.f32.gmra.mxu2 %vm250_vm0, %v2418_v59  ;;  %1819 = vmatmul.msk.f32.gmra.mxu3 %vm250_vm0, %v2421_v60 }
  0xaa   : > { %1852 = vmatmul.msk.f32.gmra.mxu0 %vm250_vm0, %v2233_v24 }
  0xac   : > { %v2431_v62 = vpop.f32.mrf.mxu2  ;;  %v2433_v63 = vpop.f32.mrf.mxu3 }
  0xad   : > { %2707 = vst [vmem:[#allocation2_spill] sm:$0xff] %v2433_v63  ;;  %v2435_v0 = vpop.f32.mrf.mxu1 }
  0xaf   : > { %v322_v3 = vpop.f32.mrf.mxu0 }
  0xb0   : > { %1768 = vmatmul.msk.f32.gmra.mxu1 %vm250_vm0, %v2401_v54 }
  0xb1   : > { %1785 = vmatmul.msk.f32.gmra.mxu2 %vm250_vm0, %v2438_v1  ;;  %1820 = vmatmul.msk.f32.gmra.mxu3 %vm250_vm0, %v2441_v2 }
  0xb2   : > { %1853 = vmatmul.msk.f32.gmra.mxu0 %vm250_vm0, %v2444_v4 }
  0xb4   : > { %v2454_v8 = vpop.f32.mrf.mxu2  ;;  %v2456_v9 = vpop.f32.mrf.mxu3 }
  0xb5   : > { %2708 = vst [vmem:[#allocation3_spill] sm:$0xff] %v2456_v9  ;;  %v2458_v10 = vpop.f32.mrf.mxu1 }
  0xb7   : > { %v325_v16 = vpop.f32.mrf.mxu0 }
  0xb8   : > { %1769 = vmatmul.msk.f32.gmra.mxu1 %vm250_vm0, %v2421_v60 }
  0xb9   : > { %1786 = vmatmul.msk.f32.gmra.mxu2 %vm250_vm0, %v2461_v13  ;;  %1821 = vmatmul.msk.f32.gmra.mxu3 %vm250_vm0, %v2464_v15 }
  0xba   : > { %1854 = vmatmul.msk.f32.gmra.mxu0 %vm250_vm0, %v2467_v17 }
  0xbc   : > { %v2477_v21 = vpop.f32.mrf.mxu2  ;;  %v2479_v25 = vpop.f32.mrf.mxu3 }
  0xbd   : > { %2710 = vst [vmem:[#allocation5_spill] sm:$0xff] %v2479_v25  ;;  %v429_v26 = vpop.f32.mrf.mxu1 }
  0xbe   : > { %v430_v28 = vadd.f32 %v429_v26, %v316_v55 }
  0xbf   : > { %v857_v27 = vpop.f32.mrf.mxu0 }
  0xc0   : > { %1872 = vmatmul.msk.f32.vlgmr.msra.gmra.mxu1 %vm250_vm0, %v2258_v32 }
  0xc1   : > { %1907 = vmatmul.msk.f32.vlgmr.msra.gmra.mxu2 %vm250_vm0, %v2261_v33  ;;  %1940 = vmatmul.msk.f32.vlgmr.msra.gmra.mxu3 %vm250_vm0, %v2161_v5 }
  0xc2   : > { %1973 = vmatmul.msk.f32.vlgmr.msra.gmra.mxu0 %vm250_vm0, %v2284_v36 }
  0xc4   : > { %v560_v29 = vpop.f32.mrf.mxu2  ;;  %v710_v31 = vpop.f32.mrf.mxu3 }
  0xc5   : > { %v608_v30 = vadd.f32 %v560_v29, %v430_v28  ;;  %v432_v9 = vpop.f32.mrf.mxu1 }
  0xc6   : > { %v433_v5 = vadd.f32 %v432_v9, %v319_v61 }
  0xc7   : > { %v758_v25 = vadd.f32 %v710_v31, %v608_v30  ;;  %v860_v63 = vpop.f32.mrf.mxu0 }
  0xc8   : > { %1873 = vmatmul.msk.f32.gmra.mxu1 %vm250_vm0, %v2271_v34 }
  0xc9   : > { %v2489_v17 = vadd.f32 %v857_v27, %v758_v25  ;;  %1908 = vmatmul.msk.f32.gmra.mxu2 %vm250_vm0, %v2274_v35  ;;  %1941 = vmatmul.msk.f32.gmra.mxu3 %vm250_vm0, %v2184_v11 }
  0xca   : > { %1974 = vmatmul.msk.f32.gmra.mxu0 %vm250_vm0, %v2298_v38 }
  0xcc   : > { %v563_v32 = vpop.f32.mrf.mxu2  ;;  %v713_v55 = vpop.f32.mrf.mxu3 }
  0xcd   : > { %v609_v33 = vadd.f32 %v563_v32, %v433_v5  ;;  %v435_v26 = vpop.f32.mrf.mxu1 }
  0xce   : > { %v436_v11 = vadd.f32 %v435_v26, %v322_v3 }
  0xcf   : > { %v759_v28 = vadd.f32 %v713_v55, %v609_v33  ;;  %v863_v25 = vpop.f32.mrf.mxu0 }
  0xd0   : > { %1874 = vmatmul.msk.f32.gmra.mxu1 %vm250_vm0, %v2284_v36 }
  0xd1   : > { %v2499_v27 = vadd.f32 %v860_v63, %v759_v28  ;;  %1909 = vmatmul.msk.f32.gmra.mxu2 %vm250_vm0, %v2287_v37  ;;  %1942 = vmatmul.msk.f32.gmra.mxu3 %vm250_vm0, %v2210_v18 }
  0xd2   : > { %1975 = vmatmul.msk.f32.gmra.mxu0 %vm250_vm0, %v2312_v40 }
  0xd4   : > { %v566_v34 = vpop.f32.mrf.mxu2  ;;  %v716_v61 = vpop.f32.mrf.mxu3 }
  0xd5   : > { %v610_v35 = vadd.f32 %v566_v34, %v436_v11  ;;  %v438_v9 = vpop.f32.mrf.mxu1 }
  0xd6   : > { %v439_v18 = vadd.f32 %v438_v9, %v325_v16 }
  0xd7   : > { %v760_v29 = vadd.f32 %v716_v61, %v610_v35  ;;  %v866_v63 = vpop.f32.mrf.mxu0 }
  0xd8   : > { %1875 = vmatmul.msk.f32.gmra.mxu1 %vm250_vm0, %v2298_v38 }
  0xd9   : > { %v2509_v30 = vadd.f32 %v863_v25, %v760_v29  ;;  %1910 = vmatmul.msk.f32.gmra.mxu2 %vm250_vm0, %v2301_v39  ;;  %1943 = vmatmul.msk.f32.gmra.mxu3 %vm250_vm0, %v2227_v22 }
  0xda   : > { %1976 = vmatmul.msk.f32.gmra.mxu0 %vm250_vm0, %v2326_v42 }
  0xdc   : > { %v569_v36 = vpop.f32.mrf.mxu2  ;;  %v719_v3 = vpop.f32.mrf.mxu3 }
  0xdd   : > { %v611_v37 = vadd.f32 %v569_v36, %v439_v18  ;;  %v441_v31 = vpop.f32.mrf.mxu1 }
  0xde   : > { %v442_v22 = vadd.f32 %v441_v31, %v2395_v52 }
  0xdf   : > { %v761_v5 = vadd.f32 %v719_v3, %v611_v37  ;;  %v869_v32 = vpop.f32.mrf.mxu0 }
  0xe0   : > { %1876 = vmatmul.msk.f32.gmra.mxu1 %vm250_vm0, %v2312_v40 }
  0xe1   : > { %v2519_v33 = vadd.f32 %v866_v63, %v761_v5  ;;  %1911 = vmatmul.msk.f32.gmra.mxu2 %vm250_vm0, %v2315_v41  ;;  %1944 = vmatmul.msk.f32.gmra.mxu3 %vm250_vm0, %v2164_v6 }
  0xe2   : > { %1977 = vmatmul.msk.f32.gmra.mxu0 %vm250_vm0, %v2340_v44 }
  0xe4   : > { %v572_v38 = vpop.f32.mrf.mxu2  ;;  %v722_v16 = vpop.f32.mrf.mxu3 }
  0xe5   : > { %v612_v39 = vadd.f32 %v572_v38, %v442_v22  ;;  %v444_v55 = vpop.f32.mrf.mxu1 }
  0xe6   : > { %v445_v6 = vadd.f32 %v444_v55, %v2415_v58 }
  0xe7   : > { %v762_v26 = vadd.f32 %v722_v16, %v612_v39  ;;  %v872_v28 = vpop.f32.mrf.mxu0 }
  0xe8   : > { %1877 = vmatmul.msk.f32.gmra.mxu1 %vm250_vm0, %v2326_v42 }
  0xe9   : > { %v2530_v25 = vadd.f32 %v869_v32, %v762_v26  ;;  %1912 = vmatmul.msk.f32.gmra.mxu2 %vm250_vm0, %v2329_v43  ;;  %1945 = vmatmul.msk.f32.gmra.mxu3 %vm250_vm0, %v2187_v12 }
  0xea   : > { %1978 = vmatmul.msk.f32.gmra.mxu0 %vm250_vm0, %v2354_v46 }
  0xec   : > { %v575_v40 = vpop.f32.mrf.mxu2  ;;  %v725_v52 = vpop.f32.mrf.mxu3 }
  0xed   : > { %v613_v41 = vadd.f32 %v575_v40, %v445_v6  ;;  %v447_v11 = vpop.f32.mrf.mxu1 }
  0xee   : > { %v448_v12 = vadd.f32 %v447_v11, %v2435_v0 }
  0xef   : > { %v763_v34 = vadd.f32 %v725_v52, %v613_v41  ;;  %v875_v35 = vpop.f32.mrf.mxu0 }
  0xf0   : > { %1878 = vmatmul.msk.f32.gmra.mxu1 %vm250_vm0, %v2340_v44 }
  0xf1   : > { %v2541_v61 = vadd.f32 %v872_v28, %v763_v34  ;;  %1913 = vmatmul.msk.f32.gmra.mxu2 %vm250_vm0, %v2343_v45  ;;  %1946 = vmatmul.msk.f32.gmra.mxu3 %vm250_vm0, %v2213_v19 }
  0xf2   : > { %1979 = vmatmul.msk.f32.gmra.mxu0 %vm250_vm0, %v2368_v48 }
  0xf4   : > { %v578_v42 = vpop.f32.mrf.mxu2  ;;  %v728_v58 = vpop.f32.mrf.mxu3 }
  0xf5   : > { %v614_v43 = vadd.f32 %v578_v42, %v448_v12  ;;  %v450_v9 = vpop.f32.mrf.mxu1 }
  0xf6   : > { %v451_v19 = vadd.f32 %v450_v9, %v2458_v10 }
  0xf7   : > { %v764_v29 = vadd.f32 %v728_v58, %v614_v43  ;;  %v878_v63 = vpop.f32.mrf.mxu0 }
  0xf8   : > { %1879 = vmatmul.msk.f32.gmra.mxu1 %vm250_vm0, %v2354_v46 }
  0xf9   : > { %v2552_v18 = vadd.f32 %v875_v35, %v764_v29  ;;  %1914 = vmatmul.msk.f32.gmra.mxu2 %vm250_vm0, %v2357_v47  ;;  %1947 = vmatmul.msk.f32.gmra.mxu3 %vm250_vm0, %v2230_v23  ;;  %v1968_v35 = vld [vmem:[%s2158_s23 + $0xc2] sm:$0xff] }
  0xfa   : > { %1980 = vmatmul.msk.f32.gmra.mxu0 %vm250_vm0, %v2382_v50 }
  0xfc   : > { %v581_v44 = vpop.f32.mrf.mxu2  ;;  %v731_v0 = vpop.f32.mrf.mxu3 }
  0xfd   : > { %v615_v45 = vadd.f32 %v581_v44, %v451_v19  ;;  %v453_v36 = vpop.f32.mrf.mxu1 }
  0xfe   : > { %v454_v23 = vadd.f32 %v453_v36, %v2411_v56  ;;  %v1937_v36 = vld [vmem:[%s2158_s23 + $0xd9] sm:$0xff] }
  0xff   : > { %v765_v37 = vadd.f32 %v731_v0, %v615_v45  ;;  %v881_v3 = vpop.f32.mrf.mxu0  ;;  %v1904_v45 = vld [vmem:[%s2158_s23 + $0xd8] sm:$0xff] }
 0x100   : > { %1880 = vmatmul.msk.f32.gmra.mxu1 %vm250_vm0, %v2368_v48 }
 0x101   : > { %v2563_v31 = vadd.f32 %v878_v63, %v765_v37  ;;  %1915 = vmatmul.msk.f32.gmra.mxu2 %vm250_vm0, %v2371_v49  ;;  %1948 = vmatmul.msk.f32.gmra.mxu3 %vm250_vm0, %v2167_v7  ;;  %v1970_v37 = vld [vmem:[%s2158_s23 + $0xda] sm:$0xff] }
 0x102   : > { %1981 = vmatmul.msk.f32.gmra.mxu0 %vm250_vm0, %v2398_v53 }
 0x104   : > { %v584_v46 = vpop.f32.mrf.mxu2  ;;  %v734_v10 = vpop.f32.mrf.mxu3 }
 0x105   : > { %v616_v47 = vadd.f32 %v584_v46, %v454_v23  ;;  %v456_v5 = vpop.f32.mrf.mxu1 }
 0x106   : > { %v457_v7 = vadd.f32 %v456_v5, %v2431_v62 }
 0x107   : > { %v766_v32 = vadd.f32 %v734_v10, %v616_v47  ;;  %v884_v22 = vpop.f32.mrf.mxu0 }
 0x108   : > { %1881 = vmatmul.msk.f32.gmra.mxu1 %vm250_vm0, %v2382_v50 }
 0x109   : > { %v2574_v38 = vadd.f32 %v881_v3, %v766_v32  ;;  %1916 = vmatmul.msk.f32.gmra.mxu2 %vm250_vm0, %v2385_v51  ;;  %1949 = vmatmul.msk.f32.gmra.mxu3 %vm250_vm0, %v2193_v14  ;;  %v2713_v3 = vld [vmem:[#allocation3_spill] sm:$0xff]  ;;  %v1905_v32 = vld [vmem:[%s2158_s23 + $0xe0] sm:$0xff] }
 0x10a   : > { %1982 = vmatmul.msk.f32.gmra.mxu0 %vm250_vm0, %v2418_v59 }
 0x10c   : > { %v587_v48 = vpop.f32.mrf.mxu2  ;;  %v737_v56 = vpop.f32.mrf.mxu3 }
 0x10d   : > { %v617_v49 = vadd.f32 %v587_v48, %v457_v7  ;;  %v459_v39 = vpop.f32.mrf.mxu1  ;;  %v1938_v7 = vld [vmem:[%s2158_s23 + $0xe1] sm:$0xff] }
 0x10e   : > { %v460_v14 = vadd.f32 %v459_v39, %v2454_v8  ;;  %v2714_v39 = vld [vmem:[#allocation5_spill] sm:$0xff] }
 0x10f   : > { %v767_v16 = vadd.f32 %v737_v56, %v617_v49  ;;  %v887_v55 = vpop.f32.mrf.mxu0  ;;  %v1971_v49 = vld [vmem:[%s2158_s23 + $0xe2] sm:$0xff] }
 0x110   : > { %1882 = vmatmul.msk.f32.gmra.mxu1 %vm250_vm0, %v2398_v53 }
 0x111   : > { %v2585_v26 = vadd.f32 %v884_v22, %v767_v16  ;;  %1917 = vmatmul.msk.f32.gmra.mxu2 %vm250_vm0, %v2401_v54  ;;  %1950 = vmatmul.msk.f32.gmra.mxu3 %vm250_vm0, %v2216_v20 }
 0x112   : > { %1983 = vmatmul.msk.f32.gmra.mxu0 %vm250_vm0, %v2438_v1 }
 0x114   : > { %v590_v50 = vpop.f32.mrf.mxu2  ;;  %v740_v62 = vpop.f32.mrf.mxu3 }
 0x115   : > { %v618_v51 = vadd.f32 %v590_v50, %v460_v14  ;;  %v462_v28 = vpop.f32.mrf.mxu1 }
 0x116   : > { %v463_v20 = vadd.f32 %v462_v28, %v2477_v21 }
 0x117   : > { %v768_v6 = vadd.f32 %v740_v62, %v618_v51  ;;  %v890_v40 = vpop.f32.mrf.mxu0 }
 0x118   : > { %1883 = vmatmul.msk.f32.gmra.mxu1 %vm250_vm0, %v2418_v59 }
 0x119   : > { %v2596_v41 = vadd.f32 %v887_v55, %v768_v6  ;;  %1918 = vmatmul.msk.f32.gmra.mxu2 %vm250_vm0, %v2421_v60  ;;  %1951 = vmatmul.msk.f32.gmra.mxu3 %vm250_vm0, %v2233_v24 }
 0x11a   : > { %1984 = vmatmul.msk.f32.gmra.mxu0 %vm250_vm0, %v2461_v13 }
 0x11c   : > { %v593_v53 = vpop.f32.mrf.mxu2  ;;  %v743_v8 = vpop.f32.mrf.mxu3 }
 0x11d   : > { %v619_v54 = vadd.f32 %v593_v53, %v463_v20  ;;  %v465_v52 = vpop.f32.mrf.mxu1 }
 0x11e   : > { %v466_v24 = vadd.f32 %v465_v52, %v2413_v57  ;;  %v2711_v57 = vld [vmem:[#allocation4_spill] sm:$0xff] }
 0x11f   : > { %v769_v11 = vadd.f32 %v743_v8, %v619_v54  ;;  %v893_v34 = vpop.f32.mrf.mxu0 }
 0x120   : > { %1884 = vmatmul.msk.f32.gmra.mxu1 %vm250_vm0, %v2438_v1  ;;  %v1969_v1 = vld [vmem:[%s2158_s23 + $0xca] sm:$0xff] }
 0x121   : > { %v2608_v59 = vadd.f32 %v890_v40, %v769_v11  ;;  %1919 = vmatmul.msk.f32.gmra.mxu2 %vm250_vm0, %v2441_v2  ;;  %1952 = vmatmul.msk.f32.gmra.mxu3 %vm250_vm0, %v2444_v4  ;;  %v2712_v2 = vld [vmem:[#allocation2_spill] sm:$0xff] }
 0x122   : > { %1985 = vmatmul.msk.f32.gmra.mxu0 %vm250_vm0, %v1968_v35 }
 0x124   : > { %v596_v60 = vpop.f32.mrf.mxu2  ;;  %v746_v12 = vpop.f32.mrf.mxu3 }
 0x125   : > { %v620_v21 = vadd.f32 %v596_v60, %v466_v24  ;;  %v468_v42 = vpop.f32.mrf.mxu1 }
 0x126   : > { %v469_v4 = vadd.f32 %v468_v42, %v2712_v2 }
 0x127   : > { %v770_v43 = vadd.f32 %v746_v12, %v620_v21  ;;  %v896_v58 = vpop.f32.mrf.mxu0 }
 0x128   : > { %1885 = vmatmul.msk.f32.gmra.mxu1 %vm250_vm0, %v2461_v13 }
 0x129   : > { %v2619_v9 = vadd.f32 %v893_v34, %v770_v43  ;;  %1920 = vmatmul.msk.f32.gmra.mxu2 %vm250_vm0, %v2464_v15  ;;  %1953 = vmatmul.msk.f32.gmra.mxu3 %vm250_vm0, %v2711_v57 }
 0x12a   : > { %1986 = vmatmul.msk.f32.gmra.mxu0 %vm250_vm0, %v1969_v1 }
 0x12c   : > { %v599_v29 = vpop.f32.mrf.mxu2  ;;  %v749_v19 = vpop.f32.mrf.mxu3 }
 0x12d   : > { %v621_v63 = vadd.f32 %v599_v29, %v469_v4  ;;  %v471_v44 = vpop.f32.mrf.mxu1 }
 0x12e   : > { %v472_v23 = vadd.f32 %v471_v44, %v2713_v3 }
 0x12f   : > { %v771_v0 = vadd.f32 %v749_v19, %v621_v63  ;;  %v899_v13 = vpop.f32.mrf.mxu0 }
 0x130   : > { %1886 = vmatmul.msk.f32.gmra.mxu1 %vm250_vm0, %v1968_v35 }
 0x131   : > { %v2632_v15 = vadd.f32 %v896_v58, %v771_v0  ;;  %1921 = vmatmul.msk.f32.gmra.mxu2 %vm250_vm0, %v1904_v45  ;;  %1954 = vmatmul.msk.f32.gmra.mxu3 %vm250_vm0, %v1937_v36 }
 0x132   : > { %1987 = vmatmul.msk.f32.gmra.mxu0 %vm250_vm0, %v1970_v37 }
 0x134   : > { %v602_v46 = vpop.f32.mrf.mxu2  ;;  %v752_v10 = vpop.f32.mrf.mxu3 }
 0x135   : > { %v622_v47 = vadd.f32 %v602_v46, %v472_v23  ;;  %v474_v5 = vpop.f32.mrf.mxu1 }
 0x136   : > { %v475_v16 = vadd.f32 %v474_v5, %v2714_v39 }
 0x137   : > { %v772_v22 = vadd.f32 %v752_v10, %v622_v47  ;;  %v902_v48 = vpop.f32.mrf.mxu0 }
 0x138   : > { %1887 = vmatmul.msk.f32.gmra.mxu1 %vm250_vm0, %v1969_v1 }
 0x139   : > { %v2642_v56 = vadd.f32 %v899_v13, %v772_v22  ;;  %1922 = vmatmul.msk.f32.gmra.mxu2 %vm250_vm0, %v1905_v32  ;;  %1955 = vmatmul.msk.f32.gmra.mxu3 %vm250_vm0, %v1938_v7 }
 0x13a   : > { %1988 = vmatmul.msk.f32.gmra.mxu0 %vm250_vm0, %v1971_v49 }
 0x13c   : > { %v605_v55 = vpop.f32.mrf.mxu2  ;;  %v755_v50 = vpop.f32.mrf.mxu3 }
 0x13d   : > { %v623_v14 = vadd.f32 %v605_v55, %v475_v16  ;;  %v1004_v51 = vpop.f32.mrf.mxu1 }
 0x13e   : > { %v1052_v40 = vadd.f32 %v1004_v51, %v2489_v17 }
 0x13f   : > { %v773_v62 = vadd.f32 %v755_v50, %v623_v14  ;;  %v1448_v28 = vpop.f32.mrf.mxu0 }
 0x141   : > { %v2649_v6 = vadd.f32 %v902_v48, %v773_v62 }
 0x144   : > { %v1154_v20 = vpop.f32.mrf.mxu2  ;;  %v1301_v54 = vpop.f32.mrf.mxu3 }
 0x145   : > { %v1202_v53 = vadd.f32 %v1154_v20, %v1052_v40  ;;  %v1007_v8 = vpop.f32.mrf.mxu1 }
 0x146   : > { %v1053_v35 = vadd.f32 %v1007_v8, %v2499_v27 }
 0x147   : > { %v1349_v52 = vadd.f32 %v1301_v54, %v1202_v53  ;;  %v1451_v11 = vpop.f32.mrf.mxu0 }
 0x149   : > { %v1496_v34 = vadd.f32 %v1448_v28, %v1349_v52 }
 0x14b   : > { %1512 = vst [vmem:[%s2141_s7] sm:$0xff] %v1496_v34  ;;  %v1553_v17 = vmul.f32 %v1496_v34, %v1496_v34 }
 0x14c   : > { %v1157_v24 = vpop.f32.mrf.mxu2  ;;  %v1304_v21 = vpop.f32.mrf.mxu3 }
 0x14d   : > { %v1203_v60 = vadd.f32 %v1157_v24, %v1053_v35  ;;  %v1010_v12 = vpop.f32.mrf.mxu1 }
 0x14e   : > { %v1054_v1 = vadd.f32 %v1010_v12, %v2509_v30 }
 0x14f   : > { %v1350_v42 = vadd.f32 %v1304_v21, %v1203_v60  ;;  %v1454_v43 = vpop.f32.mrf.mxu0 }
 0x151   : > { %v1497_v58 = vadd.f32 %v1451_v11, %v1350_v42 }
 0x153   : > { %1513 = vst [vmem:[%s2141_s7 + $0x8] sm:$0xff] %v1497_v58  ;;  %v1529_v57 = vadd.f32 %v1497_v58, %v1496_v34  ;;  %v1554_v2 = vmul.f32 %v1497_v58, %v1497_v58 }
 0x154   : > { %v1160_v4 = vpop.f32.mrf.mxu2  ;;  %v1307_v19 = vpop.f32.mrf.mxu3 }
 0x155   : > { %v1569_v29 = vadd.f32 %v1554_v2, %v1553_v17  ;;  %v1204_v63 = vadd.f32 %v1160_v4, %v1054_v1  ;;  %v1013_v27 = vpop.f32.mrf.mxu1 }
 0x156   : > { %v1055_v36 = vadd.f32 %v1013_v27, %v2519_v33 }
 0x157   : > { %v1351_v44 = vadd.f32 %v1307_v19, %v1204_v63  ;;  %v1457_v45 = vpop.f32.mrf.mxu0 }
 0x159   : > { %v1498_v0 = vadd.f32 %v1454_v43, %v1351_v44 }
 0x15b   : > { %1514 = vst [vmem:[%s2141_s7 + $0x10] sm:$0xff] %v1498_v0  ;;  %v1530_v13 = vadd.f32 %v1529_v57, %v1498_v0  ;;  %v1555_v37 = vmul.f32 %v1498_v0, %v1498_v0 }
 0x15c   : > { %v1163_v3 = vpop.f32.mrf.mxu2  ;;  %v1310_v46 = vpop.f32.mrf.mxu3 }
 0x15d   : > { %v1570_v23 = vadd.f32 %v1569_v29, %v1555_v37  ;;  %v1205_v30 = vadd.f32 %v1163_v3, %v1055_v36  ;;  %v1016_v47 = vpop.f32.mrf.mxu1 }
 0x15e   : > { %v1056_v22 = vadd.f32 %v1016_v47, %v2530_v25 }
 0x15f   : > { %v1352_v10 = vadd.f32 %v1310_v46, %v1205_v30  ;;  %v1460_v5 = vpop.f32.mrf.mxu0 }
 0x161   : > { %v1499_v32 = vadd.f32 %v1457_v45, %v1352_v10 }
 0x163   : > { %1515 = vst [vmem:[%s2141_s7 + $0x18] sm:$0xff] %v1499_v32  ;;  %v1531_v7 = vadd.f32 %v1530_v13, %v1499_v32  ;;  %v1556_v48 = vmul.f32 %v1499_v32, %v1499_v32 }
 0x164   : > { %v1166_v49 = vpop.f32.mrf.mxu2  ;;  %v1313_v16 = vpop.f32.mrf.mxu3 }
 0x165   : > { %v1571_v39 = vadd.f32 %v1570_v23, %v1556_v48  ;;  %v1206_v33 = vadd.f32 %v1166_v49, %v1056_v22  ;;  %v1019_v55 = vpop.f32.mrf.mxu1 }
 0x166   : > { %v1057_v62 = vadd.f32 %v1019_v55, %v2541_v61 }
 0x167   : > { %v1353_v14 = vadd.f32 %v1313_v16, %v1206_v33  ;;  %v1463_v50 = vpop.f32.mrf.mxu0 }
 0x169   : > { %v1500_v51 = vadd.f32 %v1460_v5, %v1353_v14 }
 0x16b   : > { %1516 = vst [vmem:[%s2141_s7 + $0x20] sm:$0xff] %v1500_v51  ;;  %v1532_v28 = vadd.f32 %v1531_v7, %v1500_v51  ;;  %v1557_v40 = vmul.f32 %v1500_v51, %v1500_v51 }
 0x16c   : > { %v1169_v20 = vpop.f32.mrf.mxu2  ;;  %v1316_v54 = vpop.f32.mrf.mxu3 }
 0x16d   : > { %v1572_v53 = vadd.f32 %v1571_v39, %v1557_v40  ;;  %v1207_v25 = vadd.f32 %v1169_v20, %v1057_v62  ;;  %v1022_v8 = vpop.f32.mrf.mxu1 }
 0x16e   : > { %v1058_v35 = vadd.f32 %v1022_v8, %v2552_v18 }
 0x16f   : > { %v1354_v52 = vadd.f32 %v1316_v54, %v1207_v25  ;;  %v1466_v11 = vpop.f32.mrf.mxu0 }
 0x171   : > { %v1501_v34 = vadd.f32 %v1463_v50, %v1354_v52 }
 0x173   : > { %1517 = vst [vmem:[%s2141_s7 + $0x28] sm:$0xff] %v1501_v34  ;;  %v1533_v24 = vadd.f32 %v1532_v28, %v1501_v34  ;;  %v1558_v60 = vmul.f32 %v1501_v34, %v1501_v34 }
 0x174   : > { %v1172_v21 = vpop.f32.mrf.mxu2  ;;  %v1319_v42 = vpop.f32.mrf.mxu3 }
 0x175   : > { %v1573_v12 = vadd.f32 %v1572_v53, %v1558_v60  ;;  %v1208_v61 = vadd.f32 %v1172_v21, %v1058_v35  ;;  %v1025_v43 = vpop.f32.mrf.mxu1 }
 0x176   : > { %v1059_v57 = vadd.f32 %v1025_v43, %v2563_v31 }
 0x177   : > { %v1355_v58 = vadd.f32 %v1319_v42, %v1208_v61  ;;  %v1469_v17 = vpop.f32.mrf.mxu0 }
 0x179   : > { %v1502_v1 = vadd.f32 %v1466_v11, %v1355_v58 }
 0x17b   : > { %1518 = vst [vmem:[%s2141_s7 + $0x30] sm:$0xff] %v1502_v1  ;;  %v1534_v2 = vadd.f32 %v1533_v24, %v1502_v1  ;;  %v1559_v4 = vmul.f32 %v1502_v1, %v1502_v1 }
 0x17c   : > { %v1175_v29 = vpop.f32.mrf.mxu2  ;;  %v1322_v19 = vpop.f32.mrf.mxu3 }
 0x17d   : > { %v1574_v63 = vadd.f32 %v1573_v12, %v1559_v4  ;;  %v1209_v18 = vadd.f32 %v1175_v29, %v1059_v57  ;;  %v1028_v27 = vpop.f32.mrf.mxu1 }
 0x17e   : > { %v1060_v36 = vadd.f32 %v1028_v27, %v2574_v38 }
 0x17f   : > { %v1356_v44 = vadd.f32 %v1322_v19, %v1209_v18  ;;  %v1472_v45 = vpop.f32.mrf.mxu0 }
 0x181   : > { %v1503_v0 = vadd.f32 %v1469_v17, %v1356_v44 }
 0x183   : > { %1519 = vst [vmem:[%s2141_s7 + $0x38] sm:$0xff] %v1503_v0  ;;  %v1535_v13 = vadd.f32 %v1534_v2, %v1503_v0  ;;  %v1560_v37 = vmul.f32 %v1503_v0, %v1503_v0 }
 0x184   : > { %v1178_v3 = vpop.f32.mrf.mxu2  ;;  %v1325_v30 = vpop.f32.mrf.mxu3 }
 0x185   : > { %v1575_v23 = vadd.f32 %v1574_v63, %v1560_v37  ;;  %v1210_v31 = vadd.f32 %v1178_v3, %v1060_v36  ;;  %v1031_v46 = vpop.f32.mrf.mxu1 }
 0x186   : > { %v1061_v32 = vadd.f32 %v1031_v46, %v2585_v26 }
 0x187   : > { %v1357_v47 = vadd.f32 %v1325_v30, %v1210_v31  ;;  %v1475_v10 = vpop.f32.mrf.mxu0 }
 0x189   : > { %v1504_v5 = vadd.f32 %v1472_v45, %v1357_v47 }
 0x18b   : > { %1520 = vst [vmem:[%s2141_s7 + $0x40] sm:$0xff] %v1504_v5  ;;  %v1536_v22 = vadd.f32 %v1535_v13, %v1504_v5  ;;  %v1561_v7 = vmul.f32 %v1504_v5, %v1504_v5 }
 0x18c   : > { %v1181_v48 = vpop.f32.mrf.mxu2  ;;  %v1328_v39 = vpop.f32.mrf.mxu3 }
 0x18d   : > { %v1576_v49 = vadd.f32 %v1575_v23, %v1561_v7  ;;  %v1211_v38 = vadd.f32 %v1181_v48, %v1061_v32  ;;  %v1034_v33 = vpop.f32.mrf.mxu1 }
 0x18e   : > { %v1062_v50 = vadd.f32 %v1034_v33, %v2596_v41 }
 0x18f   : > { %v1358_v16 = vadd.f32 %v1328_v39, %v1211_v38  ;;  %v1478_v55 = vpop.f32.mrf.mxu0 }
 0x191   : > { %v1505_v14 = vadd.f32 %v1475_v10, %v1358_v16 }
 0x193   : > { %1521 = vst [vmem:[%s2141_s7 + $0x48] sm:$0xff] %v1505_v14  ;;  %v1537_v51 = vadd.f32 %v1536_v22, %v1505_v14  ;;  %v1562_v62 = vmul.f32 %v1505_v14, %v1505_v14 }
 0x194   : > { %v1184_v28 = vpop.f32.mrf.mxu2  ;;  %v1331_v20 = vpop.f32.mrf.mxu3 }
 0x195   : > { %v1577_v40 = vadd.f32 %v1576_v49, %v1562_v62  ;;  %v1212_v26 = vadd.f32 %v1184_v28, %v1062_v50  ;;  %v1037_v53 = vpop.f32.mrf.mxu1 }
 0x196   : > { %v1063_v52 = vadd.f32 %v1037_v53, %v2608_v59 }
 0x197   : > { %v1359_v25 = vadd.f32 %v1331_v20, %v1212_v26  ;;  %v1481_v54 = vpop.f32.mrf.mxu0 }
 0x199   : > { %v1506_v8 = vadd.f32 %v1478_v55, %v1359_v25 }
 0x19b   : > { %1522 = vst [vmem:[%s2141_s7 + $0x50] sm:$0xff] %v1506_v8  ;;  %v1538_v11 = vadd.f32 %v1537_v51, %v1506_v8  ;;  %v1563_v34 = vmul.f32 %v1506_v8, %v1506_v8 }
 0x19c   : > { %v1187_v35 = vpop.f32.mrf.mxu2  ;;  %v1334_v60 = vpop.f32.mrf.mxu3 }
 0x19d   : > { %v1578_v24 = vadd.f32 %v1577_v40, %v1563_v34  ;;  %v1213_v41 = vadd.f32 %v1187_v35, %v1063_v52  ;;  %v1040_v21 = vpop.f32.mrf.mxu1 }
 0x19e   : > { %v1064_v43 = vadd.f32 %v1040_v21, %v2619_v9 }
 0x19f   : > { %v1360_v12 = vadd.f32 %v1334_v60, %v1213_v41  ;;  %v1484_v61 = vpop.f32.mrf.mxu0 }
 0x1a1   : > { %v1507_v42 = vadd.f32 %v1481_v54, %v1360_v12 }
 0x1a3   : > { %1523 = vst [vmem:[%s2141_s7 + $0x58] sm:$0xff] %v1507_v42  ;;  %v1539_v58 = vadd.f32 %v1538_v11, %v1507_v42  ;;  %v1564_v17 = vmul.f32 %v1507_v42, %v1507_v42  ;;  %v1528_v11 = vld [vmem:[%s2136_s4] sm:$0x1] }
 0x1a4   : > { %v1190_v1 = vpop.f32.mrf.mxu2  ;;  %v1337_v2 = vpop.f32.mrf.mxu3 }
 0x1a5   : > { %v1579_v57 = vadd.f32 %v1578_v24, %v1564_v17  ;;  %v1214_v59 = vadd.f32 %v1190_v1, %v1064_v43  ;;  %v1043_v4 = vpop.f32.mrf.mxu1  ;;  %v1552_v24 = vld [vmem:[%s2136_s4 + $0x1] sm:$0x1] }
 0x1a6   : > { %v1065_v19 = vadd.f32 %v1043_v4, %v2632_v15 }
 0x1a7   : > { %v1361_v29 = vadd.f32 %v1337_v2, %v1214_v59  ;;  %v1487_v18 = vpop.f32.mrf.mxu0 }
 0x1a9   : > { %v1508_v63 = vadd.f32 %v1484_v61, %v1361_v29 }
 0x1ab   : > { %1524 = vst [vmem:[%s2141_s7 + $0x60] sm:$0xff] %v1508_v63  ;;  %v1540_v27 = vadd.f32 %v1539_v58, %v1508_v63  ;;  %v1565_v44 = vmul.f32 %v1508_v63, %v1508_v63 }
 0x1ac   : > { %v1193_v45 = vpop.f32.mrf.mxu2  ;;  %v1340_v36 = vpop.f32.mrf.mxu3 }
 0x1ad   : > { %v1580_v0 = vadd.f32 %v1579_v57, %v1565_v44  ;;  %v1215_v9 = vadd.f32 %v1193_v45, %v1065_v19  ;;  %v1046_v13 = vpop.f32.mrf.mxu1 }
 0x1ae   : > { %v1066_v23 = vadd.f32 %v1046_v13, %v2642_v56 }
 0x1af   : > { %v1362_v37 = vadd.f32 %v1340_v36, %v1215_v9  ;;  %v1490_v47 = vpop.f32.mrf.mxu0 }
 0x1b1   : > { %v1509_v3 = vadd.f32 %v1487_v18, %v1362_v37 }
 0x1b3   : > { %1525 = vst [vmem:[%s2141_s7 + $0x68] sm:$0xff] %v1509_v3  ;;  %v1541_v31 = vadd.f32 %v1540_v27, %v1509_v3  ;;  %v1566_v30 = vmul.f32 %v1509_v3, %v1509_v3 }
 0x1b4   : > { %v1196_v46 = vpop.f32.mrf.mxu2  ;;  %v1343_v5 = vpop.f32.mrf.mxu3 }
 0x1b5   : > { %v1581_v10 = vadd.f32 %v1580_v0, %v1566_v30  ;;  %v1216_v15 = vadd.f32 %v1196_v46, %v1066_v23  ;;  %v1049_v22 = vpop.f32.mrf.mxu1 }
 0x1b6   : > { %v1067_v48 = vadd.f32 %v1049_v22, %v2649_v6 }
 0x1b7   : > { %v1363_v32 = vadd.f32 %v1343_v5, %v1216_v15  ;;  %v1493_v55 = vpop.f32.mrf.mxu0 }
 0x1b9   : > { %v1510_v7 = vadd.f32 %v1490_v47, %v1363_v32 }
 0x1bb   : > { %1526 = vst [vmem:[%s2141_s7 + $0x70] sm:$0xff] %v1510_v7  ;;  %v1542_v49 = vadd.f32 %v1541_v31, %v1510_v7  ;;  %v1567_v38 = vmul.f32 %v1510_v7, %v1510_v7 }
 0x1bc   : > { %v1199_v39 = vpop.f32.mrf.mxu2  ;;  %v1346_v16 = vpop.f32.mrf.mxu3 }
 0x1bd   : > { %v1582_v33 = vadd.f32 %v1581_v10, %v1567_v38  ;;  %v1217_v56 = vadd.f32 %v1199_v39, %v1067_v48 }
 0x1bf   : > { %v1364_v14 = vadd.f32 %v1346_v16, %v1217_v56 }
 0x1c1   : > { %v1511_v50 = vadd.f32 %v1493_v55, %v1364_v14 }
 0x1c3   : > { %1527 = vst [vmem:[%s2141_s7 + $0x78] sm:$0xff] %v1511_v50  ;;  %v1543_v51 = vadd.f32 %v1542_v49, %v1511_v50  ;;  %v1568_v62 = vmul.f32 %v1511_v50, %v1511_v50 }
 0x1c5   : > { %v1544_v28 = vrot.slane %v1543_v51, 4  ;;  %v1583_v40 = vadd.f32 %v1582_v33, %v1568_v62 }
 0x1c7   : > { %v1545_v26 = vadd.f32 %v1544_v28, %v1543_v51  ;;  %v1584_v6 = vrot.slane %v1583_v40, 4 }
 0x1c9   : > { %v1546_v20 = vrot.slane %v1545_v26, 2  ;;  %v1585_v53 = vadd.f32 %v1584_v6, %v1583_v40 }
 0x1cb   : > { %v1547_v25 = vadd.f32 %v1546_v20, %v1545_v26  ;;  %v1586_v54 = vrot.slane %v1585_v53, 2 }
 0x1cd   : > { %v1548_v8 = vrot.slane %v1547_v25, 1  ;;  %v1587_v52 = vadd.f32 %v1586_v54, %v1585_v53 }
 0x1cf   : > { %v1549_v34 = vadd.f32 %v1548_v8, %v1547_v25  ;;  %v1588_v35 = vrot.slane %v1587_v52, 1 }
 0x1d1   : > { %v1550_v41 = vadd.f32 %v1549_v34, %v1528_v11  ;;  %v1589_v60 = vadd.f32 %v1588_v35, %v1587_v52 }
 0x1d3   : > { %1551 = vst [vmem:[%s2136_s4] sm:$0x1] %v1550_v41  ;;  %v1590_v21 = vadd.f32 %v1589_v60, %v1552_v24 }
 0x1d5   : > { %1591 = vst [vmem:[%s2136_s4 + $0x1] sm:$0x1] %v1590_v21 }
 0x1d6 PF: > { %s14_s16 = sadd.s32 1, %s2074_s16   ;;  %s2715_s12 = smov %s2066_s14 }
 0x1d7   : > { %p11_p8 = scmp.ge.s32.totalorder %s14_s16, 6   ;;  %s2716_s13 = smov %s2070_s15 }
 0x1d8   : > { %s2717_s14 = smov %s2720_s17  ;;  %s2718_s15 = smov %s2724_s18 }
 0x1d9   :  { %13 = sbr.rel (!%p11_p8) target bundleno = 3 (0x3), region = 85 }

// kernel: down_block.6
= control target key start
LH: loop header
LB: loop body
LE: loop exit
PB: predicated region body
PF: predicated region fallthrough
CT: control target
= control target key end

     0   :  { %s1820_s12 = smov 0   ;;  %s1822_s13 = smov 0   ;;  %s2721_s0 = inlined_call_operand.vmem [shape: f32[2,18,18,128], index: 0, kind: input, shape index: {}]   ;;  %s2722_s1 = inlined_call_operand.vmem [shape: f32[9,128,128], index: 1, kind: input, shape index: {}]   ;;  %s2723_s2 = inlined_call_operand.vmem [shape: f32[2,16,16,128], index: 2, kind: output, shape index: {0}]   ;;  %s2724_s3 = inlined_call_operand.vmem [shape: f32[2,2,128], index: 3, kind: output, shape index: {1}]  }
   0x1   :  { %s1824_s14 = smov 0   ;;  %s1826_s15 = smov 0  }
   0x2   :  { %s1828_s16 = smov 0  }
   0x3 LB: > { %s23_s17 = sadd.s32 1, %s1789_s14  ;;  %s26_s18 = sadd.s32 1, %s1793_s15  ;;  %s1797_s16 = sphi %s1828_s16, %s14_s16   ;;  %s1793_s15 = sphi %s1826_s15, %s2728_s15   ;;  %s1789_s14 = sphi %s1824_s14, %s2727_s14   ;;  %s1785_s13 = sphi %s1822_s13, %s2726_s13   ;;  %s1781_s12 = sphi %s1820_s12, %s2725_s12  }
   0x4   : > { %p24_p0 = scmp.ge.s32.totalorder %s23_s17, 2  ;;  %p1429_p1 = scmp.ge.s32.totalorder %s1797_s16, 1 }
   0x5   : > { %p154_p2 = scmp.lt.s32.totalorder %s1797_s16, 5 }
   0x6   : > { %s2730_s17 = smov (%p24_p0, %s23_s17), 0  ;;  %s2732_s18 = smov (!%p24_p0, %s26_s18), %s1793_s15 }
   0x7   : > { %p155_p3 = pnand %p1429_p1, %p154_p2  ;;  %p28_p4 = scmp.ge.s32.totalorder %s2732_s18, 2 }
   0x8   : > { %p187_p5 = scmp.lt.s32.totalorder (!%p155_p3), %s1785_s13, 1  ;;  %s1431_s19 = sshll.u32 (!%p155_p3), %s1781_s12, 3 }
   0x9   : > { %s2734_s18 = smov (%p28_p4, %s2732_s18), 0  ;;  %158 = sbr.rel (%p155_p3) target bundleno = 501 (0x1f5), region = 28 }
   0xa   : > { %p195_p6 = scmp.lt.s32.totalorder (!%p155_p3), %s1431_s19, 15  ;;  %p1436_p7 = scmp.ne.s32.totalorder (!%p155_p3), %s1781_s12, 0 }
   0xe   : > { %s2736_s13 = smov (!%p187_p5, %s1785_s13), 1  ;;  %s2738_s19 = smov (!%p195_p6, %s1431_s19), 15 }
   0xf   : > { %s1717_s20 = smul.u32 432, %s2736_s13  ;;  %s1433_s21 = sshll.u32 %s2736_s13, 5 }
  0x10   : > { %s1432_s22 = sshll.u32 %s2738_s19, 1  ;;  %s1435_s23 = sshll.u32 %s2736_s13, 1 }
  0x11   : > { %s1856_s26 = scalar_lea.vmem %s2721_s0, %s1717_s20  ;;  %s199_s27 = sadd.s32 %s1433_s21, %s1432_s22 }
  0x12   : > { %s1434_s28 = sshll.u32 %s199_s27, 3  ;;  %s1861_s4 = scalar_lea.vmem %s2724_s3, %s1435_s23 }
  0x13   : > { %s1866_s7 = scalar_lea.vmem %s2723_s2, %s1434_s28  ;;  %210 = sbr.rel (%p1436_p7) target bundleno = 26 (0x1a), region = 32 }
  0x18   : > { %v1799_v0 = vmov 0.0  }
  0x19   : > { %211 = vst [vmem:[%s1861_s4] sm:$0x3] %v1799_v0 }
  0x1a PF: > { %v1454_v1 = vld [vmem:[%s2722_s1 + $0xf8] sm:$0xff]  ;;  %v1453_v2 = vld [vmem:[%s2722_s1 + $0xf0] sm:$0xff]  ;;  %v1452_v3 = vld [vmem:[%s2722_s1 + $0xe8] sm:$0xff]  ;;  %s1438_s22 = smul.u32 192, %s1781_s12 }
  0x1b   : > { %1669 = vmatpush.msra.mxu1 %v1454_v1  ;;  %1670 = vmatpush.msra.mxu2 %v1454_v1  ;;  %v1451_v4 = vld [vmem:[%s2722_s1 + $0xe0] sm:$0xff]  ;;  %v1450_v5 = vld [vmem:[%s2722_s1 + $0xd8] sm:$0xff]  ;;  %v1449_v6 = vld [vmem:[%s2722_s1 + $0xd0] sm:$0xff] }
  0x1c   : > { %1671 = vmatpush.msra.mxu3 %v1454_v1  ;;  %280 = vmatpush.msra.mxu0 %v1454_v1  ;;  %v1448_v7 = vld [vmem:[%s2722_s1 + $0xc8] sm:$0xff]  ;;  %v1447_v8 = vld [vmem:[%s2722_s1 + $0xc0] sm:$0xff]  ;;  %v1446_v9 = vld [vmem:[%s2722_s1 + $0xb8] sm:$0xff]  ;;  %s1917_s28 = scalar_lea.vmem %s1856_s26, %s1438_s22 }
  0x1d   : > { %1672 = vmatpush.msra.mxu1 %v1453_v2  ;;  %1673 = vmatpush.msra.mxu2 %v1453_v2  ;;  %v1445_v10 = vld [vmem:[%s2722_s1 + $0xb0] sm:$0xff]  ;;  %v1444_v11 = vld [vmem:[%s2722_s1 + $0xa8] sm:$0xff]  ;;  %v1443_v12 = vld [vmem:[%s2722_s1 + $0xa0] sm:$0xff] }
  0x1e   : > { %1674 = vmatpush.msra.mxu3 %v1453_v2  ;;  %281 = vmatpush.msra.mxu0 %v1453_v2  ;;  %v1442_v13 = vld [vmem:[%s2722_s1 + $0x98] sm:$0xff]  ;;  %v1441_v14 = vld [vmem:[%s2722_s1 + $0x90] sm:$0xff]  ;;  %v1440_v15 = vld [vmem:[%s2722_s1 + $0x88] sm:$0xff] }
  0x1f   : > { %1675 = vmatpush.msra.mxu1 %v1452_v3  ;;  %1676 = vmatpush.msra.mxu2 %v1452_v3  ;;  %v1439_v16 = vld [vmem:[%s2722_s1 + $0x80] sm:$0xff]  ;;  %v1923_v17 = vld [vmem:[%s1917_s28 + $0x31] sm:$0xff]  ;;  %v1468_v25 = vld [vmem:[%s2722_s1 + $0x168] sm:$0xff] }
  0x20   : > { %1677 = vmatpush.msra.mxu3 %v1452_v3  ;;  %282 = vmatpush.msra.mxu0 %v1452_v3  ;;  %v1926_v18 = vld [vmem:[%s1917_s28 + $0x61] sm:$0xff]  ;;  %v1470_v19 = vld [vmem:[%s2722_s1 + $0x178] sm:$0xff]  ;;  %v1469_v22 = vld [vmem:[%s2722_s1 + $0x170] sm:$0xff] }
  0x21   : > { %1678 = vmatpush.msra.mxu1 %v1451_v4  ;;  %1679 = vmatpush.msra.mxu2 %v1451_v4  ;;  %v246_v20 = vld [vmem:[%s2722_s1 + $0x78] sm:$0xff]  ;;  %v245_v24 = vld [vmem:[%s2722_s1 + $0x70] sm:$0xff]  ;;  %v244_v27 = vld [vmem:[%s2722_s1 + $0x68] sm:$0xff] }
  0x22   : > { %1680 = vmatpush.msra.mxu3 %v1451_v4  ;;  %283 = vmatpush.msra.mxu0 %v1451_v4  ;;  %v1935_v21 = vld [vmem:[%s1917_s28 + $0x91] sm:$0xff]  ;;  %v247_v28 = vld [vmem:[%s1917_s28 + $0x1] sm:$0xff]  ;;  %v1969_v32 = vld [vmem:[%s1917_s28 + $0x69] sm:$0xff] }
  0x23   : > { %1681 = vmatpush.msra.mxu1 %v1450_v5  ;;  %1682 = vmatpush.msra.mxu2 %v1450_v5  ;;  %v1504_v23 = vld [vmem:[%s2722_s1 + $0x1f8] sm:$0xff]  ;;  %v1503_v26 = vld [vmem:[%s2722_s1 + $0x1f0] sm:$0xff]  ;;  %v1467_v29 = vld [vmem:[%s2722_s1 + $0x160] sm:$0xff] }
  0x24   : > { %1683 = vmatpush.msra.mxu3 %v1450_v5  ;;  %284 = vmatpush.msra.mxu0 %v1450_v5  ;;  %v1502_v30 = vld [vmem:[%s2722_s1 + $0x1e8] sm:$0xff]  ;;  %v243_v31 = vld [vmem:[%s2722_s1 + $0x60] sm:$0xff]  ;;  %v1466_v34 = vld [vmem:[%s2722_s1 + $0x158] sm:$0xff] }
  0x25   : > { %1684 = vmatpush.msra.mxu1 %v1449_v6  ;;  %1685 = vmatpush.msra.mxu2 %v1449_v6  ;;  %v1972_v33 = vld [vmem:[%s1917_s28 + $0x39] sm:$0xff]  ;;  %v1465_v38 = vld [vmem:[%s2722_s1 + $0x150] sm:$0xff]  ;;  %v1464_v42 = vld [vmem:[%s2722_s1 + $0x148] sm:$0xff] }
  0x26   : > { %1686 = vmatpush.msra.mxu3 %v1449_v6  ;;  %285 = vmatpush.msra.mxu0 %v1449_v6  ;;  %v1501_v35 = vld [vmem:[%s2722_s1 + $0x1e0] sm:$0xff]  ;;  %v242_v36 = vld [vmem:[%s2722_s1 + $0x58] sm:$0xff]  ;;  %v241_v41 = vld [vmem:[%s2722_s1 + $0x50] sm:$0xff] }
  0x27   : > { %1687 = vmatpush.msra.mxu1 %v1448_v7  ;;  %1688 = vmatpush.msra.mxu2 %v1448_v7  ;;  %v1985_v37 = vld [vmem:[%s1917_s28 + $0x99] sm:$0xff]  ;;  %v1499_v43 = vld [vmem:[%s2722_s1 + $0x1d0] sm:$0xff]  ;;  %v240_v45 = vld [vmem:[%s2722_s1 + $0x48] sm:$0xff] }
  0x28   : > { %1689 = vmatpush.msra.mxu3 %v1448_v7  ;;  %286 = vmatpush.msra.mxu0 %v1448_v7  ;;  %v1500_v39 = vld [vmem:[%s2722_s1 + $0x1d8] sm:$0xff]  ;;  %v1535_v44 = vld [vmem:[%s2722_s1 + $0x270] sm:$0xff]  ;;  %v1463_v46 = vld [vmem:[%s2722_s1 + $0x140] sm:$0xff] }
  0x29   : > { %1690 = vmatpush.msra.mxu1 %v1447_v8  ;;  %1691 = vmatpush.msra.mxu2 %v1447_v8  ;;  %v1536_v40 = vld [vmem:[%s2722_s1 + $0x278] sm:$0xff]  ;;  %v1498_v47 = vld [vmem:[%s2722_s1 + $0x1c8] sm:$0xff]  ;;  %v239_v49 = vld [vmem:[%s2722_s1 + $0x40] sm:$0xff] }
  0x2a   : > { %1692 = vmatpush.msra.mxu3 %v1447_v8  ;;  %287 = vmatpush.msra.mxu0 %v1447_v8  ;;  %v1534_v48 = vld [vmem:[%s2722_s1 + $0x268] sm:$0xff]  ;;  %v2026_v50 = vld [vmem:[%s1917_s28 + $0x79] sm:$0xff]  ;;  %v1461_v58 = vld [vmem:[%s2722_s1 + $0x130] sm:$0xff] }
  0x2b   : > { %1693 = vmatpush.msra.mxu1 %v1446_v9  ;;  %1694 = vmatpush.msra.mxu2 %v1446_v9  ;;  %v2029_v51 = vld [vmem:[%s1917_s28 + $0x49] sm:$0xff]  ;;  %v1462_v52 = vld [vmem:[%s2722_s1 + $0x138] sm:$0xff]  ;;  %v1497_v53 = vld [vmem:[%s2722_s1 + $0x1c0] sm:$0xff] }
  0x2c   : > { %1695 = vmatpush.msra.mxu3 %v1446_v9  ;;  %288 = vmatpush.msra.mxu0 %v1446_v9  ;;  %v1533_v54 = vld [vmem:[%s2722_s1 + $0x260] sm:$0xff]  ;;  %v238_v55 = vld [vmem:[%s2722_s1 + $0x38] sm:$0xff]  ;;  %v248_v56 = vld [vmem:[%s1917_s28 + $0x9] sm:$0xff] }
  0x2d   : > { %1696 = vmatpush.msra.mxu1 %v1445_v10  ;;  %1697 = vmatpush.msra.mxu2 %v1445_v10  ;;  %v2047_v57 = vld [vmem:[%s1917_s28 + $0xa9] sm:$0xff]  ;;  %v1496_v59 = vld [vmem:[%s2722_s1 + $0x1b8] sm:$0xff]  ;;  %v1459_v2 = vld [vmem:[%s2722_s1 + $0x120] sm:$0xff] }
  0x2e   : > { %1698 = vmatpush.msra.mxu3 %v1445_v10  ;;  %289 = vmatpush.msra.mxu0 %v1445_v10  ;;  %v1532_v60 = vld [vmem:[%s2722_s1 + $0x258] sm:$0xff]  ;;  %v237_v61 = vld [vmem:[%s2722_s1 + $0x30] sm:$0xff]  ;;  %v1460_v62 = vld [vmem:[%s2722_s1 + $0x128] sm:$0xff] }
  0x2f   : > { %1699 = vmatpush.msra.mxu1 %v1444_v11  ;;  %1700 = vmatpush.msra.mxu2 %v1444_v11  ;;  %v1495_v63 = vld [vmem:[%s2722_s1 + $0x1b0] sm:$0xff]  ;;  %v236_v1 = vld [vmem:[%s2722_s1 + $0x28] sm:$0xff]  ;;  %v235_v5 = vld [vmem:[%s2722_s1 + $0x20] sm:$0xff] }
  0x30   : > { %1701 = vmatpush.msra.mxu3 %v1444_v11  ;;  %290 = vmatpush.msra.mxu0 %v1444_v11  ;;  %v1531_v0 = vld [vmem:[%s2722_s1 + $0x250] sm:$0xff]  ;;  %v1494_v3 = vld [vmem:[%s2722_s1 + $0x1a8] sm:$0xff]  ;;  %v1458_v8 = vld [vmem:[%s2722_s1 + $0x118] sm:$0xff] }
  0x31   : > { %1702 = vmatpush.msra.mxu1 %v1443_v12  ;;  %1703 = vmatpush.msra.mxu2 %v1443_v12  ;;  %v1530_v4 = vld [vmem:[%s2722_s1 + $0x248] sm:$0xff]  ;;  %v2090_v7 = vld [vmem:[%s1917_s28 + $0x51] sm:$0xff]  ;;  %v1493_v9 = vld [vmem:[%s2722_s1 + $0x1a0] sm:$0xff] }
  0x32   : > { %1704 = vmatpush.msra.mxu3 %v1443_v12  ;;  %291 = vmatpush.msra.mxu0 %v1443_v12  ;;  %v2087_v6 = vld [vmem:[%s1917_s28 + $0x81] sm:$0xff]  ;;  %v234_v11 = vld [vmem:[%s2722_s1 + $0x18] sm:$0xff] }
  0x33   : > { %1705 = vmatpush.msra.mxu1 %v1442_v13  ;;  %1706 = vmatpush.msra.mxu2 %v1442_v13  ;;  %v1529_v10 = vld [vmem:[%s2722_s1 + $0x240] sm:$0xff] }
  0x34   : > { %1707 = vmatpush.msra.mxu3 %v1442_v13  ;;  %292 = vmatpush.msra.mxu0 %v1442_v13  ;;  %v2106_v12 = vld [vmem:[%s1917_s28 + $0x19] sm:$0xff]  ;;  %v2110_v13 = vld [vmem:[%s1917_s28 + $0xb1] sm:$0xff] }
  0x35   : > { %1708 = vmatpush.msra.mxu1 %v1441_v14  ;;  %1709 = vmatpush.msra.mxu2 %v1441_v14 }
  0x36   : > { %1710 = vmatpush.msra.mxu3 %v1441_v14  ;;  %293 = vmatpush.msra.mxu0 %v1441_v14  ;;  %v1457_v14 = vld [vmem:[%s2722_s1 + $0x110] sm:$0xff] }
  0x37   : > { %1711 = vmatpush.msra.mxu1 %v1440_v15  ;;  %1712 = vmatpush.msra.mxu2 %v1440_v15 }
  0x38   : > { %1713 = vmatpush.msra.mxu3 %v1440_v15  ;;  %294 = vmatpush.msra.mxu0 %v1440_v15  ;;  %v1492_v15 = vld [vmem:[%s2722_s1 + $0x198] sm:$0xff] }
  0x39   : > { %1714 = vmatpush.msra.mxu1 %v1439_v16  ;;  %1715 = vmatpush.msra.mxu2 %v1439_v16 }
  0x3a   : > { %308 = vmatmul.f32.vlgmr.msra.gmra.mxu1 %v1923_v17  ;;  %320 = vmatmul.f32.vlgmr.msra.gmra.mxu2 %v1926_v18 }
  0x3b   : > { %443 = vmatpush.msrb.mxu2 %v1470_v19  ;;  %1716 = vmatpush.msra.mxu3 %v1439_v16  ;;  %v233_v19 = vld [vmem:[%s2722_s1 + $0x10] sm:$0xff] }
  0x3c   : > { %345 = vmatpush.msrb.mxu1 %v246_v20  ;;  %332 = vmatmul.f32.vlgmr.msra.gmra.mxu3 %v1935_v21  ;;  %v1456_v20 = vld [vmem:[%s2722_s1 + $0x108] sm:$0xff] }
  0x3d   : > { %444 = vmatpush.msrb.mxu2 %v1469_v22  ;;  %560 = vmatpush.msrb.mxu3 %v1504_v23  ;;  %v1491_v22 = vld [vmem:[%s2722_s1 + $0x190] sm:$0xff] }
  0x3e   : > { %346 = vmatpush.msrb.mxu1 %v245_v24  ;;  %295 = vmatpush.msra.mxu0 %v1439_v16  ;;  %v1528_v16 = vld [vmem:[%s2722_s1 + $0x238] sm:$0xff]  ;;  %v1527_v23 = vld [vmem:[%s2722_s1 + $0x230] sm:$0xff]  ;;  %v232_v24 = vld [vmem:[%s2722_s1 + $0x8] sm:$0xff] }
  0x3f   : > { %445 = vmatpush.msrb.mxu2 %v1468_v25  ;;  %561 = vmatpush.msrb.mxu3 %v1503_v26  ;;  %v1455_v25 = vld [vmem:[%s2722_s1 + $0x100] sm:$0xff]  ;;  %v1490_v26 = vld [vmem:[%s2722_s1 + $0x188] sm:$0xff] }
  0x40   : > { %347 = vmatpush.msrb.mxu1 %v244_v27  ;;  %296 = vmatmul.f32.vlgmr.msra.gmra.mxu0 %v247_v28  ;;  %v1526_v27 = vld [vmem:[%s2722_s1 + $0x228] sm:$0xff]  ;;  %v231_v28 = vld [vmem:[%s2722_s1] sm:$0xff] }
  0x41   : > { %446 = vmatpush.msrb.mxu2 %v1467_v29  ;;  %562 = vmatpush.msrb.mxu3 %v1502_v30  ;;  %v410_v29 = vld [vmem:[%s1917_s28 + $0x2] sm:$0xff] }
  0x42   : > { %348 = vmatpush.msrb.mxu1 %v243_v31  ;;  %323 = vmatmul.f32.gmra.mxu2 %v1969_v32  ;;  %v215_v30 = vld [vmem:[%s1917_s28] sm:$0xff] }
  0x43   : > { %311 = vmatmul.f32.gmra.mxu1 %v1972_v33  ;;  %447 = vmatpush.msrb.mxu2 %v1466_v34  ;;  %v1489_v31 = vld [vmem:[%s2722_s1 + $0x180] sm:$0xff] }
  0x44   : > { %563 = vmatpush.msrb.mxu3 %v1501_v35  ;;  %349 = vmatpush.msrb.mxu1 %v242_v36  ;;  %v1525_v34 = vld [vmem:[%s2722_s1 + $0x220] sm:$0xff]  ;;  %v1602_v35 = vld [vmem:[%s2722_s1 + $0x378] sm:$0xff] }
  0x45   : > { %335 = vmatmul.f32.gmra.mxu3 %v1985_v37  ;;  %448 = vmatpush.msrb.mxu2 %v1465_v38  ;;  %v2162_v36 = vld [vmem:[%s1917_s28 + $0x21] sm:$0xff]  ;;  %v1473_v38 = vld [vmem:[%s1917_s28 + $0x18] sm:$0xff] }
  0x46   : > { %564 = vmatpush.msrb.mxu3 %v1500_v39  ;;  %674 = vmatpush.msrb.mxu0 %v1536_v40  ;;  %v1524_v39 = vld [vmem:[%s2722_s1 + $0x218] sm:$0xff] }
  0x47   : > { %350 = vmatpush.msrb.mxu1 %v241_v41  ;;  %449 = vmatpush.msrb.mxu2 %v1464_v42  ;;  %v1634_v40 = vld [vmem:[%s2722_s1 + $0x3f8] sm:$0xff]  ;;  %v1601_v42 = vld [vmem:[%s2722_s1 + $0x370] sm:$0xff] }
  0x48   : > { %565 = vmatpush.msrb.mxu3 %v1499_v43  ;;  %675 = vmatpush.msrb.mxu0 %v1535_v44  ;;  %v1568_v41 = vld [vmem:[%s2722_s1 + $0x2f8] sm:$0xff]  ;;  %v1523_v43 = vld [vmem:[%s2722_s1 + $0x210] sm:$0xff] }
  0x49   : > { %351 = vmatpush.msrb.mxu1 %v240_v45  ;;  %450 = vmatpush.msrb.mxu2 %v1463_v46  ;;  %v1633_v44 = vld [vmem:[%s2722_s1 + $0x3f0] sm:$0xff]  ;;  %v1600_v46 = vld [vmem:[%s2722_s1 + $0x368] sm:$0xff] }
  0x4a   : > { %566 = vmatpush.msrb.mxu3 %v1498_v47  ;;  %676 = vmatpush.msrb.mxu0 %v1534_v48  ;;  %v1567_v45 = vld [vmem:[%s2722_s1 + $0x2f0] sm:$0xff]  ;;  %v1522_v47 = vld [vmem:[%s2722_s1 + $0x208] sm:$0xff] }
  0x4b   : > { %352 = vmatpush.msrb.mxu1 %v239_v49  ;;  %326 = vmatmul.f32.gmra.mxu2 %v2026_v50  ;;  %v411_v48 = vld [vmem:[%s1917_s28 + $0xa] sm:$0xff] }
  0x4c   : > { %314 = vmatmul.f32.gmra.mxu1 %v2029_v51  ;;  %451 = vmatpush.msrb.mxu2 %v1462_v52  ;;  %v216_v49 = vld [vmem:[%s1917_s28 + $0x8] sm:$0xff] }
  0x4d   : > { %567 = vmatpush.msrb.mxu3 %v1497_v53  ;;  %677 = vmatpush.msrb.mxu0 %v1533_v54  ;;  %v1632_v52 = vld [vmem:[%s2722_s1 + $0x3e8] sm:$0xff]  ;;  %v1521_v53 = vld [vmem:[%s2722_s1 + $0x200] sm:$0xff] }
  0x4e   : > { %353 = vmatpush.msrb.mxu1 %v238_v55  ;;  %299 = vmatmul.f32.gmra.mxu0 %v248_v56  ;;  %v1566_v54 = vld [vmem:[%s2722_s1 + $0x2e8] sm:$0xff]  ;;  %v1474_v55 = vld [vmem:[%s1917_s28 + $0x20] sm:$0xff]  ;;  %v1666_v56 = vld [vmem:[%s2722_s1 + $0x478] sm:$0xff] }
  0x4f   : > { %338 = vmatmul.f32.gmra.mxu3 %v2047_v57  ;;  %452 = vmatpush.msrb.mxu2 %v1461_v58  ;;  %v1599_v58 = vld [vmem:[%s2722_s1 + $0x360] sm:$0xff] }
  0x50   : > { %568 = vmatpush.msrb.mxu3 %v1496_v59  ;;  %678 = vmatpush.msrb.mxu0 %v1532_v60  ;;  %v1631_v59 = vld [vmem:[%s2722_s1 + $0x3e0] sm:$0xff] }
  0x51   : > { %354 = vmatpush.msrb.mxu1 %v237_v61  ;;  %453 = vmatpush.msrb.mxu2 %v1460_v62  ;;  %v1565_v60 = vld [vmem:[%s2722_s1 + $0x2e0] sm:$0xff]  ;;  %v1665_v61 = vld [vmem:[%s2722_s1 + $0x470] sm:$0xff]  ;;  %v1598_v62 = vld [vmem:[%s2722_s1 + $0x358] sm:$0xff] }
  0x52   : > { %569 = vmatpush.msrb.mxu3 %v1495_v63  ;;  %679 = vmatpush.msrb.mxu0 %v1531_v0  ;;  %v1630_v63 = vld [vmem:[%s2722_s1 + $0x3d8] sm:$0xff] }
  0x53   : > { %355 = vmatpush.msrb.mxu1 %v236_v1  ;;  %454 = vmatpush.msrb.mxu2 %v1459_v2  ;;  %v1564_v0 = vld [vmem:[%s2722_s1 + $0x2d8] sm:$0xff]  ;;  %v1664_v2 = vld [vmem:[%s2722_s1 + $0x468] sm:$0xff] }
  0x54   : > { %570 = vmatpush.msrb.mxu3 %v1494_v3  ;;  %680 = vmatpush.msrb.mxu0 %v1530_v4  ;;  %v2231_v1 = vld [vmem:[%s1917_s28 + $0x1a] sm:$0xff]  ;;  %v1597_v3 = vld [vmem:[%s2722_s1 + $0x350] sm:$0xff] }
  0x55   : > { %356 = vmatpush.msrb.mxu1 %v235_v5  ;;  %329 = vmatmul.f32.gmra.mxu2 %v2087_v6  ;;  %v1663_v4 = vld [vmem:[%s2722_s1 + $0x460] sm:$0xff]  ;;  %v1629_v5 = vld [vmem:[%s2722_s1 + $0x3d0] sm:$0xff] }
  0x56   : > { %317 = vmatmul.f32.gmra.mxu1 %v2090_v7  ;;  %455 = vmatpush.msrb.mxu2 %v1458_v8  ;;  %v2247_v8 = vld [vmem:[%s1917_s28 + $0x30] sm:$0xff] }
  0x57   : > { %571 = vmatpush.msrb.mxu3 %v1493_v9  ;;  %681 = vmatpush.msrb.mxu0 %v1529_v10  ;;  %v1662_v9 = vld [vmem:[%s2722_s1 + $0x458] sm:$0xff]  ;;  %v1563_v10 = vld [vmem:[%s2722_s1 + $0x2d0] sm:$0xff] }
  0x58   : > { %357 = vmatpush.msrb.mxu1 %v234_v11  ;;  %302 = vmatmul.f32.gmra.mxu0 %v2106_v12  ;;  %v1596_v11 = vld [vmem:[%s2722_s1 + $0x348] sm:$0xff] }
  0x59   : > { %341 = vmatmul.f32.gmra.mxu3 %v2110_v13  ;;  %456 = vmatpush.msrb.mxu2 %v1457_v14  ;;  %v1661_v14 = vld [vmem:[%s2722_s1 + $0x450] sm:$0xff] }
  0x5a   : > { %572 = vmatpush.msrb.mxu3 %v1492_v15  ;;  %682 = vmatpush.msrb.mxu0 %v1528_v16  ;;  %v1562_v15 = vld [vmem:[%s2722_s1 + $0x2c8] sm:$0xff] }
  0x5b   : > { %358 = vmatpush.msrb.mxu1 %v233_v19  ;;  %457 = vmatpush.msrb.mxu2 %v1456_v20  ;;  %v2270_v16 = vld [vmem:[%s1917_s28 + $0x22] sm:$0xff]  ;;  %v2274_v19 = vld [vmem:[%s1917_s28 + $0x38] sm:$0xff] }
  0x5c   : > { %573 = vmatpush.msrb.mxu3 %v1491_v22  ;;  %683 = vmatpush.msrb.mxu0 %v1527_v23  ;;  %v1595_v20 = vld [vmem:[%s2722_s1 + $0x340] sm:$0xff]  ;;  %v1660_v23 = vld [vmem:[%s2722_s1 + $0x448] sm:$0xff] }
  0x5d   : > { %359 = vmatpush.msrb.mxu1 %v232_v24  ;;  %458 = vmatpush.msrb.mxu2 %v1455_v25  ;;  %v1627_v22 = vld [vmem:[%s2722_s1 + $0x3c0] sm:$0xff]  ;;  %v2291_v25 = vld [vmem:[%s1917_s28 + $0x32] sm:$0xff] }
  0x5e   : > { %574 = vmatpush.msrb.mxu3 %v1490_v26  ;;  %684 = vmatpush.msrb.mxu0 %v1526_v27  ;;  %v1561_v24 = vld [vmem:[%s2722_s1 + $0x2c0] sm:$0xff]  ;;  %v2295_v26 = vld [vmem:[%s1917_s28 + $0x48] sm:$0xff]  ;;  %v1594_v27 = vld [vmem:[%s2722_s1 + $0x338] sm:$0xff] }
  0x5f   : > { %360 = vmatpush.msrb.mxu1 %v231_v28  ;;  %459 = vmatmul.f32.vlgmr.msrb.gmra.mxu2 %v410_v29  ;;  %v1626_v28 = vld [vmem:[%s2722_s1 + $0x3b8] sm:$0xff]  ;;  %v1659_v29 = vld [vmem:[%s2722_s1 + $0x440] sm:$0xff] }
  0x60   : > { %361 = vmatmul.f32.vlgmr.msrb.gmra.mxu1 %v215_v30  ;;  %575 = vmatpush.msrb.mxu3 %v1489_v31  ;;  %v1560_v30 = vld [vmem:[%s2722_s1 + $0x2b8] sm:$0xff] }
  0x61   : > { %685 = vmatpush.msrb.mxu0 %v1525_v34  ;;  %905 = vmatpush.msra.mxu2 %v1602_v35  ;;  %v2313_v31 = vld [vmem:[%s1917_s28 + $0x3a] sm:$0xff]  ;;  %v2317_v34 = vld [vmem:[%s1917_s28 + $0x50] sm:$0xff] }
  0x62   : > { %305 = vmatmul.f32.gmra.mxu0 %v2162_v36  ;;  %576 = vmatmul.f32.vlgmr.msrb.gmra.mxu3 %v1473_v38  ;;  %v1593_v35 = vld [vmem:[%s2722_s1 + $0x330] sm:$0xff] }
  0x63   : > { %686 = vmatpush.msrb.mxu0 %v1524_v39  ;;  %1019 = vmatpush.msra.mxu3 %v1634_v40  ;;  %v1559_v39 = vld [vmem:[%s2722_s1 + $0x2b0] sm:$0xff] }
  0x64   : > { %788 = vmatpush.msra.mxu1 %v1568_v41  ;;  %906 = vmatpush.msra.mxu2 %v1601_v42  ;;  %v2335_v40 = vld [vmem:[%s1917_s28 + $0x4a] sm:$0xff]  ;;  %v2339_v41 = vld [vmem:[%s1917_s28 + $0x60] sm:$0xff] }
  0x65   : > { %687 = vmatpush.msrb.mxu0 %v1523_v43  ;;  %1020 = vmatpush.msra.mxu3 %v1633_v44  ;;  %v1592_v42 = vld [vmem:[%s2722_s1 + $0x328] sm:$0xff]  ;;  %v1657_v44 = vld [vmem:[%s2722_s1 + $0x430] sm:$0xff] }
  0x66   : > { %789 = vmatpush.msra.mxu1 %v1567_v45  ;;  %907 = vmatpush.msra.mxu2 %v1600_v46  ;;  %v1624_v43 = vld [vmem:[%s2722_s1 + $0x3a8] sm:$0xff]  ;;  %v2357_v46 = vld [vmem:[%s1917_s28 + $0x52] sm:$0xff] }
  0x67   : > { %688 = vmatpush.msrb.mxu0 %v1522_v47  ;;  %462 = vmatmul.f32.gmra.mxu2 %v411_v48  ;;  %v1558_v45 = vld [vmem:[%s2722_s1 + $0x2a8] sm:$0xff]  ;;  %v1591_v48 = vld [vmem:[%s2722_s1 + $0x320] sm:$0xff] }
  0x68   : > { %364 = vmatmul.f32.gmra.mxu1 %v216_v49  ;;  %1021 = vmatpush.msra.mxu3 %v1632_v52  ;;  %v2361_v47 = vld [vmem:[%s1917_s28 + $0x68] sm:$0xff]  ;;  %v1623_v49 = vld [vmem:[%s2722_s1 + $0x3a0] sm:$0xff] }
  0x69   : > { %689 = vmatpush.msrb.mxu0 %v1521_v53  ;;  %790 = vmatpush.msra.mxu1 %v1566_v54  ;;  %v1656_v52 = vld [vmem:[%s2722_s1 + $0x428] sm:$0xff]  ;;  %v1557_v53 = vld [vmem:[%s2722_s1 + $0x2a0] sm:$0xff] }
  0x6a   : > { %579 = vmatmul.f32.gmra.mxu3 %v1474_v55  ;;  %690 = vmatmul.f32.vlgmr.msrb.gmra.mxu0 %v2106_v12  ;;  %v1628_v12 = vld [vmem:[%s2722_s1 + $0x3c8] sm:$0xff] }
  0x6b   : > { %1133 = vmatpush.msra.mxu0 %v1666_v56  ;;  %908 = vmatpush.msra.mxu2 %v1599_v58  ;;  %v2379_v54 = vld [vmem:[%s1917_s28 + $0x62] sm:$0xff]  ;;  %v1590_v56 = vld [vmem:[%s2722_s1 + $0x318] sm:$0xff] }
  0x6c   : > { %1022 = vmatpush.msra.mxu3 %v1631_v59  ;;  %791 = vmatpush.msra.mxu1 %v1565_v60  ;;  %v1622_v58 = vld [vmem:[%s2722_s1 + $0x398] sm:$0xff]  ;;  %v1655_v59 = vld [vmem:[%s2722_s1 + $0x420] sm:$0xff] }
  0x6d   : > { %1134 = vmatpush.msra.mxu0 %v1665_v61  ;;  %909 = vmatpush.msra.mxu2 %v1598_v62  ;;  %v1556_v60 = vld [vmem:[%s2722_s1 + $0x298] sm:$0xff]  ;;  %v2401_v61 = vld [vmem:[%s1917_s28 + $0x6a] sm:$0xff]  ;;  %v2405_v62 = vld [vmem:[%s1917_s28 + $0x80] sm:$0xff] }
  0x6e   : > { %1023 = vmatpush.msra.mxu3 %v1630_v63  ;;  %792 = vmatpush.msra.mxu1 %v1564_v0  ;;  %v1589_v63 = vld [vmem:[%s2722_s1 + $0x310] sm:$0xff] }
  0x6f   : > { %465 = vmatmul.f32.gmra.mxu2 %v2231_v1  ;;  %1135 = vmatpush.msra.mxu0 %v1664_v2  ;;  %v1621_v0 = vld [vmem:[%s2722_s1 + $0x390] sm:$0xff]  ;;  %v1654_v2 = vld [vmem:[%s2722_s1 + $0x418] sm:$0xff] }
  0x70   : > { %367 = vmatmul.f32.gmra.mxu1 %v1473_v38  ;;  %910 = vmatpush.msra.mxu2 %v1597_v3  ;;  %v1658_v38 = vld [vmem:[%s2722_s1 + $0x438] sm:$0xff]  ;;  %v1555_v3 = vld [vmem:[%s2722_s1 + $0x290] sm:$0xff] }
  0x71   : > { %1136 = vmatpush.msra.mxu0 %v1663_v4  ;;  %1024 = vmatpush.msra.mxu3 %v1629_v5  ;;  %v2423_v4 = vld [vmem:[%s1917_s28 + $0x7a] sm:$0xff]  ;;  %v2427_v5 = vld [vmem:[%s1917_s28 + $0x90] sm:$0xff] }
  0x72   : > { %582 = vmatmul.f32.gmra.mxu3 %v2247_v8  ;;  %693 = vmatmul.f32.gmra.mxu0 %v2162_v36  ;;  %v1625_v36 = vld [vmem:[%s2722_s1 + $0x3b0] sm:$0xff] }
  0x73   : > { %1137 = vmatpush.msra.mxu0 %v1662_v9  ;;  %793 = vmatpush.msra.mxu1 %v1563_v10  ;;  %v1588_v9 = vld [vmem:[%s2722_s1 + $0x308] sm:$0xff] }
  0x74   : > { %911 = vmatpush.msra.mxu2 %v1596_v11  ;;  %1025 = vmatpush.msra.mxu3 %v1628_v12  ;;  %v1620_v10 = vld [vmem:[%s2722_s1 + $0x388] sm:$0xff]  ;;  %v1653_v11 = vld [vmem:[%s2722_s1 + $0x410] sm:$0xff] }
  0x75   : > { %1138 = vmatpush.msra.mxu0 %v1661_v14  ;;  %794 = vmatpush.msra.mxu1 %v1562_v15  ;;  %v1554_v12 = vld [vmem:[%s2722_s1 + $0x288] sm:$0xff]  ;;  %v2449_v15 = vld [vmem:[%s1917_s28 + $0x98] sm:$0xff] }
  0x76   : > { %912 = vmatpush.msra.mxu2 %v1595_v20  ;;  %1026 = vmatpush.msra.mxu3 %v1627_v22  ;;  %v2445_v14 = vld [vmem:[%s1917_s28 + $0x82] sm:$0xff] }
  0x77   : > { %468 = vmatmul.f32.gmra.mxu2 %v2270_v16  ;;  %1139 = vmatpush.msra.mxu0 %v1660_v23  ;;  %v1587_v22 = vld [vmem:[%s2722_s1 + $0x300] sm:$0xff] }
  0x78   : > { %370 = vmatmul.f32.gmra.mxu1 %v1474_v55  ;;  %913 = vmatpush.msra.mxu2 %v1594_v27  ;;  %v2383_v55 = vld [vmem:[%s1917_s28 + $0x78] sm:$0xff]  ;;  %v1619_v23 = vld [vmem:[%s2722_s1 + $0x380] sm:$0xff] }
  0x79   : > { %795 = vmatpush.msra.mxu1 %v1561_v24  ;;  %1027 = vmatpush.msra.mxu3 %v1626_v28  ;;  %v1652_v24 = vld [vmem:[%s2722_s1 + $0x408] sm:$0xff]  ;;  %v1553_v27 = vld [vmem:[%s2722_s1 + $0x280] sm:$0xff]  ;;  %v2469_v28 = vld [vmem:[%s1917_s28 + $0x92] sm:$0xff] }
  0x7a   : > { %585 = vmatmul.f32.gmra.mxu3 %v2274_v19  ;;  %696 = vmatmul.f32.gmra.mxu0 %v1923_v17 }
  0x7b   : > { %1140 = vmatpush.msra.mxu0 %v1659_v29  ;;  %796 = vmatpush.msra.mxu1 %v1560_v30  ;;  %v2475_v29 = vld [vmem:[%s1917_s28 + $0xa8] sm:$0xff] }
  0x7c   : > { %914 = vmatpush.msra.mxu2 %v1593_v35  ;;  %1028 = vmatpush.msra.mxu3 %v1625_v36 }
  0x7d   : > { %1141 = vmatpush.msra.mxu0 %v1658_v38  ;;  %797 = vmatpush.msra.mxu1 %v1559_v39  ;;  %v1651_v38 = vld [vmem:[%s2722_s1 + $0x400] sm:$0xff] }
  0x7e   : > { %915 = vmatpush.msra.mxu2 %v1592_v42  ;;  %1029 = vmatpush.msra.mxu3 %v1624_v43  ;;  %v2488_v39 = vld [vmem:[%s1917_s28 + $0x9a] sm:$0xff]  ;;  %v2494_v43 = vld [vmem:[%s1917_s28 + $0xb0] sm:$0xff] }
  0x7f   : > { %471 = vmatmul.f32.gmra.mxu2 %v2291_v25  ;;  %1142 = vmatpush.msra.mxu0 %v1657_v44 }
  0x80   : > { %373 = vmatmul.f32.gmra.mxu1 %v2247_v8  ;;  %916 = vmatpush.msra.mxu2 %v1591_v48  ;;  %v2504_v48 = vld [vmem:[%s1917_s28 + $0xaa] sm:$0xff] }
  0x81   : > { %798 = vmatpush.msra.mxu1 %v1558_v45  ;;  %1030 = vmatpush.msra.mxu3 %v1623_v49 }
  0x82   : > { %588 = vmatmul.f32.gmra.mxu3 %v2295_v26  ;;  %699 = vmatmul.f32.gmra.mxu0 %v1972_v33 }
  0x83   : > { %1143 = vmatpush.msra.mxu0 %v1656_v52  ;;  %799 = vmatpush.msra.mxu1 %v1557_v53  ;;  %v2510_v52 = vld [vmem:[%s1917_s28 + $0xc0] sm:$0xff] }
  0x84   : > { %917 = vmatpush.msra.mxu2 %v1590_v56  ;;  %1031 = vmatpush.msra.mxu3 %v1622_v58 }
  0x85   : > { %1144 = vmatpush.msra.mxu0 %v1655_v59  ;;  %800 = vmatpush.msra.mxu1 %v1556_v60  ;;  %v2524_v59 = vld [vmem:[%s1917_s28 + $0xc8] sm:$0xff] }
  0x86   : > { %918 = vmatpush.msra.mxu2 %v1589_v63  ;;  %1032 = vmatpush.msra.mxu3 %v1621_v0  ;;  %v2527_v60 = vld [vmem:[%s1917_s28 + $0xc1] sm:$0xff] }
  0x87   : > { %474 = vmatmul.f32.gmra.mxu2 %v2313_v31  ;;  %1145 = vmatpush.msra.mxu0 %v1654_v2 }
  0x88   : > { %376 = vmatmul.f32.gmra.mxu1 %v2274_v19  ;;  %919 = vmatpush.msra.mxu2 %v1588_v9  ;;  %v2538_v9 = vld [vmem:[%s1917_s28 + $0xc9] sm:$0xff] }
  0x89   : > { %801 = vmatpush.msra.mxu1 %v1555_v3  ;;  %1033 = vmatpush.msra.mxu3 %v1620_v10 }
  0x8a   : > { %591 = vmatmul.f32.gmra.mxu3 %v2317_v34  ;;  %702 = vmatmul.f32.gmra.mxu0 %v2029_v51 }
  0x8b   : > { %1146 = vmatpush.msra.mxu0 %v1653_v11  ;;  %802 = vmatpush.msra.mxu1 %v1554_v12 }
  0x8c   : > { %920 = vmatpush.msra.mxu2 %v1587_v22  ;;  %1034 = vmatpush.msra.mxu3 %v1619_v23 }
  0x8d   : > { %1147 = vmatpush.msra.mxu0 %v1652_v24  ;;  %803 = vmatpush.msra.mxu1 %v1553_v27 }
  0x8f   : > { %477 = vmatmul.f32.gmra.mxu2 %v2335_v40  ;;  %1148 = vmatpush.msra.mxu0 %v1651_v38 }
  0x90   : > { %379 = vmatmul.f32.gmra.mxu1 %v2295_v26 }
  0x92   : > { %594 = vmatmul.f32.gmra.mxu3 %v2339_v41  ;;  %705 = vmatmul.f32.gmra.mxu0 %v2090_v7 }
  0x97   : > { %480 = vmatmul.f32.gmra.mxu2 %v2357_v46 }
  0x98   : > { %382 = vmatmul.f32.gmra.mxu1 %v2317_v34 }
  0x9a   : > { %597 = vmatmul.f32.gmra.mxu3 %v2361_v47  ;;  %708 = vmatmul.f32.gmra.mxu0 %v1926_v18 }
  0x9f   : > { %483 = vmatmul.f32.gmra.mxu2 %v2379_v54 }
  0xa0   : > { %385 = vmatmul.f32.gmra.mxu1 %v2339_v41 }
  0xa2   : > { %600 = vmatmul.f32.gmra.mxu3 %v2383_v55  ;;  %711 = vmatmul.f32.gmra.mxu0 %v1969_v32 }
  0xa7   : > { %486 = vmatmul.f32.gmra.mxu2 %v2401_v61 }
  0xa8   : > { %388 = vmatmul.f32.gmra.mxu1 %v2361_v47 }
  0xaa   : > { %603 = vmatmul.f32.gmra.mxu3 %v2405_v62  ;;  %714 = vmatmul.f32.gmra.mxu0 %v2026_v50 }
  0xaf   : > { %489 = vmatmul.f32.gmra.mxu2 %v2423_v4 }
  0xb0   : > { %391 = vmatmul.f32.gmra.mxu1 %v2383_v55 }
  0xb2   : > { %606 = vmatmul.f32.gmra.mxu3 %v2427_v5  ;;  %717 = vmatmul.f32.gmra.mxu0 %v2087_v6 }
  0xb7   : > { %492 = vmatmul.f32.gmra.mxu2 %v2445_v14  ;;  %v2451_v20 = vpop.f32.mrf.mxu1 }
  0xb8   : > { %394 = vmatmul.f32.gmra.mxu1 %v2405_v62 }
  0xba   : > { %609 = vmatmul.f32.gmra.mxu3 %v2449_v15  ;;  %720 = vmatmul.f32.gmra.mxu0 %v1935_v21 }
  0xbd   : > { %v2471_v21 = vpop.f32.mrf.mxu2  ;;  %v297_v36 = vpop.f32.mrf.mxu0 }
  0xbf   : > { %495 = vmatmul.f32.gmra.mxu2 %v2469_v28  ;;  %v2477_v30 = vpop.f32.mrf.mxu3 }
  0xc0   : > { %397 = vmatmul.f32.gmra.mxu1 %v2427_v5  ;;  %v2480_v35 = vpop.f32.mrf.mxu1 }
  0xc2   : > { %612 = vmatmul.f32.gmra.mxu3 %v2475_v29  ;;  %723 = vmatmul.f32.gmra.mxu0 %v1985_v37 }
  0xc5   : > { %v2490_v42 = vpop.f32.mrf.mxu2 }
  0xc7   : > { %498 = vmatmul.f32.gmra.mxu2 %v2488_v39 }
  0xc8   : > { %400 = vmatmul.f32.gmra.mxu1 %v2449_v15  ;;  %v2497_v44 = vpop.f32.mrf.mxu3 }
  0xc9   : > { %v2499_v37 = vpop.f32.mrf.mxu1 }
  0xca   : > { %615 = vmatmul.f32.gmra.mxu3 %v2494_v43  ;;  %726 = vmatmul.f32.gmra.mxu0 %v2047_v57  ;;  %v2520_v57 = vld [vmem:[%s1917_s28 + $0xb2] sm:$0xff] }
  0xcb   : > { %v300_v45 = vpop.f32.mrf.mxu0 }
  0xce   : > { %v2506_v49 = vpop.f32.mrf.mxu2 }
  0xcf   : > { %501 = vmatmul.f32.gmra.mxu2 %v2504_v48 }
  0xd0   : > { %403 = vmatmul.f32.gmra.mxu1 %v2475_v29 }
  0xd2   : > { %618 = vmatmul.f32.gmra.mxu3 %v2510_v52  ;;  %729 = vmatmul.f32.gmra.mxu0 %v2110_v13  ;;  %v2515_v53 = vpop.f32.mrf.mxu3 }
  0xd3   : > { %v2517_v56 = vpop.f32.mrf.mxu1 }
  0xd5   : > { %v303_v58 = vpop.f32.mrf.mxu0 }
  0xd7   : > { %504 = vmatmul.f32.gmra.mxu2 %v2520_v57 }
  0xd8   : > { %406 = vmatmul.f32.gmra.mxu1 %v2494_v43  ;;  %v2530_v63 = vpop.f32.mrf.mxu2 }
  0xda   : > { %621 = vmatmul.f32.gmra.mxu3 %v2524_v59  ;;  %732 = vmatmul.f32.gmra.mxu0 %v2527_v60 }
  0xdc   : > { %v2534_v0 = vpop.f32.mrf.mxu3 }
  0xdd   : > { %v362_v2 = vpop.f32.mrf.mxu1 }
  0xde   : > { %v363_v10 = vadd.f32 %v362_v2, %v297_v36 }
  0xdf   : > { %v306_v3 = vpop.f32.mrf.mxu0  ;;  %921 = vmatmul.f32.vlgmr.msra.gmra.mxu2 %v2247_v8 }
  0xe0   : > { %804 = vmatmul.f32.vlgmr.msra.gmra.mxu1 %v2231_v1 }
  0xe2   : > { %735 = vmatmul.f32.gmra.mxu0 %v2538_v9  ;;  %1035 = vmatmul.f32.vlgmr.msra.gmra.mxu3 %v1923_v17  ;;  %v460_v11 = vpop.f32.mrf.mxu2 }
  0xe3   : > { %v508_v12 = vadd.f32 %v460_v11, %v363_v10 }
  0xe5   : > { %v365_v22 = vpop.f32.mrf.mxu1  ;;  %v577_v23 = vpop.f32.mrf.mxu3 }
  0xe6   : > { %v2543_v24 = vadd.f32 %v577_v23, %v508_v12  ;;  %v366_v8 = vadd.f32 %v365_v22, %v300_v45 }
  0xe7   : > { %v2545_v27 = vpop.f32.mrf.mxu0  ;;  %924 = vmatmul.f32.gmra.mxu2 %v2274_v19 }
  0xe8   : > { %807 = vmatmul.f32.gmra.mxu1 %v2270_v16 }
  0xea   : > { %1038 = vmatmul.f32.gmra.mxu3 %v1972_v33  ;;  %1149 = vmatmul.f32.vlgmr.msra.gmra.mxu0 %v2291_v25  ;;  %v463_v1 = vpop.f32.mrf.mxu2 }
  0xeb   : > { %v509_v36 = vadd.f32 %v463_v1, %v366_v8 }
  0xed   : > { %v368_v17 = vpop.f32.mrf.mxu1  ;;  %v580_v38 = vpop.f32.mrf.mxu3 }
  0xee   : > { %v2551_v2 = vadd.f32 %v580_v38, %v509_v36  ;;  %v369_v19 = vadd.f32 %v368_v17, %v303_v58 }
  0xef   : > { %v2553_v10 = vpop.f32.mrf.mxu0  ;;  %927 = vmatmul.f32.gmra.mxu2 %v2295_v26 }
  0xf0   : > { %810 = vmatmul.f32.gmra.mxu1 %v2291_v25 }
  0xf2   : > { %1041 = vmatmul.f32.gmra.mxu3 %v2029_v51  ;;  %1152 = vmatmul.f32.gmra.mxu0 %v2313_v31  ;;  %v466_v33 = vpop.f32.mrf.mxu2 }
  0xf3   : > { %v510_v16 = vadd.f32 %v466_v33, %v369_v19 }
  0xf5   : > { %v371_v45 = vpop.f32.mrf.mxu1  ;;  %v583_v11 = vpop.f32.mrf.mxu3 }
  0xf6   : > { %v2559_v12 = vadd.f32 %v583_v11, %v510_v16  ;;  %v372_v26 = vadd.f32 %v371_v45, %v306_v3 }
  0xf7   : > { %v2561_v22 = vpop.f32.mrf.mxu0  ;;  %930 = vmatmul.f32.gmra.mxu2 %v2317_v34 }
  0xf8   : > { %813 = vmatmul.f32.gmra.mxu1 %v2313_v31 }
  0xfa   : > { %1044 = vmatmul.f32.gmra.mxu3 %v2090_v7  ;;  %1155 = vmatmul.f32.gmra.mxu0 %v2335_v40  ;;  %v469_v51 = vpop.f32.mrf.mxu2 }
  0xfb   : > { %v511_v25 = vadd.f32 %v469_v51, %v372_v26 }
  0xfd   : > { %v374_v58 = vpop.f32.mrf.mxu1  ;;  %v586_v23 = vpop.f32.mrf.mxu3 }
  0xfe   : > { %v2567_v8 = vadd.f32 %v586_v23, %v511_v25  ;;  %v375_v34 = vadd.f32 %v374_v58, %v2451_v20 }
  0xff   : > { %v2569_v1 = vpop.f32.mrf.mxu0  ;;  %933 = vmatmul.f32.gmra.mxu2 %v2339_v41 }
 0x100   : > { %816 = vmatmul.f32.gmra.mxu1 %v2335_v40 }
 0x102   : > { %1047 = vmatmul.f32.gmra.mxu3 %v1926_v18  ;;  %1158 = vmatmul.f32.gmra.mxu0 %v2357_v46  ;;  %v472_v7 = vpop.f32.mrf.mxu2 }
 0x103   : > { %v512_v31 = vadd.f32 %v472_v7, %v375_v34 }
 0x105   : > { %v377_v3 = vpop.f32.mrf.mxu1  ;;  %v589_v36 = vpop.f32.mrf.mxu3 }
 0x106   : > { %v2576_v17 = vadd.f32 %v589_v36, %v512_v31  ;;  %v378_v40 = vadd.f32 %v377_v3, %v2480_v35  ;;  %v1612_v3 = vld [vmem:[%s1917_s28 + $0x99] sm:$0xff] }
 0x107   : > { %v2578_v38 = vpop.f32.mrf.mxu0  ;;  %936 = vmatmul.f32.gmra.mxu2 %v2361_v47 }
 0x108   : > { %819 = vmatmul.f32.gmra.mxu1 %v2357_v46 }
 0x10a   : > { %1050 = vmatmul.f32.gmra.mxu3 %v1969_v32  ;;  %1161 = vmatmul.f32.gmra.mxu0 %v2379_v54  ;;  %v475_v18 = vpop.f32.mrf.mxu2 }
 0x10b   : > { %v513_v41 = vadd.f32 %v475_v18, %v378_v40 }
 0x10d   : > { %v380_v20 = vpop.f32.mrf.mxu1  ;;  %v592_v19 = vpop.f32.mrf.mxu3 }
 0x10e   : > { %v2585_v33 = vadd.f32 %v592_v19, %v513_v41  ;;  %v381_v46 = vadd.f32 %v380_v20, %v2499_v37  ;;  %v1613_v19 = vld [vmem:[%s1917_s28 + $0xa9] sm:$0xff] }
 0x10f   : > { %v2587_v16 = vpop.f32.mrf.mxu0  ;;  %939 = vmatmul.f32.gmra.mxu2 %v2383_v55 }
 0x110   : > { %822 = vmatmul.f32.gmra.mxu1 %v2379_v54 }
 0x112   : > { %1053 = vmatmul.f32.gmra.mxu3 %v2026_v50  ;;  %1164 = vmatmul.f32.gmra.mxu0 %v2401_v61  ;;  %v478_v32 = vpop.f32.mrf.mxu2 }
 0x113   : > { %v514_v47 = vadd.f32 %v478_v32, %v381_v46 }
 0x115   : > { %v383_v35 = vpop.f32.mrf.mxu1  ;;  %v595_v45 = vpop.f32.mrf.mxu3 }
 0x116   : > { %v2594_v11 = vadd.f32 %v595_v45, %v514_v47  ;;  %v384_v54 = vadd.f32 %v383_v35, %v2517_v56 }
 0x117   : > { %v2596_v26 = vpop.f32.mrf.mxu0  ;;  %942 = vmatmul.f32.gmra.mxu2 %v2405_v62  ;;  %v1611_v62 = vld [vmem:[%s1917_s28 + $0x91] sm:$0xff] }
 0x118   : > { %825 = vmatmul.f32.gmra.mxu1 %v2401_v61 }
 0x11a   : > { %1056 = vmatmul.f32.gmra.mxu3 %v2087_v6  ;;  %1167 = vmatmul.f32.gmra.mxu0 %v2423_v4  ;;  %v481_v50 = vpop.f32.mrf.mxu2 }
 0x11b   : > { %v515_v55 = vadd.f32 %v481_v50, %v384_v54 }
 0x11d   : > { %v386_v37 = vpop.f32.mrf.mxu1  ;;  %v598_v51 = vpop.f32.mrf.mxu3 }
 0x11e   : > { %v2603_v25 = vadd.f32 %v598_v51, %v515_v55  ;;  %v387_v61 = vadd.f32 %v386_v37, %v2471_v21 }
 0x11f   : > { %v2605_v58 = vpop.f32.mrf.mxu0  ;;  %945 = vmatmul.f32.gmra.mxu2 %v2427_v5 }
 0x120   : > { %828 = vmatmul.f32.gmra.mxu1 %v2423_v4 }
 0x122   : > { %1059 = vmatmul.f32.gmra.mxu3 %v1611_v62  ;;  %1170 = vmatmul.f32.gmra.mxu0 %v2445_v14  ;;  %v484_v6 = vpop.f32.mrf.mxu2 }
 0x123   : > { %v516_v56 = vadd.f32 %v484_v6, %v387_v61 }
 0x125   : > { %v389_v23 = vpop.f32.mrf.mxu1  ;;  %v601_v34 = vpop.f32.mrf.mxu3 }
 0x126   : > { %v633_v7 = vadd.f32 %v601_v34, %v516_v56  ;;  %v390_v4 = vadd.f32 %v389_v23, %v2490_v42  ;;  %v1585_v34 = vld [vmem:[%s1917_s28 + $0xd8] sm:$0xff] }
 0x127   : > { %v715_v31 = vpop.f32.mrf.mxu0  ;;  %948 = vmatmul.f32.gmra.mxu2 %v2449_v15 }
 0x128   : > { %v2614_v36 = vadd.f32 %v715_v31, %v633_v7  ;;  %831 = vmatmul.f32.gmra.mxu1 %v2445_v14 }
 0x12a   : > { %1062 = vmatmul.f32.gmra.mxu3 %v1612_v3  ;;  %1173 = vmatmul.f32.gmra.mxu0 %v2469_v28  ;;  %v487_v5 = vpop.f32.mrf.mxu2 }
 0x12b   : > { %v517_v21 = vadd.f32 %v487_v5, %v390_v4  ;;  %v1648_v5 = vld [vmem:[%s1917_s28 + $0xca] sm:$0xff] }
 0x12d   : > { %v392_v40 = vpop.f32.mrf.mxu1  ;;  %v604_v18 = vpop.f32.mrf.mxu3 }
 0x12e   : > { %v634_v41 = vadd.f32 %v604_v18, %v517_v21  ;;  %v393_v14 = vadd.f32 %v392_v40, %v2506_v49  ;;  %v1586_v40 = vld [vmem:[%s1917_s28 + $0xe0] sm:$0xff] }
 0x12f   : > { %v718_v20 = vpop.f32.mrf.mxu0  ;;  %951 = vmatmul.f32.gmra.mxu2 %v2475_v29 }
 0x130   : > { %v2621_v15 = vadd.f32 %v718_v20, %v634_v41  ;;  %834 = vmatmul.f32.gmra.mxu1 %v2469_v28 }
 0x132   : > { %1065 = vmatmul.f32.gmra.mxu3 %v1613_v19  ;;  %1176 = vmatmul.f32.gmra.mxu0 %v2488_v39  ;;  %v490_v42 = vpop.f32.mrf.mxu2 }
 0x133   : > { %v518_v46 = vadd.f32 %v490_v42, %v393_v14  ;;  %v1618_v14 = vld [vmem:[%s1917_s28 + $0xe1] sm:$0xff] }
 0x134   : > { %v1649_v42 = vld [vmem:[%s1917_s28 + $0xda] sm:$0xff] }
 0x135   : > { %v395_v32 = vpop.f32.mrf.mxu1  ;;  %v607_v47 = vpop.f32.mrf.mxu3 }
 0x136   : > { %v635_v35 = vadd.f32 %v607_v47, %v518_v46  ;;  %v396_v29 = vadd.f32 %v395_v32, %v2530_v63 }
 0x137   : > { %v721_v45 = vpop.f32.mrf.mxu0  ;;  %954 = vmatmul.f32.gmra.mxu2 %v2494_v43 }
 0x138   : > { %v2627_v54 = vadd.f32 %v721_v45, %v635_v35  ;;  %837 = vmatmul.f32.gmra.mxu1 %v2488_v39 }
 0x13a   : > { %1068 = vmatmul.f32.gmra.mxu3 %v2110_v13  ;;  %1179 = vmatmul.f32.gmra.mxu0 %v2504_v48  ;;  %v493_v28 = vpop.f32.mrf.mxu2 }
 0x13b   : > { %v519_v49 = vadd.f32 %v493_v28, %v396_v29  ;;  %v739_v28 = vadd.f32 %v2545_v27, %v2543_v24 }
 0x13d   : > { %v398_v50 = vpop.f32.mrf.mxu1  ;;  %v610_v55 = vpop.f32.mrf.mxu3 }
 0x13e   : > { %v636_v37 = vadd.f32 %v610_v55, %v519_v49  ;;  %v399_v39 = vadd.f32 %v398_v50, %v2477_v30  ;;  %v1650_v50 = vld [vmem:[%s1917_s28 + $0xe2] sm:$0xff] }
 0x13f   : > { %v724_v51 = vpop.f32.mrf.mxu0  ;;  %957 = vmatmul.f32.gmra.mxu2 %v2510_v52  ;;  %v1647_v52 = vld [vmem:[%s1917_s28 + $0xc2] sm:$0xff] }
 0x140   : > { %v2634_v43 = vadd.f32 %v724_v51, %v636_v37  ;;  %840 = vmatmul.f32.gmra.mxu1 %v2504_v48 }
 0x142   : > { %1071 = vmatmul.f32.gmra.mxu3 %v2527_v60  ;;  %1182 = vmatmul.f32.gmra.mxu0 %v2520_v57  ;;  %v496_v13 = vpop.f32.mrf.mxu2 }
 0x143   : > { %v520_v63 = vadd.f32 %v496_v13, %v399_v39 }
 0x145   : > { %v401_v62 = vpop.f32.mrf.mxu1  ;;  %v613_v61 = vpop.f32.mrf.mxu3 }
 0x146   : > { %v637_v6 = vadd.f32 %v613_v61, %v520_v63  ;;  %v402_v30 = vadd.f32 %v401_v62, %v2497_v44  ;;  %v740_v62 = vadd.f32 %v2553_v10, %v2551_v2 }
 0x147   : > { %v727_v56 = vpop.f32.mrf.mxu0  ;;  %960 = vmatmul.f32.gmra.mxu2 %v2524_v59  ;;  %v1617_v59 = vld [vmem:[%s1917_s28 + $0xd9] sm:$0xff] }
 0x148   : > { %v2642_v23 = vadd.f32 %v727_v56, %v637_v6  ;;  %843 = vmatmul.f32.gmra.mxu1 %v2520_v57 }
 0x14a   : > { %1074 = vmatmul.f32.gmra.mxu3 %v2538_v9  ;;  %1185 = vmatmul.f32.gmra.mxu0 %v1647_v52  ;;  %v499_v48 = vpop.f32.mrf.mxu2 }
 0x14b   : > { %v521_v60 = vadd.f32 %v499_v48, %v402_v30 }
 0x14d   : > { %v404_v7 = vpop.f32.mrf.mxu1  ;;  %v616_v31 = vpop.f32.mrf.mxu3 }
 0x14e   : > { %v638_v3 = vadd.f32 %v616_v31, %v521_v60  ;;  %v405_v44 = vadd.f32 %v404_v7, %v2515_v53  ;;  %v741_v60 = vadd.f32 %v2561_v22, %v2559_v12 }
 0x14f   : > { %v730_v4 = vpop.f32.mrf.mxu0  ;;  %963 = vmatmul.f32.gmra.mxu2 %v1585_v34 }
 0x150   : > { %v2650_v21 = vadd.f32 %v730_v4, %v638_v3  ;;  %846 = vmatmul.f32.gmra.mxu1 %v1647_v52 }
 0x152   : > { %1077 = vmatmul.f32.gmra.mxu3 %v1617_v59  ;;  %1188 = vmatmul.f32.gmra.mxu0 %v1648_v5  ;;  %v502_v57 = vpop.f32.mrf.mxu2 }
 0x153   : > { %v522_v9 = vadd.f32 %v502_v57, %v405_v44 }
 0x155   : > { %v407_v18 = vpop.f32.mrf.mxu1  ;;  %v619_v41 = vpop.f32.mrf.mxu3 }
 0x156   : > { %v639_v20 = vadd.f32 %v619_v41, %v522_v9  ;;  %v408_v32 = vadd.f32 %v407_v18, %v2534_v0 }
 0x157   : > { %v733_v19 = vpop.f32.mrf.mxu0  ;;  %966 = vmatmul.f32.gmra.mxu2 %v1586_v40  ;;  %v742_v40 = vadd.f32 %v2569_v1, %v2567_v8 }
 0x158   : > { %v2656_v46 = vadd.f32 %v733_v19, %v639_v20  ;;  %849 = vmatmul.f32.gmra.mxu1 %v1648_v5 }
 0x15a   : > { %1080 = vmatmul.f32.gmra.mxu3 %v1618_v14  ;;  %1191 = vmatmul.f32.gmra.mxu0 %v1649_v42  ;;  %v505_v53 = vpop.f32.mrf.mxu2 }
 0x15b   : > { %v523_v47 = vadd.f32 %v505_v53, %v408_v32 }
 0x15d   : > { %v622_v35 = vpop.f32.mrf.mxu3  ;;  %v805_v45 = vpop.f32.mrf.mxu1 }
 0x15e   : > { %v640_v29 = vadd.f32 %v622_v35, %v523_v47  ;;  %v853_v37 = vadd.f32 %v805_v45, %v739_v28  ;;  %v743_v35 = vadd.f32 %v2578_v38, %v2576_v17 }
 0x15f   : > { %v736_v49 = vpop.f32.mrf.mxu0 }
 0x160   : > { %v2662_v55 = vadd.f32 %v736_v49, %v640_v29 }
 0x162   : > { %1194 = vmatmul.f32.gmra.mxu0 %v1650_v50  ;;  %v922_v51 = vpop.f32.mrf.mxu2 }
 0x163   : > { %v970_v39 = vadd.f32 %v922_v51, %v853_v37 }
 0x165   : > { %v808_v0 = vpop.f32.mrf.mxu1  ;;  %v1036_v13 = vpop.f32.mrf.mxu3 }
 0x166   : > { %v1084_v63 = vadd.f32 %v1036_v13, %v970_v39  ;;  %v854_v56 = vadd.f32 %v808_v0, %v740_v62  ;;  %v744_v13 = vadd.f32 %v2587_v16, %v2585_v33 }
 0x167   : > { %v1150_v61 = vpop.f32.mrf.mxu0 }
 0x168   : > { %v1198_v6 = vadd.f32 %v1150_v61, %v1084_v63 }
 0x16a   : > { %1214 = vst [vmem:[%s1866_s7] sm:$0xff] %v1198_v6  ;;  %v925_v24 = vpop.f32.mrf.mxu2  ;;  %v1255_v3 = vmul.f32 %v1198_v6, %v1198_v6 }
 0x16b   : > { %v971_v27 = vadd.f32 %v925_v24, %v854_v56 }
 0x16d   : > { %v811_v52 = vpop.f32.mrf.mxu1  ;;  %v1039_v30 = vpop.f32.mrf.mxu3 }
 0x16e   : > { %v1085_v48 = vadd.f32 %v1039_v30, %v971_v27  ;;  %v855_v31 = vadd.f32 %v811_v52, %v741_v60 }
 0x16f   : > { %v1153_v34 = vpop.f32.mrf.mxu0 }
 0x170   : > { %v1199_v7 = vadd.f32 %v1153_v34, %v1085_v48  ;;  %v745_v48 = vadd.f32 %v2596_v26, %v2594_v11 }
 0x172   : > { %1215 = vst [vmem:[%s1866_s7 + $0x8] sm:$0xff] %v1199_v7  ;;  %v1231_v4 = vadd.f32 %v1199_v7, %v1198_v6  ;;  %v1256_v2 = vmul.f32 %v1199_v7, %v1199_v7  ;;  %v928_v10 = vpop.f32.mrf.mxu2 }
 0x173   : > { %v972_v59 = vadd.f32 %v928_v10, %v855_v31 }
 0x174   : > { %v1271_v5 = vadd.f32 %v1256_v2, %v1255_v3 }
 0x175   : > { %v814_v44 = vpop.f32.mrf.mxu1  ;;  %v1042_v57 = vpop.f32.mrf.mxu3 }
 0x176   : > { %v1086_v9 = vadd.f32 %v1042_v57, %v972_v59  ;;  %v856_v22 = vadd.f32 %v814_v44, %v742_v40 }
 0x177   : > { %v1156_v18 = vpop.f32.mrf.mxu0 }
 0x178   : > { %v1200_v12 = vadd.f32 %v1156_v18, %v1086_v9 }
 0x17a   : > { %1216 = vst [vmem:[%s1866_s7 + $0x10] sm:$0xff] %v1200_v12  ;;  %v1232_v41 = vadd.f32 %v1231_v4, %v1200_v12  ;;  %v1257_v20 = vmul.f32 %v1200_v12, %v1200_v12  ;;  %v931_v19 = vpop.f32.mrf.mxu2 }
 0x17b   : > { %v973_v14 = vadd.f32 %v931_v19, %v856_v22 }
 0x17c   : > { %v1272_v42 = vadd.f32 %v1271_v5, %v1257_v20  ;;  %v746_v5 = vadd.f32 %v2605_v58, %v2603_v25 }
 0x17d   : > { %v817_v32 = vpop.f32.mrf.mxu1  ;;  %v1045_v53 = vpop.f32.mrf.mxu3 }
 0x17e   : > { %v1087_v47 = vadd.f32 %v1045_v53, %v973_v14  ;;  %v857_v8 = vadd.f32 %v817_v32, %v743_v35 }
 0x17f   : > { %v1159_v45 = vpop.f32.mrf.mxu0 }
 0x180   : > { %v1201_v29 = vadd.f32 %v1159_v45, %v1087_v47 }
 0x182   : > { %1217 = vst [vmem:[%s1866_s7 + $0x18] sm:$0xff] %v1201_v29  ;;  %v1233_v1 = vadd.f32 %v1232_v41, %v1201_v29  ;;  %v1258_v28 = vmul.f32 %v1201_v29, %v1201_v29  ;;  %v934_v49 = vpop.f32.mrf.mxu2 }
 0x183   : > { %v974_v50 = vadd.f32 %v934_v49, %v857_v8 }
 0x184   : > { %v1273_v37 = vadd.f32 %v1272_v42, %v1258_v28 }
 0x185   : > { %v820_v51 = vpop.f32.mrf.mxu1  ;;  %v1048_v39 = vpop.f32.mrf.mxu3 }
 0x186   : > { %v1088_v0 = vadd.f32 %v1048_v39, %v974_v50  ;;  %v858_v17 = vadd.f32 %v820_v51, %v744_v13 }
 0x187   : > { %v1162_v63 = vpop.f32.mrf.mxu0 }
 0x188   : > { %v1202_v62 = vadd.f32 %v1162_v63, %v1088_v0 }
 0x18a   : > { %1218 = vst [vmem:[%s1866_s7 + $0x20] sm:$0xff] %v1202_v62  ;;  %v1234_v38 = vadd.f32 %v1233_v1, %v1202_v62  ;;  %v1259_v61 = vmul.f32 %v1202_v62, %v1202_v62  ;;  %v937_v6 = vpop.f32.mrf.mxu2 }
 0x18b   : > { %v975_v56 = vadd.f32 %v937_v6, %v858_v17 }
 0x18c   : > { %v1274_v24 = vadd.f32 %v1273_v37, %v1259_v61 }
 0x18d   : > { %v823_v27 = vpop.f32.mrf.mxu1  ;;  %v1051_v52 = vpop.f32.mrf.mxu3 }
 0x18e   : > { %v1089_v30 = vadd.f32 %v1051_v52, %v975_v56  ;;  %v859_v33 = vadd.f32 %v823_v27, %v745_v48 }
 0x18f   : > { %v1165_v60 = vpop.f32.mrf.mxu0 }
 0x190   : > { %v1203_v34 = vadd.f32 %v1165_v60, %v1089_v30 }
 0x192   : > { %1219 = vst [vmem:[%s1866_s7 + $0x28] sm:$0xff] %v1203_v34  ;;  %v1235_v16 = vadd.f32 %v1234_v38, %v1203_v34  ;;  %v1260_v7 = vmul.f32 %v1203_v34, %v1203_v34  ;;  %v940_v31 = vpop.f32.mrf.mxu2 }
 0x193   : > { %v976_v3 = vadd.f32 %v940_v31, %v859_v33 }
 0x194   : > { %v1275_v4 = vadd.f32 %v1274_v24, %v1260_v7 }
 0x195   : > { %v826_v2 = vpop.f32.mrf.mxu1  ;;  %v1054_v10 = vpop.f32.mrf.mxu3 }
 0x196   : > { %v1090_v59 = vadd.f32 %v1054_v10, %v976_v3  ;;  %v860_v11 = vadd.f32 %v826_v2, %v746_v5 }
 0x197   : > { %v1168_v44 = vpop.f32.mrf.mxu0 }
 0x198   : > { %v1204_v57 = vadd.f32 %v1168_v44, %v1090_v59 }
 0x19a   : > { %1220 = vst [vmem:[%s1866_s7 + $0x30] sm:$0xff] %v1204_v57  ;;  %v1236_v26 = vadd.f32 %v1235_v16, %v1204_v57  ;;  %v1261_v9 = vmul.f32 %v1204_v57, %v1204_v57  ;;  %v943_v40 = vpop.f32.mrf.mxu2 }
 0x19b   : > { %v977_v18 = vadd.f32 %v943_v40, %v860_v11 }
 0x19c   : > { %v1276_v12 = vadd.f32 %v1275_v4, %v1261_v9 }
 0x19d   : > { %v829_v22 = vpop.f32.mrf.mxu1  ;;  %v1057_v41 = vpop.f32.mrf.mxu3 }
 0x19e   : > { %v1091_v20 = vadd.f32 %v1057_v41, %v977_v18  ;;  %v861_v42 = vadd.f32 %v829_v22, %v2614_v36 }
 0x19f   : > { %v1171_v19 = vpop.f32.mrf.mxu0 }
 0x1a0   : > { %v1205_v14 = vadd.f32 %v1171_v19, %v1091_v20 }
 0x1a2   : > { %1221 = vst [vmem:[%s1866_s7 + $0x38] sm:$0xff] %v1205_v14  ;;  %v1237_v25 = vadd.f32 %v1236_v26, %v1205_v14  ;;  %v1262_v58 = vmul.f32 %v1205_v14, %v1205_v14  ;;  %v946_v32 = vpop.f32.mrf.mxu2 }
 0x1a3   : > { %v978_v53 = vadd.f32 %v946_v32, %v861_v42 }
 0x1a4   : > { %v1277_v47 = vadd.f32 %v1276_v12, %v1262_v58 }
 0x1a5   : > { %v832_v35 = vpop.f32.mrf.mxu1  ;;  %v1060_v45 = vpop.f32.mrf.mxu3 }
 0x1a6   : > { %v1092_v29 = vadd.f32 %v1060_v45, %v978_v53  ;;  %v862_v28 = vadd.f32 %v832_v35, %v2621_v15 }
 0x1a7   : > { %v1174_v8 = vpop.f32.mrf.mxu0 }
 0x1a8   : > { %v1206_v1 = vadd.f32 %v1174_v8, %v1092_v29 }
 0x1aa   : > { %1222 = vst [vmem:[%s1866_s7 + $0x40] sm:$0xff] %v1206_v1  ;;  %v1238_v49 = vadd.f32 %v1237_v25, %v1206_v1  ;;  %v1263_v50 = vmul.f32 %v1206_v1, %v1206_v1  ;;  %v949_v37 = vpop.f32.mrf.mxu2 }
 0x1ab   : > { %v979_v51 = vadd.f32 %v949_v37, %v862_v28 }
 0x1ac   : > { %v1278_v36 = vadd.f32 %v1277_v47, %v1263_v50 }
 0x1ad   : > { %v835_v39 = vpop.f32.mrf.mxu1  ;;  %v1063_v0 = vpop.f32.mrf.mxu3 }
 0x1ae   : > { %v1093_v13 = vadd.f32 %v1063_v0, %v979_v51  ;;  %v863_v17 = vadd.f32 %v835_v39, %v2627_v54 }
 0x1af   : > { %v1177_v63 = vpop.f32.mrf.mxu0 }
 0x1b0   : > { %v1207_v62 = vadd.f32 %v1177_v63, %v1093_v13 }
 0x1b2   : > { %1223 = vst [vmem:[%s1866_s7 + $0x48] sm:$0xff] %v1207_v62  ;;  %v1239_v38 = vadd.f32 %v1238_v49, %v1207_v62  ;;  %v1264_v61 = vmul.f32 %v1207_v62, %v1207_v62  ;;  %v952_v6 = vpop.f32.mrf.mxu2 }
 0x1b3   : > { %v980_v56 = vadd.f32 %v952_v6, %v863_v17 }
 0x1b4   : > { %v1279_v15 = vadd.f32 %v1278_v36, %v1264_v61 }
 0x1b5   : > { %v838_v24 = vpop.f32.mrf.mxu1  ;;  %v1066_v27 = vpop.f32.mrf.mxu3 }
 0x1b6   : > { %v1094_v52 = vadd.f32 %v1066_v27, %v980_v56  ;;  %v864_v60 = vadd.f32 %v838_v24, %v2634_v43 }
 0x1b7   : > { %v1180_v30 = vpop.f32.mrf.mxu0 }
 0x1b8   : > { %v1208_v48 = vadd.f32 %v1180_v30, %v1094_v52 }
 0x1ba   : > { %1224 = vst [vmem:[%s1866_s7 + $0x50] sm:$0xff] %v1208_v48  ;;  %v1240_v34 = vadd.f32 %v1239_v38, %v1208_v48  ;;  %v1265_v33 = vmul.f32 %v1208_v48, %v1208_v48  ;;  %v955_v16 = vpop.f32.mrf.mxu2 }
 0x1bb   : > { %v981_v7 = vadd.f32 %v955_v16, %v864_v60 }
 0x1bc   : > { %v1280_v54 = vadd.f32 %v1279_v15, %v1265_v33  ;;  %v1230_v33 = vld [vmem:[%s1861_s4] sm:$0x1] }
 0x1bd   : > { %v841_v31 = vpop.f32.mrf.mxu1  ;;  %v1069_v3 = vpop.f32.mrf.mxu3 }
 0x1be   : > { %v1095_v4 = vadd.f32 %v1069_v3, %v981_v7  ;;  %v865_v59 = vadd.f32 %v841_v31, %v2642_v23 }
 0x1bf   : > { %v1183_v2 = vpop.f32.mrf.mxu0 }
 0x1c0   : > { %v1209_v10 = vadd.f32 %v1183_v2, %v1095_v4 }
 0x1c2   : > { %1225 = vst [vmem:[%s1866_s7 + $0x58] sm:$0xff] %v1209_v10  ;;  %v1241_v5 = vadd.f32 %v1240_v34, %v1209_v10  ;;  %v1266_v44 = vmul.f32 %v1209_v10, %v1209_v10  ;;  %v958_v57 = vpop.f32.mrf.mxu2 }
 0x1c3   : > { %v982_v11 = vadd.f32 %v958_v57, %v865_v59 }
 0x1c4   : > { %v1281_v43 = vadd.f32 %v1280_v54, %v1266_v44  ;;  %v1254_v54 = vld [vmem:[%s1861_s4 + $0x1] sm:$0x1] }
 0x1c5   : > { %v844_v26 = vpop.f32.mrf.mxu1  ;;  %v1072_v9 = vpop.f32.mrf.mxu3 }
 0x1c6   : > { %v1096_v40 = vadd.f32 %v1072_v9, %v982_v11  ;;  %v866_v22 = vadd.f32 %v844_v26, %v2650_v21 }
 0x1c7   : > { %v1186_v18 = vpop.f32.mrf.mxu0 }
 0x1c8   : > { %v1210_v12 = vadd.f32 %v1186_v18, %v1096_v40 }
 0x1ca   : > { %1226 = vst [vmem:[%s1866_s7 + $0x60] sm:$0xff] %v1210_v12  ;;  %v1242_v41 = vadd.f32 %v1241_v5, %v1210_v12  ;;  %v1267_v20 = vmul.f32 %v1210_v12, %v1210_v12  ;;  %v961_v19 = vpop.f32.mrf.mxu2 }
 0x1cb   : > { %v983_v14 = vadd.f32 %v961_v19, %v866_v22 }
 0x1cc   : > { %v1282_v23 = vadd.f32 %v1281_v43, %v1267_v20 }
 0x1cd   : > { %v847_v42 = vpop.f32.mrf.mxu1  ;;  %v1075_v25 = vpop.f32.mrf.mxu3 }
 0x1ce   : > { %v1097_v58 = vadd.f32 %v1075_v25, %v983_v14  ;;  %v867_v47 = vadd.f32 %v847_v42, %v2656_v46 }
 0x1cf   : > { %v1189_v32 = vpop.f32.mrf.mxu0 }
 0x1d0   : > { %v1211_v53 = vadd.f32 %v1189_v32, %v1097_v58 }
 0x1d2   : > { %1227 = vst [vmem:[%s1866_s7 + $0x68] sm:$0xff] %v1211_v53  ;;  %v1243_v35 = vadd.f32 %v1242_v41, %v1211_v53  ;;  %v1268_v45 = vmul.f32 %v1211_v53, %v1211_v53  ;;  %v964_v29 = vpop.f32.mrf.mxu2 }
 0x1d3   : > { %v984_v8 = vadd.f32 %v964_v29, %v867_v47 }
 0x1d4   : > { %v1283_v21 = vadd.f32 %v1282_v23, %v1268_v45 }
 0x1d5   : > { %v1078_v1 = vpop.f32.mrf.mxu3  ;;  %v850_v28 = vpop.f32.mrf.mxu1 }
 0x1d6   : > { %v1098_v49 = vadd.f32 %v1078_v1, %v984_v8  ;;  %v868_v51 = vadd.f32 %v850_v28, %v2662_v55 }
 0x1d7   : > { %v1192_v50 = vpop.f32.mrf.mxu0 }
 0x1d8   : > { %v1212_v37 = vadd.f32 %v1192_v50, %v1098_v49 }
 0x1da   : > { %1228 = vst [vmem:[%s1866_s7 + $0x70] sm:$0xff] %v1212_v37  ;;  %v1244_v36 = vadd.f32 %v1243_v35, %v1212_v37  ;;  %v1269_v39 = vmul.f32 %v1212_v37, %v1212_v37  ;;  %v967_v0 = vpop.f32.mrf.mxu2 }
 0x1db   : > { %v985_v13 = vadd.f32 %v967_v0, %v868_v51 }
 0x1dc   : > { %v1284_v46 = vadd.f32 %v1283_v21, %v1269_v39 }
 0x1dd   : > { %v1081_v63 = vpop.f32.mrf.mxu3 }
 0x1de   : > { %v1099_v62 = vadd.f32 %v1081_v63, %v985_v13 }
 0x1df   : > { %v1195_v17 = vpop.f32.mrf.mxu0 }
 0x1e0   : > { %v1213_v38 = vadd.f32 %v1195_v17, %v1099_v62 }
 0x1e2   : > { %1229 = vst [vmem:[%s1866_s7 + $0x78] sm:$0xff] %v1213_v38  ;;  %v1245_v61 = vadd.f32 %v1244_v36, %v1213_v38  ;;  %v1270_v6 = vmul.f32 %v1213_v38, %v1213_v38 }
 0x1e4   : > { %v1246_v56 = vrot.slane %v1245_v61, 4  ;;  %v1285_v15 = vadd.f32 %v1284_v46, %v1270_v6 }
 0x1e6   : > { %v1247_v24 = vadd.f32 %v1246_v56, %v1245_v61  ;;  %v1286_v55 = vrot.slane %v1285_v15, 4 }
 0x1e8   : > { %v1248_v27 = vrot.slane %v1247_v24, 2  ;;  %v1287_v52 = vadd.f32 %v1286_v55, %v1285_v15 }
 0x1ea   : > { %v1249_v30 = vadd.f32 %v1248_v27, %v1247_v24  ;;  %v1288_v48 = vrot.slane %v1287_v52, 2 }
 0x1ec   : > { %v1250_v60 = vrot.slane %v1249_v30, 1  ;;  %v1289_v34 = vadd.f32 %v1288_v48, %v1287_v52 }
 0x1ee   : > { %v1251_v16 = vadd.f32 %v1250_v60, %v1249_v30  ;;  %v1290_v7 = vrot.slane %v1289_v34, 1 }
 0x1f0   : > { %v1252_v31 = vadd.f32 %v1251_v16, %v1230_v33  ;;  %v1291_v3 = vadd.f32 %v1290_v7, %v1289_v34 }
 0x1f2   : > { %1253 = vst [vmem:[%s1861_s4] sm:$0x1] %v1252_v31  ;;  %v1292_v4 = vadd.f32 %v1291_v3, %v1254_v54 }
 0x1f4   : > { %1293 = vst [vmem:[%s1861_s4 + $0x1] sm:$0x1] %v1292_v4 }
 0x1f5 PF: > { %s14_s16 = sadd.s32 1, %s1797_s16   ;;  %s2725_s12 = smov %s1789_s14 }
 0x1f6   : > { %p11_p8 = scmp.ge.s32.totalorder %s14_s16, 6   ;;  %s2726_s13 = smov %s1793_s15 }
 0x1f7   : > { %s2727_s14 = smov %s2730_s17  ;;  %s2728_s15 = smov %s2734_s18 }
 0x1f8   :  { %13 = sbr.rel (!%p11_p8) target bundleno = 3 (0x3), region = 85 }

</bundles_post_ra>
